<compile_context>
chip_gen: v6e
topology: v6e:2x2x1
jax: 0.10.0
libtpu: 0.0.40
codegen_flags: <defaults>
</compile_context>

<pallas_src>
import functools
import math

import jax
import jax.numpy as jnp
from jax.experimental import pallas as pl
from jax.experimental.pallas import tpu as pltpu


def _round_up(x, m):
    return ((x + m - 1) // m) * m


_COMPILER_PARAMS = pltpu.CompilerParams(
    dimension_semantics=("parallel",),
    vmem_limit_bytes=48 * 1024 * 1024,
)


# ---------------------------------------------------------------------------
# Static geometry
# ---------------------------------------------------------------------------

def _geometry(H, W, n_s1):
    assert H >= 3 and W >= 3, "input spatial dims must be >= 3"
    He, We = H + (H % 2), W + (W % 2)      # pad to even for space-to-depth
    Hs, Wp = He // 2, We // 2              # s2d grid == physical row width
    OH = (H - 3) // 2 + 1                  # stride-2 conv output size
    OW = (W - 3) // 2 + 1
    hf = OH - 2 * n_s1                     # final valid height / width
    wf = OW - 2 * n_s1
    assert hf >= 1 and wf >= 1, "encoder too deep for this input size"
    assert OW <= Wp - 1                    # garbage-column invariant
    P = _round_up(Hs * Wp, 16)             # per-image row pitch (bf16 tiling)
    return Hs, Wp, OH, OW, hf, wf, P


def _pick_tb(bpad, kf):
    # Keep the (tb, Kf) feat tile VMEM-friendly on v7x (64 MiB) and give the
    # "parallel" grid >= 2 steps whenever the batch allows (2 TensorCores).
    cap = 64 if kf > 16384 else 128
    tb = cap
    while tb > 8 and bpad % tb != 0:
        tb //= 2
    if bpad // tb < 2 and tb > 8:
        tb //= 2
    return tb


# ---------------------------------------------------------------------------
# Fused conv-stack kernel (stride-2 conv + all stride-1 convs, ReLU)
# ---------------------------------------------------------------------------

def _conv_stack_kernel(*refs, n_s1, nbp, wp, c0, f):
    """Whole conv stack for one block of images on flattened channels-last rows.

    refs = [x, w0, b0, (w_l, b_l)*n_s1, out, (buf0, buf1 if n_s1>0)]
      x   : (nbp, c0)      bf16  space-to-depth rows, per-image pitch P
      w0  : (4, c0, f)     bf16  2x2 taps of the s2d-transformed stride-2 conv
      w_l : (9, f, f)      bf16  3x3 taps of stride-1 conv l
      out : (nbp, f)       bf16
      buf : (nbp + pad, f) bf16  VMEM ping-pong scratch
    Garbage rows (row-wrap / image tails) never feed valid outputs; they only
    need to stay finite (zeroed pads + ReLU outputs), and the packed fc weight
    zeroes their contribution.
    """
    n_in = 3 + 2 * n_s1
    x_ref, w0_ref, b0_ref = refs[0], refs[1], refs[2]
    wl_refs = refs[3:n_in]
    o_ref = refs[n_in]
    bufs = refs[n_in + 1:]

    pad = 2 * wp + 2
    n0 = nbp - (wp + 1)          # stride-2 rows computed (cut tail is garbage-only)

    # --- stride-2 conv as a 2x2 conv over space-to-depth rows ---------------
    x = x_ref[...]
    acc = jnp.zeros((n0, f), jnp.float32)
    for di in range(2):
        for dj in range(2):
            s = di * wp + dj
            acc = acc + jnp.dot(x[s:s + n0, :], w0_ref[di * 2 + dj],
                                preferred_element_type=jnp.float32)
    a0 = jnp.maximum(acc + b0_ref[...], 0.0).astype(jnp.bfloat16)

    if n_s1 == 0:
        o_ref[pl.ds(0, n0), :] = a0
        o_ref[pl.ds(n0, nbp - n0), :] = jnp.zeros((nbp - n0, f), jnp.bfloat16)
        return

    buf0, buf1 = bufs[0], bufs[1]
    buf0[pl.ds(n0, nbp + pad - n0), :] = jnp.zeros((nbp + pad - n0, f), jnp.bfloat16)
    buf1[pl.ds(nbp, pad), :] = jnp.zeros((pad, f), jnp.bfloat16)
    buf0[pl.ds(0, n0), :] = a0

    # --- stride-1 convs: ping-pong between VMEM scratch buffers -------------
    src, dst = buf0, buf1
    for l in range(n_s1):
        w_ref, b_ref = wl_refs[2 * l], wl_refs[2 * l + 1]
        xs = src[...]                                        # (nbp + pad, f)
        acc = jnp.zeros((nbp, f), jnp.float32)
        for ki in range(3):
            for kj in range(3):
                s = ki * wp + kj
                acc = acc + jnp.dot(xs[s:s + nbp, :], w_ref[ki * 3 + kj],
                                    preferred_element_type=jnp.float32)
        out = jnp.maximum(acc + b_ref[...], 0.0).astype(jnp.bfloat16)
        if l == n_s1 - 1:
            o_ref[...] = out
        else:
            dst[pl.ds(0, nbp), :] = out
            src, dst = dst, src


def conv_stack(x_rows, conv0, convs_s1, *, nb, P, Wp):
    """x_rows: (Bpad*P, 4C) bf16 -> (Bpad*P, F) bf16, whole conv stack fused."""
    w0, b0 = conv0
    C0 = x_rows.shape[1]
    F = w0.shape[-1]
    n_s1 = len(convs_s1)
    Bpad = x_rows.shape[0] // P
    nbp = nb * P
    pad = 2 * Wp + 2

    args = [x_rows, w0, b0]
    for (w, b) in convs_s1:
        args += [w, b]

    def _full(a):
        nd = a.ndim
        return pl.BlockSpec(a.shape, lambda i, _nd=nd: (0,) * _nd)

    in_specs = [pl.BlockSpec((nbp, C0), lambda i: (i, 0))] + [_full(a) for a in args[1:]]
    scratch = []
    if n_s1 >= 1:
        scratch = [pltpu.VMEM((nbp + pad, F), jnp.bfloat16),
                   pltpu.VMEM((nbp + pad, F), jnp.bfloat16)]

    flops = 2 * Bpad * P * (4 * C0 * F + n_s1 * 9 * F * F)
    bytes_acc = Bpad * P * (C0 + F) * 2 + (4 * C0 * F + n_s1 * 9 * F * F) * 2
    return pl.pallas_call(
        functools.partial(_conv_stack_kernel, n_s1=n_s1, nbp=nbp, wp=Wp, c0=C0, f=F),
        out_shape=jax.ShapeDtypeStruct((Bpad * P, F), jnp.bfloat16),
        grid=(Bpad // nb,),
        in_specs=in_specs,
        out_specs=pl.BlockSpec((nbp, F), lambda i: (i, 0)),
        scratch_shapes=scratch,
        compiler_params=_COMPILER_PARAMS,
        cost_estimate=pl.CostEstimate(flops=flops, transcendentals=0,
                                      bytes_accessed=bytes_acc),
    )(*args)


# ---------------------------------------------------------------------------
# Fused head kernel: encoder fc + LayerNorm + Q1/Q2 MLPs
# ---------------------------------------------------------------------------

def _head_kernel(x_ref, a_ref, wfc_ref, bfc_ref, g_ref, bt_ref,
                 w1f_ref, w1a_ref, b1_ref, w2_ref, b2_ref, w3_ref, b3_ref,
                 o_ref):
    # encoder fc (bf16 MXU, f32 acc) + LayerNorm (f32, eps=1e-5, biased var).
    h = jnp.dot(x_ref[...], wfc_ref[...],
                preferred_element_type=jnp.float32) + bfc_ref[...]
    mean = jnp.mean(h, axis=-1, keepdims=True)
    var = jnp.mean(jnp.square(h - mean), axis=-1, keepdims=True)
    feat = (h - mean) * jax.lax.rsqrt(var + 1e-5) * g_ref[...] + bt_ref[...]
    fb = feat.astype(jnp.bfloat16)
    ab = a_ref[...].astype(jnp.bfloat16)
    # Q1 / Q2: independent hid x hid trunks (no 2H x 2H block-diagonal);
    # w3[j] is (hid, 2) with one zero column per head so both land in one store.
    q = b3_ref[...]
    for j in range(2):
        h1 = (jnp.dot(fb, w1f_ref[j], preferred_element_type=jnp.float32)
              + jnp.dot(ab, w1a_ref[j], preferred_element_type=jnp.float32)
              + b1_ref[j])
        h1 = jnp.maximum(h1, 0.0).astype(jnp.bfloat16)
        h2 = jnp.maximum(
            jnp.dot(h1, w2_ref[j], preferred_element_type=jnp.float32) + b2_ref[j],
            0.0).astype(jnp.bfloat16)
        q = q + jnp.dot(h2, w3_ref[j], preferred_element_type=jnp.float32)
    o_ref[...] = q


def fused_head(feat_in, action, head, *, tb):
    Bpad, Kf = feat_in.shape
    A = action.shape[1]
    D = head["w_fc"].shape[1]
    hid = head["w2"].shape[-1]

    args = (feat_in, action, head["w_fc"], head["b_fc"], head["gamma"],
            head["beta"], head["w1f"], head["w1a"], head["b1"],
            head["w2"], head["b2"], head["w3"], head["b3"])

    def _full(a):
        nd = a.ndim
        return pl.BlockSpec(a.shape, lambda i, _nd=nd: (0,) * _nd)

    in_specs = ([pl.BlockSpec((tb, Kf), lambda i: (i, 0)),
                 pl.BlockSpec((tb, A), lambda i: (i, 0))]
                + [_full(a) for a in args[2:]])

    flops = 2 * Bpad * (Kf * D + 2 * ((D + A) * hid + hid * hid + 2 * hid))
    bytes_acc = (Bpad * Kf * 2 + Kf * D * 2
                 + 2 * hid * (D + A + hid + 2) * 2 + Bpad * 2 * 4)
    return pl.pallas_call(
        _head_kernel,
        out_shape=jax.ShapeDtypeStruct((Bpad, 2), jnp.float32),
        grid=(Bpad // tb,),
        in_specs=in_specs,
        out_specs=pl.BlockSpec((tb, 2), lambda i: (i, 0)),
        compiler_params=_COMPILER_PARAMS,
        cost_estimate=pl.CostEstimate(flops=flops, transcendentals=Bpad,
                                      bytes_accessed=bytes_acc),
    )(*args)


# ---------------------------------------------------------------------------
# Init (PyTorch weight_init semantics), parameter packing, forward
# ---------------------------------------------------------------------------

def _orthogonal(key, shape, gain=1.0):
    return jax.nn.initializers.orthogonal(scale=gain)(key, shape, jnp.float32)


def init_critic_params_torch(key, obs_shape, action_dim, hidden_dim, feature_dim,
                             num_layers, num_filters):
    """PyTorch-layout params mirroring weight_init(): orthogonal linears, zero
    biases, conv weights zero except orthogonal*gain(relu) at the kernel center."""
    C, H, W = obs_shape
    keys = iter(jax.random.split(key, num_layers + 8))
    gain_relu = math.sqrt(2.0)

    convs = []
    in_c = C
    oh, ow = H, W
    for i in range(num_layers):
        w = jnp.zeros((num_filters, in_c, 3, 3), jnp.float32)
        w = w.at[:, :, 1, 1].set(_orthogonal(next(keys), (num_filters, in_c), gain_relu))
        convs.append((w, jnp.zeros((num_filters,), jnp.float32)))
        s = 2 if i == 0 else 1
        oh = (oh - 3) // s + 1
        ow = (ow - 3) // s + 1
        in_c = num_filters

    flat_dim = num_filters * oh * ow
    w_fc = _orthogonal(next(keys), (feature_dim, flat_dim))
    b_fc = jnp.zeros((feature_dim,), jnp.float32)
    gamma = jnp.ones((feature_dim,), jnp.float32)
    beta = jnp.zeros((feature_dim,), jnp.float32)

    def q_params():
        w1 = _orthogonal(next(keys), (hidden_dim, feature_dim + action_dim))
        w2 = _orthogonal(next(keys), (hidden_dim, hidden_dim))
        w3 = _orthogonal(next(keys), (1, hidden_dim))
        return [(w1, jnp.zeros((hidden_dim,), jnp.float32)),
                (w2, jnp.zeros((hidden_dim,), jnp.float32)),
                (w3, jnp.zeros((1,), jnp.float32))]

    return {"convs": convs, "fc": (w_fc, b_fc), "ln": (gamma, beta),
            "q1": q_params(), "q2": q_params()}


def pack_params(tp, obs_shape):
    """One-time repack: pre-transpose all weights, build the 2x2 space-to-depth
    form of the stride-2 conv, stack Q1/Q2, and permute / zero-pad the fc weight
    for the flattened physical-width-Wp / pitch-P conv-output rows."""
    C, H, W = obs_shape
    convs = tp["convs"]
    n_s1 = len(convs) - 1
    F = convs[0][0].shape[0]
    Hs, Wp, OH, OW, hf, wf, P = _geometry(H, W, n_s1)

    # stride-2 conv -> 2x2 conv over (pi, pj, c) space-to-depth channel groups.
    w0, b0 = convs[0]
    w0p = jnp.zeros((4, 4 * C, F), jnp.float32)
    for di in range(2):
        for dj in range(2):
            for pi in range(2):
                for pj in range(2):
                    ki, kj = 2 * di + pi, 2 * dj + pj
                    if ki < 3 and kj < 3:
                        g = pi * 2 + pj
                        w0p = w0p.at[di * 2 + dj, g * C:(g + 1) * C, :].set(
                            jnp.transpose(w0[:, :, ki, kj]))
    conv0 = (w0p.astype(jnp.bfloat16), b0.reshape(1, -1).astype(jnp.float32))

    convs_s1 = []
    for (w, b) in convs[1:]:
        w9 = jnp.transpose(w, (2, 3, 1, 0)).reshape(9, w.shape[1], F)
        convs_s1.append((w9.astype(jnp.bfloat16),
                         b.reshape(1, -1).astype(jnp.float32)))

    # fc: PyTorch flattens valid NCHW (F, hf, wf); we feed flattened NHWC rows
    # of physical width Wp and pitch P -> permute + zero-pad the weight rows
    # (the zero rows kill every garbage column/row of the conv output).
    w_fc, b_fc = tp["fc"]
    D = w_fc.shape[0]
    w_hw = jnp.transpose(w_fc.reshape(D, F, hf, wf), (0, 2, 3, 1))     # (D,hf,wf,F)
    w_hw = jnp.pad(w_hw, ((0, 0), (0, 0), (0, Wp - wf), (0, 0)))
    w_hw = w_hw.reshape(D, hf * Wp, F)
    w_hw = jnp.pad(w_hw, ((0, 0), (0, P - hf * Wp), (0, 0)))
    w_fc_packed = w_hw.reshape(D, P * F).T.astype(jnp.bfloat16)        # (P*F, D)
    gamma, beta = tp["ln"]

    def q_pack(q):
        (w1, b1), (w2, b2), (w3, b3) = q
        return (w1[:, :D].T, w1[:, D:].T, b1.reshape(1, -1),
                w2.T, b2.reshape(1, -1), w3[0], b3[0])

    q1, q2 = q_pack(tp["q1"]), q_pack(tp["q2"])
    hid = tp["q1"][0][0].shape[0]
    w3s = jnp.zeros((2, hid, 2), jnp.float32)
    w3s = w3s.at[0, :, 0].set(q1[5]).at[1, :, 1].set(q2[5])

    head = dict(
        w_fc=w_fc_packed,
        b_fc=b_fc.reshape(1, -1).astype(jnp.float32),
        gamma=gamma.reshape(1, -1).astype(jnp.float32),
        beta=beta.reshape(1, -1).astype(jnp.float32),
        w1f=jnp.stack([q1[0], q2[0]]).astype(jnp.bfloat16),    # (2, D, hid)
        w1a=jnp.stack([q1[1], q2[1]]).astype(jnp.bfloat16),    # (2, A, hid)
        b1=jnp.stack([q1[2], q2[2]]).astype(jnp.float32),      # (2, 1, hid)
        w2=jnp.stack([q1[3], q2[3]]).astype(jnp.bfloat16),     # (2, hid, hid)
        b2=jnp.stack([q1[4], q2[4]]).astype(jnp.float32),      # (2, 1, hid)
        w3=w3s.astype(jnp.bfloat16),                           # (2, hid, 2)
        b3=jnp.stack([q1[6], q2[6]]).reshape(1, 2).astype(jnp.float32))
    return {"conv0": conv0, "convs_s1": tuple(convs_s1), "head": head}


def _space_to_depth_rows(obs, *, Hs, Wp, P, Bpad):
    """obs (B, C, H, W) -> (Bpad*P, 4C) bf16: obs/255 (f32), NHWC, 2x2
    space-to-depth, flatten to rows of physical width Wp with per-image pitch P."""
    B, C, H, W = obs.shape
    x = obs.astype(jnp.float32) / 255.0
    x = jnp.transpose(x, (0, 2, 3, 1))                                 # NHWC
    x = jnp.pad(x, ((0, 0), (0, 2 * Hs - H), (0, 2 * Wp - W), (0, 0)))
    x = x.reshape(B, Hs, 2, Wp, 2, C).transpose(0, 1, 3, 2, 4, 5)
    x = x.reshape(B, Hs * Wp, 4 * C)
    x = jnp.pad(x, ((0, Bpad - B), (0, P - Hs * Wp), (0, 0)))
    return x.reshape(Bpad * P, 4 * C).astype(jnp.bfloat16)


@jax.jit
def critic_forward(params, obs, action):
    """obs: (B, C, H, W) float NCHW (PyTorch convention); action: (B, A).
    Returns (q1, q2), each (B, 1) float32."""
    B, C, H, W = obs.shape
    n_s1 = len(params["convs_s1"])
    Hs, Wp, _OH, _OW, _hf, _wf, P = _geometry(H, W, n_s1)
    F = params["conv0"][0].shape[-1]
    Kf = P * F

    Bpad = _round_up(B, 8)
    nb = 8 if Bpad >= 16 else max(1, Bpad // 2)
    tb = _pick_tb(Bpad, Kf)

    x_rows = _space_to_depth_rows(obs, Hs=Hs, Wp=Wp, P=P, Bpad=Bpad)
    conv_out = conv_stack(x_rows, params["conv0"], params["convs_s1"],
                          nb=nb, P=P, Wp=Wp)                  # (Bpad*P, F) bf16
    feat_in = conv_out.reshape(Bpad, Kf)                      # free row-major reshape
    act = jnp.pad(action.astype(jnp.float32), ((0, Bpad - B), (0, 0)))
    out = fused_head(feat_in, act, params["head"], tb=tb)     # (Bpad, 2) f32
    # detach_encoder only affects autodiff, not forward values.
    return out[:B, 0:1], out[:B, 1:2]


# ---------------------------------------------------------------------------
# Example run
# ---------------------------------------------------------------------------

if __name__ == "__main__":
    B = 2
    obs_shape = (4, 16, 16)       # (C, H, W)
    action_dim = 2
    hidden_dim = 32
    feature_dim = 32
    num_layers = 2
    num_filters = 8

    root = jax.random.PRNGKey(0)
    k_params, k_obs, k_act = jax.random.split(root, 3)

    torch_params = init_critic_params_torch(
        k_params, obs_shape, action_dim, hidden_dim, feature_dim,
        num_layers, num_filters)
    params = pack_params(torch_params, obs_shape)

    obs = jax.random.uniform(k_obs, (B,) + obs_shape, jnp.float32, 0.0, 255.0)
    action = jax.random.uniform(k_act, (B, action_dim), jnp.float32, -1.0, 1.0)

    q1, q2 = critic_forward(params, obs, action)
    jax.block_until_ready((q1, q2))
    assert q1.shape == (B, 1) and q2.shape == (B, 1)
    assert bool(jnp.all(jnp.isfinite(q1))) and bool(jnp.all(jnp.isfinite(q2)))
    print("KERNEL_OK")
</pallas_src>

<mosaic_0001>
module attributes {stable_mosaic.version = 11 : i64} {
  func.func @_conv_stack_kernel(%arg0: i32, %arg1: memref<256x16xbf16, #tpu.memory_space<vmem>>, %arg2: memref<4x16x8xbf16, #tpu.memory_space<vmem>>, %arg3: memref<1x8xf32, #tpu.memory_space<vmem>>, %arg4: memref<9x8x8xbf16, #tpu.memory_space<vmem>>, %arg5: memref<1x8xf32, #tpu.memory_space<vmem>>, %arg6: memref<256x8xbf16, #tpu.memory_space<vmem>>, %arg7: memref<274x8xbf16, #tpu.memory_space<vmem>>, %arg8: memref<274x8xbf16, #tpu.memory_space<vmem>>) attributes {dimension_semantics = [#tpu.dimension_semantics<parallel>], iteration_bounds = array<i64: 2>, scalar_prefetch = 0 : i64, scratch_operands = 2 : i64, tpu.core_type = #tpu.core_type<tc>, window_params = [{transform_indices = @transform_0, window_bounds = array<i64: 256, 16>}, {pipeline_mode = #tpu.pipeline_mode<synchronous>, transform_indices = @transform_1, window_bounds = array<i64: 4, 16, 8>}, {pipeline_mode = #tpu.pipeline_mode<synchronous>, transform_indices = @transform_2, window_bounds = array<i64: 1, 8>}, {pipeline_mode = #tpu.pipeline_mode<synchronous>, transform_indices = @transform_3, window_bounds = array<i64: 9, 8, 8>}, {pipeline_mode = #tpu.pipeline_mode<synchronous>, transform_indices = @transform_4, window_bounds = array<i64: 1, 8>}, {transform_indices = @transform_5, window_bounds = array<i64: 256, 8>}]} {
    %c0 = arith.constant 0 : index
    %c0_0 = arith.constant 0 : index
    %0 = vector.load %arg1[%c0, %c0_0] : memref<256x16xbf16, #tpu.memory_space<vmem>>, vector<256x16xbf16>
    %cst = arith.constant 0.000000e+00 : f32
    %1 = vector.broadcast %cst : f32 to vector<247x8xf32>
    %2 = vector.extract_strided_slice %0 {offsets = [0, 0], sizes = [247, 16], strides = [1, 1]} : vector<256x16xbf16> to vector<247x16xbf16>
    %c0_1 = arith.constant 0 : index
    %c0_2 = arith.constant 0 : index
    %c0_3 = arith.constant 0 : index
    %3 = vector.load %arg2[%c0_1, %c0_2, %c0_3] : memref<4x16x8xbf16, #tpu.memory_space<vmem>>, vector<1x16x8xbf16>
    %4 = vector.shape_cast %3 : vector<1x16x8xbf16> to vector<16x8xbf16>
    %cst_4 = arith.constant dense<0.000000e+00> : vector<247x8xf32>
    %5 = tpu.matmul %2, %4, %cst_4 {dimension_numbers = #tpu.dot_dimension_numbers<[1], [0], [0], [1], [0, 0, 1, 1], [], []>} : vector<247x16xbf16>, vector<16x8xbf16>, vector<247x8xf32> -> vector<247x8xf32>
    %6 = arith.addf %1, %5 : vector<247x8xf32>
    %7 = vector.extract_strided_slice %0 {offsets = [1, 0], sizes = [247, 16], strides = [1, 1]} : vector<256x16xbf16> to vector<247x16xbf16>
    %c1 = arith.constant 1 : index
    %c0_5 = arith.constant 0 : index
    %c0_6 = arith.constant 0 : index
    %8 = vector.load %arg2[%c1, %c0_5, %c0_6] : memref<4x16x8xbf16, #tpu.memory_space<vmem>>, vector<1x16x8xbf16>
    %9 = vector.shape_cast %8 : vector<1x16x8xbf16> to vector<16x8xbf16>
    %cst_7 = arith.constant dense<0.000000e+00> : vector<247x8xf32>
    %10 = tpu.matmul %7, %9, %cst_7 {dimension_numbers = #tpu.dot_dimension_numbers<[1], [0], [0], [1], [0, 0, 1, 1], [], []>} : vector<247x16xbf16>, vector<16x8xbf16>, vector<247x8xf32> -> vector<247x8xf32>
    %11 = arith.addf %6, %10 : vector<247x8xf32>
    %12 = vector.extract_strided_slice %0 {offsets = [8, 0], sizes = [247, 16], strides = [1, 1]} : vector<256x16xbf16> to vector<247x16xbf16>
    %c2 = arith.constant 2 : index
    %c0_8 = arith.constant 0 : index
    %c0_9 = arith.constant 0 : index
    %13 = vector.load %arg2[%c2, %c0_8, %c0_9] : memref<4x16x8xbf16, #tpu.memory_space<vmem>>, vector<1x16x8xbf16>
    %14 = vector.shape_cast %13 : vector<1x16x8xbf16> to vector<16x8xbf16>
    %cst_10 = arith.constant dense<0.000000e+00> : vector<247x8xf32>
    %15 = tpu.matmul %12, %14, %cst_10 {dimension_numbers = #tpu.dot_dimension_numbers<[1], [0], [0], [1], [0, 0, 1, 1], [], []>} : vector<247x16xbf16>, vector<16x8xbf16>, vector<247x8xf32> -> vector<247x8xf32>
    %16 = arith.addf %11, %15 : vector<247x8xf32>
    %17 = vector.extract_strided_slice %0 {offsets = [9, 0], sizes = [247, 16], strides = [1, 1]} : vector<256x16xbf16> to vector<247x16xbf16>
    %c3 = arith.constant 3 : index
    %c0_11 = arith.constant 0 : index
    %c0_12 = arith.constant 0 : index
    %18 = vector.load %arg2[%c3, %c0_11, %c0_12] : memref<4x16x8xbf16, #tpu.memory_space<vmem>>, vector<1x16x8xbf16>
    %19 = vector.shape_cast %18 : vector<1x16x8xbf16> to vector<16x8xbf16>
    %cst_13 = arith.constant dense<0.000000e+00> : vector<247x8xf32>
    %20 = tpu.matmul %17, %19, %cst_13 {dimension_numbers = #tpu.dot_dimension_numbers<[1], [0], [0], [1], [0, 0, 1, 1], [], []>} : vector<247x16xbf16>, vector<16x8xbf16>, vector<247x8xf32> -> vector<247x8xf32>
    %21 = arith.addf %16, %20 : vector<247x8xf32>
    %c0_14 = arith.constant 0 : index
    %c0_15 = arith.constant 0 : index
    %22 = vector.load %arg3[%c0_14, %c0_15] : memref<1x8xf32, #tpu.memory_space<vmem>>, vector<1x8xf32>
    %23 = vector.broadcast %22 : vector<1x8xf32> to vector<247x8xf32>
    %24 = arith.addf %21, %23 : vector<247x8xf32>
    %cst_16 = arith.constant 0.000000e+00 : f32
    %25 = vector.broadcast %cst_16 : f32 to vector<247x8xf32>
    %26 = arith.maximumf %24, %25 : vector<247x8xf32>
    %27 = arith.truncf %26 : vector<247x8xf32> to vector<247x8xbf16>
    %cst_17 = arith.constant 0.000000e+00 : bf16
    %28 = vector.broadcast %cst_17 : bf16 to vector<27x8xbf16>
    %c247 = arith.constant 247 : index
    %c0_18 = arith.constant 0 : index
    %29 = vector.load %arg7[%c247, %c0_18] : memref<274x8xbf16, #tpu.memory_space<vmem>>, vector<27x8xbf16>
    tpu.vector_store %arg7[%c247, %c0_18], %28 {strides = array<i32>} : memref<274x8xbf16, #tpu.memory_space<vmem>>, vector<27x8xbf16>,
    %cst_19 = arith.constant 0.000000e+00 : bf16
    %30 = vector.broadcast %cst_19 : bf16 to vector<18x8xbf16>
    %c256 = arith.constant 256 : index
    %c0_20 = arith.constant 0 : index
    %31 = vector.load %arg8[%c256, %c0_20] : memref<274x8xbf16, #tpu.memory_space<vmem>>, vector<18x8xbf16>
    tpu.vector_store %arg8[%c256, %c0_20], %30 {strides = array<i32>} : memref<274x8xbf16, #tpu.memory_space<vmem>>, vector<18x8xbf16>,
    %c0_21 = arith.constant 0 : index
    %c0_22 = arith.constant 0 : index
    %32 = vector.load %arg7[%c0_21, %c0_22] : memref<274x8xbf16, #tpu.memory_space<vmem>>, vector<247x8xbf16>
    tpu.vector_store %arg7[%c0_21, %c0_22], %27 {strides = array<i32>} : memref<274x8xbf16, #tpu.memory_space<vmem>>, vector<247x8xbf16>,
    %c0_23 = arith.constant 0 : index
    %c0_24 = arith.constant 0 : index
    %33 = vector.load %arg7[%c0_23, %c0_24] : memref<274x8xbf16, #tpu.memory_space<vmem>>, vector<274x8xbf16>
    %cst_25 = arith.constant 0.000000e+00 : f32
    %34 = vector.broadcast %cst_25 : f32 to vector<256x8xf32>
    %35 = vector.extract_strided_slice %33 {offsets = [0, 0], sizes = [256, 8], strides = [1, 1]} : vector<274x8xbf16> to vector<256x8xbf16>
    %c0_26 = arith.constant 0 : index
    %c0_27 = arith.constant 0 : index
    %c0_28 = arith.constant 0 : index
    %36 = vector.load %arg4[%c0_26, %c0_27, %c0_28] : memref<9x8x8xbf16, #tpu.memory_space<vmem>>, vector<1x8x8xbf16>
    %37 = vector.shape_cast %36 : vector<1x8x8xbf16> to vector<8x8xbf16>
    %cst_29 = arith.constant dense<0.000000e+00> : vector<256x8xf32>
    %38 = tpu.matmul %35, %37, %cst_29 {dimension_numbers = #tpu.dot_dimension_numbers<[1], [0], [0], [1], [0, 0, 1, 1], [], []>} : vector<256x8xbf16>, vector<8x8xbf16>, vector<256x8xf32> -> vector<256x8xf32>
    %39 = arith.addf %34, %38 : vector<256x8xf32>
    %40 = vector.extract_strided_slice %33 {offsets = [1, 0], sizes = [256, 8], strides = [1, 1]} : vector<274x8xbf16> to vector<256x8xbf16>
    %c1_30 = arith.constant 1 : index
    %c0_31 = arith.constant 0 : index
    %c0_32 = arith.constant 0 : index
    %41 = vector.load %arg4[%c1_30, %c0_31, %c0_32] : memref<9x8x8xbf16, #tpu.memory_space<vmem>>, vector<1x8x8xbf16>
    %42 = vector.shape_cast %41 : vector<1x8x8xbf16> to vector<8x8xbf16>
    %cst_33 = arith.constant dense<0.000000e+00> : vector<256x8xf32>
    %43 = tpu.matmul %40, %42, %cst_33 {dimension_numbers = #tpu.dot_dimension_numbers<[1], [0], [0], [1], [0, 0, 1, 1], [], []>} : vector<256x8xbf16>, vector<8x8xbf16>, vector<256x8xf32> -> vector<256x8xf32>
    %44 = arith.addf %39, %43 : vector<256x8xf32>
    %45 = vector.extract_strided_slice %33 {offsets = [2, 0], sizes = [256, 8], strides = [1, 1]} : vector<274x8xbf16> to vector<256x8xbf16>
    %c2_34 = arith.constant 2 : index
    %c0_35 = arith.constant 0 : index
    %c0_36 = arith.constant 0 : index
    %46 = vector.load %arg4[%c2_34, %c0_35, %c0_36] : memref<9x8x8xbf16, #tpu.memory_space<vmem>>, vector<1x8x8xbf16>
    %47 = vector.shape_cast %46 : vector<1x8x8xbf16> to vector<8x8xbf16>
    %cst_37 = arith.constant dense<0.000000e+00> : vector<256x8xf32>
    %48 = tpu.matmul %45, %47, %cst_37 {dimension_numbers = #tpu.dot_dimension_numbers<[1], [0], [0], [1], [0, 0, 1, 1], [], []>} : vector<256x8xbf16>, vector<8x8xbf16>, vector<256x8xf32> -> vector<256x8xf32>
    %49 = arith.addf %44, %48 : vector<256x8xf32>
    %50 = vector.extract_strided_slice %33 {offsets = [8, 0], sizes = [256, 8], strides = [1, 1]} : vector<274x8xbf16> to vector<256x8xbf16>
    %c3_38 = arith.constant 3 : index
    %c0_39 = arith.constant 0 : index
    %c0_40 = arith.constant 0 : index
    %51 = vector.load %arg4[%c3_38, %c0_39, %c0_40] : memref<9x8x8xbf16, #tpu.memory_space<vmem>>, vector<1x8x8xbf16>
    %52 = vector.shape_cast %51 : vector<1x8x8xbf16> to vector<8x8xbf16>
    %cst_41 = arith.constant dense<0.000000e+00> : vector<256x8xf32>
    %53 = tpu.matmul %50, %52, %cst_41 {dimension_numbers = #tpu.dot_dimension_numbers<[1], [0], [0], [1], [0, 0, 1, 1], [], []>} : vector<256x8xbf16>, vector<8x8xbf16>, vector<256x8xf32> -> vector<256x8xf32>
    %54 = arith.addf %49, %53 : vector<256x8xf32>
    %55 = vector.extract_strided_slice %33 {offsets = [9, 0], sizes = [256, 8], strides = [1, 1]} : vector<274x8xbf16> to vector<256x8xbf16>
    %c4 = arith.constant 4 : index
    %c0_42 = arith.constant 0 : index
    %c0_43 = arith.constant 0 : index
    %56 = vector.load %arg4[%c4, %c0_42, %c0_43] : memref<9x8x8xbf16, #tpu.memory_space<vmem>>, vector<1x8x8xbf16>
    %57 = vector.shape_cast %56 : vector<1x8x8xbf16> to vector<8x8xbf16>
    %cst_44 = arith.constant dense<0.000000e+00> : vector<256x8xf32>
    %58 = tpu.matmul %55, %57, %cst_44 {dimension_numbers = #tpu.dot_dimension_numbers<[1], [0], [0], [1], [0, 0, 1, 1], [], []>} : vector<256x8xbf16>, vector<8x8xbf16>, vector<256x8xf32> -> vector<256x8xf32>
    %59 = arith.addf %54, %58 : vector<256x8xf32>
    %60 = vector.extract_strided_slice %33 {offsets = [10, 0], sizes = [256, 8], strides = [1, 1]} : vector<274x8xbf16> to vector<256x8xbf16>
    %c5 = arith.constant 5 : index
    %c0_45 = arith.constant 0 : index
    %c0_46 = arith.constant 0 : index
    %61 = vector.load %arg4[%c5, %c0_45, %c0_46] : memref<9x8x8xbf16, #tpu.memory_space<vmem>>, vector<1x8x8xbf16>
    %62 = vector.shape_cast %61 : vector<1x8x8xbf16> to vector<8x8xbf16>
    %cst_47 = arith.constant dense<0.000000e+00> : vector<256x8xf32>
    %63 = tpu.matmul %60, %62, %cst_47 {dimension_numbers = #tpu.dot_dimension_numbers<[1], [0], [0], [1], [0, 0, 1, 1], [], []>} : vector<256x8xbf16>, vector<8x8xbf16>, vector<256x8xf32> -> vector<256x8xf32>
    %64 = arith.addf %59, %63 : vector<256x8xf32>
    %65 = vector.extract_strided_slice %33 {offsets = [16, 0], sizes = [256, 8], strides = [1, 1]} : vector<274x8xbf16> to vector<256x8xbf16>
    %c6 = arith.constant 6 : index
    %c0_48 = arith.constant 0 : index
    %c0_49 = arith.constant 0 : index
    %66 = vector.load %arg4[%c6, %c0_48, %c0_49] : memref<9x8x8xbf16, #tpu.memory_space<vmem>>, vector<1x8x8xbf16>
    %67 = vector.shape_cast %66 : vector<1x8x8xbf16> to vector<8x8xbf16>
    %cst_50 = arith.constant dense<0.000000e+00> : vector<256x8xf32>
    %68 = tpu.matmul %65, %67, %cst_50 {dimension_numbers = #tpu.dot_dimension_numbers<[1], [0], [0], [1], [0, 0, 1, 1], [], []>} : vector<256x8xbf16>, vector<8x8xbf16>, vector<256x8xf32> -> vector<256x8xf32>
    %69 = arith.addf %64, %68 : vector<256x8xf32>
    %70 = vector.extract_strided_slice %33 {offsets = [17, 0], sizes = [256, 8], strides = [1, 1]} : vector<274x8xbf16> to vector<256x8xbf16>
    %c7 = arith.constant 7 : index
    %c0_51 = arith.constant 0 : index
    %c0_52 = arith.constant 0 : index
    %71 = vector.load %arg4[%c7, %c0_51, %c0_52] : memref<9x8x8xbf16, #tpu.memory_space<vmem>>, vector<1x8x8xbf16>
    %72 = vector.shape_cast %71 : vector<1x8x8xbf16> to vector<8x8xbf16>
    %cst_53 = arith.constant dense<0.000000e+00> : vector<256x8xf32>
    %73 = tpu.matmul %70, %72, %cst_53 {dimension_numbers = #tpu.dot_dimension_numbers<[1], [0], [0], [1], [0, 0, 1, 1], [], []>} : vector<256x8xbf16>, vector<8x8xbf16>, vector<256x8xf32> -> vector<256x8xf32>
    %74 = arith.addf %69, %73 : vector<256x8xf32>
    %75 = vector.extract_strided_slice %33 {offsets = [18, 0], sizes = [256, 8], strides = [1, 1]} : vector<274x8xbf16> to vector<256x8xbf16>
    %c8 = arith.constant 8 : index
    %c0_54 = arith.constant 0 : index
    %c0_55 = arith.constant 0 : index
    %76 = vector.load %arg4[%c8, %c0_54, %c0_55] : memref<9x8x8xbf16, #tpu.memory_space<vmem>>, vector<1x8x8xbf16>
    %77 = vector.shape_cast %76 : vector<1x8x8xbf16> to vector<8x8xbf16>
    %cst_56 = arith.constant dense<0.000000e+00> : vector<256x8xf32>
    %78 = tpu.matmul %75, %77, %cst_56 {dimension_numbers = #tpu.dot_dimension_numbers<[1], [0], [0], [1], [0, 0, 1, 1], [], []>} : vector<256x8xbf16>, vector<8x8xbf16>, vector<256x8xf32> -> vector<256x8xf32>
    %79 = arith.addf %74, %78 : vector<256x8xf32>
    %c0_57 = arith.constant 0 : index
    %c0_58 = arith.constant 0 : index
    %80 = vector.load %arg5[%c0_57, %c0_58] : memref<1x8xf32, #tpu.memory_space<vmem>>, vector<1x8xf32>
    %81 = vector.broadcast %80 : vector<1x8xf32> to vector<256x8xf32>
    %82 = arith.addf %79, %81 : vector<256x8xf32>
    %cst_59 = arith.constant 0.000000e+00 : f32
    %83 = vector.broadcast %cst_59 : f32 to vector<256x8xf32>
    %84 = arith.maximumf %82, %83 : vector<256x8xf32>
    %85 = arith.truncf %84 : vector<256x8xf32> to vector<256x8xbf16>
    %c0_60 = arith.constant 0 : index
    %c0_61 = arith.constant 0 : index
    %86 = vector.load %arg6[%c0_60, %c0_61] : memref<256x8xbf16, #tpu.memory_space<vmem>>, vector<256x8xbf16>
    tpu.vector_store %arg6[%c0_60, %c0_61], %85 {strides = array<i32>} : memref<256x8xbf16, #tpu.memory_space<vmem>>, vector<256x8xbf16>,
    return
  }
  func.func @transform_0(%arg0: i32) -> (i32, i32) {
    %c0_i32 = arith.constant 0 : i32
    %c0_i32_0 = arith.constant 0 : i32
    return %arg0, %c0_i32 : i32, i32
  }
  func.func @transform_1(%arg0: i32) -> (i32, i32, i32) {
    %c0_i32 = arith.constant 0 : i32
    %c0_i32_0 = arith.constant 0 : i32
    %c0_i32_1 = arith.constant 0 : i32
    %c0_i32_2 = arith.constant 0 : i32
    return %c0_i32, %c0_i32_0, %c0_i32_1 : i32, i32, i32
  }
  func.func @transform_2(%arg0: i32) -> (i32, i32) {
    %c0_i32 = arith.constant 0 : i32
    %c0_i32_0 = arith.constant 0 : i32
    %c0_i32_1 = arith.constant 0 : i32
    return %c0_i32, %c0_i32_0 : i32, i32
  }
  func.func @transform_3(%arg0: i32) -> (i32, i32, i32) {
    %c0_i32 = arith.constant 0 : i32
    %c0_i32_0 = arith.constant 0 : i32
    %c0_i32_1 = arith.constant 0 : i32
    %c0_i32_2 = arith.constant 0 : i32
    return %c0_i32, %c0_i32_0, %c0_i32_1 : i32, i32, i32
  }
  func.func @transform_4(%arg0: i32) -> (i32, i32) {
    %c0_i32 = arith.constant 0 : i32
    %c0_i32_0 = arith.constant 0 : i32
    %c0_i32_1 = arith.constant 0 : i32
    return %c0_i32, %c0_i32_0 : i32, i32
  }
  func.func @transform_5(%arg0: i32) -> (i32, i32) {
    %c0_i32 = arith.constant 0 : i32
    %c0_i32_0 = arith.constant 0 : i32
    return %arg0, %c0_i32 : i32, i32
  }
}

module attributes {stable_mosaic.version = 11 : i64} {
  func.func @_head_kernel(%arg0: i32, %arg1: memref<8x512xbf16, #tpu.memory_space<vmem>>, %arg2: memref<8x2xf32, #tpu.memory_space<vmem>>, %arg3: memref<512x32xbf16, #tpu.memory_space<vmem>>, %arg4: memref<1x32xf32, #tpu.memory_space<vmem>>, %arg5: memref<1x32xf32, #tpu.memory_space<vmem>>, %arg6: memref<1x32xf32, #tpu.memory_space<vmem>>, %arg7: memref<2x32x32xbf16, #tpu.memory_space<vmem>>, %arg8: memref<2x2x32xbf16, #tpu.memory_space<vmem>>, %arg9: memref<2x1x32xf32, #tpu.memory_space<vmem>>, %arg10: memref<2x32x32xbf16, #tpu.memory_space<vmem>>, %arg11: memref<2x1x32xf32, #tpu.memory_space<vmem>>, %arg12: memref<2x32x2xbf16, #tpu.memory_space<vmem>>, %arg13: memref<1x2xf32, #tpu.memory_space<vmem>>, %arg14: memref<8x2xf32, #tpu.memory_space<vmem>>) attributes {dimension_semantics = [#tpu.dimension_semantics<parallel>], iteration_bounds = array<i64: 1>, scalar_prefetch = 0 : i64, scratch_operands = 0 : i64, tpu.core_type = #tpu.core_type<tc>, window_params = [{transform_indices = @transform_0, window_bounds = array<i64: 8, 512>}, {transform_indices = @transform_1, window_bounds = array<i64: 8, 2>}, {pipeline_mode = #tpu.pipeline_mode<synchronous>, transform_indices = @transform_2, window_bounds = array<i64: 512, 32>}, {pipeline_mode = #tpu.pipeline_mode<synchronous>, transform_indices = @transform_3, window_bounds = array<i64: 1, 32>}, {pipeline_mode = #tpu.pipeline_mode<synchronous>, transform_indices = @transform_4, window_bounds = array<i64: 1, 32>}, {pipeline_mode = #tpu.pipeline_mode<synchronous>, transform_indices = @transform_5, window_bounds = array<i64: 1, 32>}, {pipeline_mode = #tpu.pipeline_mode<synchronous>, transform_indices = @transform_6, window_bounds = array<i64: 2, 32, 32>}, {pipeline_mode = #tpu.pipeline_mode<synchronous>, transform_indices = @transform_7, window_bounds = array<i64: 2, 2, 32>}, {pipeline_mode = #tpu.pipeline_mode<synchronous>, transform_indices = @transform_8, window_bounds = array<i64: 2, 1, 32>}, {pipeline_mode = #tpu.pipeline_mode<synchronous>, transform_indices = @transform_9, window_bounds = array<i64: 2, 32, 32>}, {pipeline_mode = #tpu.pipeline_mode<synchronous>, transform_indices = @transform_10, window_bounds = array<i64: 2, 1, 32>}, {pipeline_mode = #tpu.pipeline_mode<synchronous>, transform_indices = @transform_11, window_bounds = array<i64: 2, 32, 2>}, {pipeline_mode = #tpu.pipeline_mode<synchronous>, transform_indices = @transform_12, window_bounds = array<i64: 1, 2>}, {transform_indices = @transform_13, window_bounds = array<i64: 8, 2>}]} {
    %c0 = arith.constant 0 : index
    %c0_0 = arith.constant 0 : index
    %0 = vector.load %arg1[%c0, %c0_0] : memref<8x512xbf16, #tpu.memory_space<vmem>>, vector<8x512xbf16>
    %c0_1 = arith.constant 0 : index
    %c0_2 = arith.constant 0 : index
    %1 = vector.load %arg3[%c0_1, %c0_2] : memref<512x32xbf16, #tpu.memory_space<vmem>>, vector<512x32xbf16>
    %cst = arith.constant dense<0.000000e+00> : vector<8x32xf32>
    %2 = tpu.matmul %0, %1, %cst {dimension_numbers = #tpu.dot_dimension_numbers<[1], [0], [0], [1], [0, 0, 1, 1], [], []>} : vector<8x512xbf16>, vector<512x32xbf16>, vector<8x32xf32> -> vector<8x32xf32>
    %c0_3 = arith.constant 0 : index
    %c0_4 = arith.constant 0 : index
    %3 = vector.load %arg4[%c0_3, %c0_4] : memref<1x32xf32, #tpu.memory_space<vmem>>, vector<1x32xf32>
    %4 = vector.broadcast %3 : vector<1x32xf32> to vector<8x32xf32>
    %5 = arith.addf %2, %4 : vector<8x32xf32>
    %cst_5 = arith.constant dense<0.000000e+00> : vector<8xf32>
    %6 = vector.multi_reduction <add>, %5, %cst_5 [1] : vector<8x32xf32> to vector<8xf32>
    %7 = vector.shape_cast %6 : vector<8xf32> to vector<8x1xf32>
    %cst_6 = arith.constant 3.200000e+01 : f32
    %8 = vector.broadcast %cst_6 : f32 to vector<8x1xf32>
    %9 = arith.divf %7, %8 : vector<8x1xf32>
    %10 = vector.broadcast %9 : vector<8x1xf32> to vector<8x32xf32>
    %11 = arith.subf %5, %10 : vector<8x32xf32>
    %12 = arith.mulf %11, %11 : vector<8x32xf32>
    %cst_7 = arith.constant dense<0.000000e+00> : vector<8xf32>
    %13 = vector.multi_reduction <add>, %12, %cst_7 [1] : vector<8x32xf32> to vector<8xf32>
    %14 = vector.shape_cast %13 : vector<8xf32> to vector<8x1xf32>
    %cst_8 = arith.constant 3.200000e+01 : f32
    %15 = vector.broadcast %cst_8 : f32 to vector<8x1xf32>
    %16 = arith.divf %14, %15 : vector<8x1xf32>
    %17 = vector.broadcast %9 : vector<8x1xf32> to vector<8x32xf32>
    %18 = arith.subf %5, %17 : vector<8x32xf32>
    %cst_9 = arith.constant 9.99999974E-6 : f32
    %19 = vector.broadcast %cst_9 : f32 to vector<8x1xf32>
    %20 = arith.addf %16, %19 : vector<8x1xf32>
    %21 = math.rsqrt %20 : vector<8x1xf32>
    %22 = vector.broadcast %21 : vector<8x1xf32> to vector<8x32xf32>
    %23 = arith.mulf %18, %22 : vector<8x32xf32>
    %c0_10 = arith.constant 0 : index
    %c0_11 = arith.constant 0 : index
    %24 = vector.load %arg5[%c0_10, %c0_11] : memref<1x32xf32, #tpu.memory_space<vmem>>, vector<1x32xf32>
    %25 = vector.broadcast %24 : vector<1x32xf32> to vector<8x32xf32>
    %26 = arith.mulf %23, %25 : vector<8x32xf32>
    %c0_12 = arith.constant 0 : index
    %c0_13 = arith.constant 0 : index
    %27 = vector.load %arg6[%c0_12, %c0_13] : memref<1x32xf32, #tpu.memory_space<vmem>>, vector<1x32xf32>
    %28 = vector.broadcast %27 : vector<1x32xf32> to vector<8x32xf32>
    %29 = arith.addf %26, %28 : vector<8x32xf32>
    %30 = arith.truncf %29 : vector<8x32xf32> to vector<8x32xbf16>
    %c0_14 = arith.constant 0 : index
    %c0_15 = arith.constant 0 : index
    %31 = vector.load %arg2[%c0_14, %c0_15] : memref<8x2xf32, #tpu.memory_space<vmem>>, vector<8x2xf32>
    %32 = arith.truncf %31 : vector<8x2xf32> to vector<8x2xbf16>
    %c0_16 = arith.constant 0 : index
    %c0_17 = arith.constant 0 : index
    %33 = vector.load %arg13[%c0_16, %c0_17] : memref<1x2xf32, #tpu.memory_space<vmem>>, vector<1x2xf32>
    %c0_18 = arith.constant 0 : index
    %c0_19 = arith.constant 0 : index
    %c0_20 = arith.constant 0 : index
    %34 = vector.load %arg7[%c0_18, %c0_19, %c0_20] : memref<2x32x32xbf16, #tpu.memory_space<vmem>>, vector<1x32x32xbf16>
    %35 = vector.shape_cast %34 : vector<1x32x32xbf16> to vector<32x32xbf16>
    %cst_21 = arith.constant dense<0.000000e+00> : vector<8x32xf32>
    %36 = tpu.matmul %30, %35, %cst_21 {dimension_numbers = #tpu.dot_dimension_numbers<[1], [0], [0], [1], [0, 0, 1, 1], [], []>} : vector<8x32xbf16>, vector<32x32xbf16>, vector<8x32xf32> -> vector<8x32xf32>
    %c0_22 = arith.constant 0 : index
    %c0_23 = arith.constant 0 : index
    %c0_24 = arith.constant 0 : index
    %37 = vector.load %arg8[%c0_22, %c0_23, %c0_24] : memref<2x2x32xbf16, #tpu.memory_space<vmem>>, vector<1x2x32xbf16>
    %38 = vector.shape_cast %37 : vector<1x2x32xbf16> to vector<2x32xbf16>
    %cst_25 = arith.constant dense<0.000000e+00> : vector<8x32xf32>
    %39 = tpu.matmul %32, %38, %cst_25 {dimension_numbers = #tpu.dot_dimension_numbers<[1], [0], [0], [1], [0, 0, 1, 1], [], []>} : vector<8x2xbf16>, vector<2x32xbf16>, vector<8x32xf32> -> vector<8x32xf32>
    %40 = arith.addf %36, %39 : vector<8x32xf32>
    %c0_26 = arith.constant 0 : index
    %c0_27 = arith.constant 0 : index
    %c0_28 = arith.constant 0 : index
    %41 = vector.load %arg9[%c0_26, %c0_27, %c0_28] : memref<2x1x32xf32, #tpu.memory_space<vmem>>, vector<1x1x32xf32>
    %42 = vector.shape_cast %41 : vector<1x1x32xf32> to vector<1x32xf32>
    %43 = vector.broadcast %42 : vector<1x32xf32> to vector<8x32xf32>
    %44 = arith.addf %40, %43 : vector<8x32xf32>
    %cst_29 = arith.constant 0.000000e+00 : f32
    %45 = vector.broadcast %cst_29 : f32 to vector<8x32xf32>
    %46 = arith.maximumf %44, %45 : vector<8x32xf32>
    %47 = arith.truncf %46 : vector<8x32xf32> to vector<8x32xbf16>
    %c0_30 = arith.constant 0 : index
    %c0_31 = arith.constant 0 : index
    %c0_32 = arith.constant 0 : index
    %48 = vector.load %arg10[%c0_30, %c0_31, %c0_32] : memref<2x32x32xbf16, #tpu.memory_space<vmem>>, vector<1x32x32xbf16>
    %49 = vector.shape_cast %48 : vector<1x32x32xbf16> to vector<32x32xbf16>
    %cst_33 = arith.constant dense<0.000000e+00> : vector<8x32xf32>
    %50 = tpu.matmul %47, %49, %cst_33 {dimension_numbers = #tpu.dot_dimension_numbers<[1], [0], [0], [1], [0, 0, 1, 1], [], []>} : vector<8x32xbf16>, vector<32x32xbf16>, vector<8x32xf32> -> vector<8x32xf32>
    %c0_34 = arith.constant 0 : index
    %c0_35 = arith.constant 0 : index
    %c0_36 = arith.constant 0 : index
    %51 = vector.load %arg11[%c0_34, %c0_35, %c0_36] : memref<2x1x32xf32, #tpu.memory_space<vmem>>, vector<1x1x32xf32>
    %52 = vector.shape_cast %51 : vector<1x1x32xf32> to vector<1x32xf32>
    %53 = vector.broadcast %52 : vector<1x32xf32> to vector<8x32xf32>
    %54 = arith.addf %50, %53 : vector<8x32xf32>
    %cst_37 = arith.constant 0.000000e+00 : f32
    %55 = vector.broadcast %cst_37 : f32 to vector<8x32xf32>
    %56 = arith.maximumf %54, %55 : vector<8x32xf32>
    %57 = arith.truncf %56 : vector<8x32xf32> to vector<8x32xbf16>
    %c0_38 = arith.constant 0 : index
    %c0_39 = arith.constant 0 : index
    %c0_40 = arith.constant 0 : index
    %58 = vector.load %arg12[%c0_38, %c0_39, %c0_40] : memref<2x32x2xbf16, #tpu.memory_space<vmem>>, vector<1x32x2xbf16>
    %59 = vector.shape_cast %58 : vector<1x32x2xbf16> to vector<32x2xbf16>
    %cst_41 = arith.constant dense<0.000000e+00> : vector<8x2xf32>
    %60 = tpu.matmul %57, %59, %cst_41 {dimension_numbers = #tpu.dot_dimension_numbers<[1], [0], [0], [1], [0, 0, 1, 1], [], []>} : vector<8x32xbf16>, vector<32x2xbf16>, vector<8x2xf32> -> vector<8x2xf32>
    %61 = vector.broadcast %33 : vector<1x2xf32> to vector<8x2xf32>
    %62 = arith.addf %61, %60 : vector<8x2xf32>
    %c1 = arith.constant 1 : index
    %c0_42 = arith.constant 0 : index
    %c0_43 = arith.constant 0 : index
    %63 = vector.load %arg7[%c1, %c0_42, %c0_43] : memref<2x32x32xbf16, #tpu.memory_space<vmem>>, vector<1x32x32xbf16>
    %64 = vector.shape_cast %63 : vector<1x32x32xbf16> to vector<32x32xbf16>
    %cst_44 = arith.constant dense<0.000000e+00> : vector<8x32xf32>
    %65 = tpu.matmul %30, %64, %cst_44 {dimension_numbers = #tpu.dot_dimension_numbers<[1], [0], [0], [1], [0, 0, 1, 1], [], []>} : vector<8x32xbf16>, vector<32x32xbf16>, vector<8x32xf32> -> vector<8x32xf32>
    %c1_45 = arith.constant 1 : index
    %c0_46 = arith.constant 0 : index
    %c0_47 = arith.constant 0 : index
    %66 = vector.load %arg8[%c1_45, %c0_46, %c0_47] : memref<2x2x32xbf16, #tpu.memory_space<vmem>>, vector<1x2x32xbf16>
    %67 = vector.shape_cast %66 : vector<1x2x32xbf16> to vector<2x32xbf16>
    %cst_48 = arith.constant dense<0.000000e+00> : vector<8x32xf32>
    %68 = tpu.matmul %32, %67, %cst_48 {dimension_numbers = #tpu.dot_dimension_numbers<[1], [0], [0], [1], [0, 0, 1, 1], [], []>} : vector<8x2xbf16>, vector<2x32xbf16>, vector<8x32xf32> -> vector<8x32xf32>
    %69 = arith.addf %65, %68 : vector<8x32xf32>
    %c1_49 = arith.constant 1 : index
    %c0_50 = arith.constant 0 : index
    %c0_51 = arith.constant 0 : index
    %70 = vector.load %arg9[%c1_49, %c0_50, %c0_51] : memref<2x1x32xf32, #tpu.memory_space<vmem>>, vector<1x1x32xf32>
    %71 = vector.shape_cast %70 : vector<1x1x32xf32> to vector<1x32xf32>
    %72 = vector.broadcast %71 : vector<1x32xf32> to vector<8x32xf32>
    %73 = arith.addf %69, %72 : vector<8x32xf32>
    %cst_52 = arith.constant 0.000000e+00 : f32
    %74 = vector.broadcast %cst_52 : f32 to vector<8x32xf32>
    %75 = arith.maximumf %73, %74 : vector<8x32xf32>
    %76 = arith.truncf %75 : vector<8x32xf32> to vector<8x32xbf16>
    %c1_53 = arith.constant 1 : index
    %c0_54 = arith.constant 0 : index
    %c0_55 = arith.constant 0 : index
    %77 = vector.load %arg10[%c1_53, %c0_54, %c0_55] : memref<2x32x32xbf16, #tpu.memory_space<vmem>>, vector<1x32x32xbf16>
    %78 = vector.shape_cast %77 : vector<1x32x32xbf16> to vector<32x32xbf16>
    %cst_56 = arith.constant dense<0.000000e+00> : vector<8x32xf32>
    %79 = tpu.matmul %76, %78, %cst_56 {dimension_numbers = #tpu.dot_dimension_numbers<[1], [0], [0], [1], [0, 0, 1, 1], [], []>} : vector<8x32xbf16>, vector<32x32xbf16>, vector<8x32xf32> -> vector<8x32xf32>
    %c1_57 = arith.constant 1 : index
    %c0_58 = arith.constant 0 : index
    %c0_59 = arith.constant 0 : index
    %80 = vector.load %arg11[%c1_57, %c0_58, %c0_59] : memref<2x1x32xf32, #tpu.memory_space<vmem>>, vector<1x1x32xf32>
    %81 = vector.shape_cast %80 : vector<1x1x32xf32> to vector<1x32xf32>
    %82 = vector.broadcast %81 : vector<1x32xf32> to vector<8x32xf32>
    %83 = arith.addf %79, %82 : vector<8x32xf32>
    %cst_60 = arith.constant 0.000000e+00 : f32
    %84 = vector.broadcast %cst_60 : f32 to vector<8x32xf32>
    %85 = arith.maximumf %83, %84 : vector<8x32xf32>
    %86 = arith.truncf %85 : vector<8x32xf32> to vector<8x32xbf16>
    %c1_61 = arith.constant 1 : index
    %c0_62 = arith.constant 0 : index
    %c0_63 = arith.constant 0 : index
    %87 = vector.load %arg12[%c1_61, %c0_62, %c0_63] : memref<2x32x2xbf16, #tpu.memory_space<vmem>>, vector<1x32x2xbf16>
    %88 = vector.shape_cast %87 : vector<1x32x2xbf16> to vector<32x2xbf16>
    %cst_64 = arith.constant dense<0.000000e+00> : vector<8x2xf32>
    %89 = tpu.matmul %86, %88, %cst_64 {dimension_numbers = #tpu.dot_dimension_numbers<[1], [0], [0], [1], [0, 0, 1, 1], [], []>} : vector<8x32xbf16>, vector<32x2xbf16>, vector<8x2xf32> -> vector<8x2xf32>
    %90 = arith.addf %62, %89 : vector<8x2xf32>
    %c0_65 = arith.constant 0 : index
    %c0_66 = arith.constant 0 : index
    %91 = vector.load %arg14[%c0_65, %c0_66] : memref<8x2xf32, #tpu.memory_space<vmem>>, vector<8x2xf32>
    tpu.vector_store %arg14[%c0_65, %c0_66], %90 {strides = array<i32>} : memref<8x2xf32, #tpu.memory_space<vmem>>, vector<8x2xf32>,
    return
  }
  func.func @transform_0(%arg0: i32) -> (i32, i32) {
    %c0_i32 = arith.constant 0 : i32
    %c0_i32_0 = arith.constant 0 : i32
    return %arg0, %c0_i32 : i32, i32
  }
  func.func @transform_1(%arg0: i32) -> (i32, i32) {
    %c0_i32 = arith.constant 0 : i32
    %c0_i32_0 = arith.constant 0 : i32
    return %arg0, %c0_i32 : i32, i32
  }
  func.func @transform_2(%arg0: i32) -> (i32, i32) {
    %c0_i32 = arith.constant 0 : i32
    %c0_i32_0 = arith.constant 0 : i32
    %c0_i32_1 = arith.constant 0 : i32
    return %c0_i32, %c0_i32_0 : i32, i32
  }
  func.func @transform_3(%arg0: i32) -> (i32, i32) {
    %c0_i32 = arith.constant 0 : i32
    %c0_i32_0 = arith.constant 0 : i32
    %c0_i32_1 = arith.constant 0 : i32
    return %c0_i32, %c0_i32_0 : i32, i32
  }
  func.func @transform_4(%arg0: i32) -> (i32, i32) {
    %c0_i32 = arith.constant 0 : i32
    %c0_i32_0 = arith.constant 0 : i32
    %c0_i32_1 = arith.constant 0 : i32
    return %c0_i32, %c0_i32_0 : i32, i32
  }
  func.func @transform_5(%arg0: i32) -> (i32, i32) {
    %c0_i32 = arith.constant 0 : i32
    %c0_i32_0 = arith.constant 0 : i32
    %c0_i32_1 = arith.constant 0 : i32
    return %c0_i32, %c0_i32_0 : i32, i32
  }
  func.func @transform_6(%arg0: i32) -> (i32, i32, i32) {
    %c0_i32 = arith.constant 0 : i32
    %c0_i32_0 = arith.constant 0 : i32
    %c0_i32_1 = arith.constant 0 : i32
    %c0_i32_2 = arith.constant 0 : i32
    return %c0_i32, %c0_i32_0, %c0_i32_1 : i32, i32, i32
  }
  func.func @transform_7(%arg0: i32) -> (i32, i32, i32) {
    %c0_i32 = arith.constant 0 : i32
    %c0_i32_0 = arith.constant 0 : i32
    %c0_i32_1 = arith.constant 0 : i32
    %c0_i32_2 = arith.constant 0 : i32
    return %c0_i32, %c0_i32_0, %c0_i32_1 : i32, i32, i32
  }
  func.func @transform_8(%arg0: i32) -> (i32, i32, i32) {
    %c0_i32 = arith.constant 0 : i32
    %c0_i32_0 = arith.constant 0 : i32
    %c0_i32_1 = arith.constant 0 : i32
    %c0_i32_2 = arith.constant 0 : i32
    return %c0_i32, %c0_i32_0, %c0_i32_1 : i32, i32, i32
  }
  func.func @transform_9(%arg0: i32) -> (i32, i32, i32) {
    %c0_i32 = arith.constant 0 : i32
    %c0_i32_0 = arith.constant 0 : i32
    %c0_i32_1 = arith.constant 0 : i32
    %c0_i32_2 = arith.constant 0 : i32
    return %c0_i32, %c0_i32_0, %c0_i32_1 : i32, i32, i32
  }
  func.func @transform_10(%arg0: i32) -> (i32, i32, i32) {
    %c0_i32 = arith.constant 0 : i32
    %c0_i32_0 = arith.constant 0 : i32
    %c0_i32_1 = arith.constant 0 : i32
    %c0_i32_2 = arith.constant 0 : i32
    return %c0_i32, %c0_i32_0, %c0_i32_1 : i32, i32, i32
  }
  func.func @transform_11(%arg0: i32) -> (i32, i32, i32) {
    %c0_i32 = arith.constant 0 : i32
    %c0_i32_0 = arith.constant 0 : i32
    %c0_i32_1 = arith.constant 0 : i32
    %c0_i32_2 = arith.constant 0 : i32
    return %c0_i32, %c0_i32_0, %c0_i32_1 : i32, i32, i32
  }
  func.func @transform_12(%arg0: i32) -> (i32, i32) {
    %c0_i32 = arith.constant 0 : i32
    %c0_i32_0 = arith.constant 0 : i32
    %c0_i32_1 = arith.constant 0 : i32
    return %c0_i32, %c0_i32_0 : i32, i32
  }
  func.func @transform_13(%arg0: i32) -> (i32, i32) {
    %c0_i32 = arith.constant 0 : i32
    %c0_i32_0 = arith.constant 0 : i32
    return %arg0, %c0_i32 : i32, i32
  }
}

</mosaic_0001>

<bundles_post_ra>
// kernel: critic_forward.3
= control target key start
LH: loop header
LB: loop body
LE: loop exit
PB: predicated region body
PF: predicated region fallthrough
CT: control target
= control target key end

     0   :  { %vm404_vm0 = vcmask 261120   ;;  %vm448_vm1 = vcmask 1040384   ;;  %v1197_v58 = vmov 0.0   ;;  %vm444_vm2 = vcmask 15360   ;;  %s1486_s2 = inlined_call_operand.vmem [shape: bf16[512,32], index: 2, kind: input, shape index: {}]   ;;  %s1487_s0 = inlined_call_operand.vmem [shape: bf16[8,512], index: 0, kind: input, shape index: {}]   ;;  %s1488_s3 = inlined_call_operand.vmem [shape: f32[1,32], index: 3, kind: input, shape index: {}]   ;;  %s1489_s7 = inlined_call_operand.vmem [shape: bf16[2,2,32], index: 7, kind: input, shape index: {}]   ;;  %s1490_s6 = inlined_call_operand.vmem [shape: bf16[2,32,32], index: 6, kind: input, shape index: {}]   ;;  %s1491_s1 = inlined_call_operand.vmem [shape: f32[8,2], index: 1, kind: input, shape index: {}]   ;;  %s1492_s4 = inlined_call_operand.vmem [shape: f32[1,32], index: 4, kind: input, shape index: {}]   ;;  %s1493_s5 = inlined_call_operand.vmem [shape: f32[1,32], index: 5, kind: input, shape index: {}]   ;;  %s1494_s9 = inlined_call_operand.vmem [shape: bf16[2,32,32], index: 9, kind: input, shape index: {}]   ;;  %s1495_s11 = inlined_call_operand.vmem [shape: bf16[2,32,2], index: 11, kind: input, shape index: {}]   ;;  %s1496_s8 = inlined_call_operand.vmem [shape: f32[2,1,32], index: 8, kind: input, shape index: {}]   ;;  %s1497_s10 = inlined_call_operand.vmem [shape: f32[2,1,32], index: 10, kind: input, shape index: {}]   ;;  %s1498_s12 = inlined_call_operand.vmem [shape: f32[1,2], index: 12, kind: input, shape index: {}]   ;;  %s1499_s13 = inlined_call_operand.vmem [shape: f32[8,2], index: 13, kind: output, shape index: {}]  }
   0x1   :  { %v1147_v0 = vld [vmem:[%s1486_s2 + $0x78] sm:$0xff]   ;;  %v1151_v4 = vld [vmem:[%s1486_s2 + $0x70] sm:$0xff]   ;;  %v1155_v8 = vld [vmem:[%s1486_s2 + $0x68] sm:$0xff]   ;;  %vm1198_vm3 = vmmov 0  }
   0x2   :  { %v1148_v1 = vld [vmem:[%s1486_s2 + $0xf8] sm:$0xff]   ;;  %1019 = vmatprep.subr.bf16.mxu0 %v1147_v0  ;;  %v1152_v5 = vld [vmem:[%s1486_s2 + $0xf0] sm:$0xff]   ;;  %v1156_v9 = vld [vmem:[%s1486_s2 + $0xe8] sm:$0xff]  }
   0x3   :  { %v1149_v2 = vld [vmem:[%s1486_s2 + $0x38] sm:$0xff]   ;;  %1041 = vmatprep.subr.bf16.mxu1 %v1148_v1  ;;  %v1153_v6 = vld [vmem:[%s1486_s2 + $0x30] sm:$0xff]   ;;  %v1157_v10 = vld [vmem:[%s1486_s2 + $0x28] sm:$0xff]  }
   0x4   :  { %v1150_v3 = vld [vmem:[%s1486_s2 + $0xb8] sm:$0xff]   ;;  %1020 = vmatpush3.bf16.msra.mxu0 %v1149_v2  ;;  %v1154_v7 = vld [vmem:[%s1486_s2 + $0xb0] sm:$0xff]   ;;  %v1158_v11 = vld [vmem:[%s1486_s2 + $0xa8] sm:$0xff]  }
   0x5   :  { %1042 = vmatpush3.bf16.msra.mxu1 %v1150_v3  ;;  %1021 = vmatprep.subr.bf16.mxu0 %v1151_v4  ;;  %v1159_v12 = vld [vmem:[%s1486_s2 + $0x60] sm:$0xff]   ;;  %v1163_v16 = vld [vmem:[%s1486_s2 + $0x58] sm:$0xff]   ;;  %v1167_v20 = vld [vmem:[%s1486_s2 + $0x50] sm:$0xff]  }
   0x6   :  { %1043 = vmatprep.subr.bf16.mxu1 %v1152_v5  ;;  %v1160_v13 = vld [vmem:[%s1486_s2 + $0xe0] sm:$0xff]   ;;  %v1164_v17 = vld [vmem:[%s1486_s2 + $0xd8] sm:$0xff]   ;;  %v1168_v21 = vld [vmem:[%s1486_s2 + $0xd0] sm:$0xff]  }
   0x7   :  { %v1161_v14 = vld [vmem:[%s1486_s2 + $0x20] sm:$0xff]   ;;  %v1165_v18 = vld [vmem:[%s1486_s2 + $0x18] sm:$0xff]   ;;  %v1169_v22 = vld [vmem:[%s1486_s2 + $0x10] sm:$0xff]  }
   0x8   :  { %1022 = vmatpush3.bf16.msra.mxu0 %v1153_v6  ;;  %v1162_v15 = vld [vmem:[%s1486_s2 + $0xa0] sm:$0xff]   ;;  %v1166_v19 = vld [vmem:[%s1486_s2 + $0x98] sm:$0xff]   ;;  %v1170_v23 = vld [vmem:[%s1486_s2 + $0x90] sm:$0xff]  }
   0x9   :  { %1044 = vmatpush3.bf16.msra.mxu1 %v1154_v7  ;;  %1023 = vmatprep.subr.bf16.mxu0 %v1155_v8  ;;  %v1171_v24 = vld [vmem:[%s1486_s2 + $0x48] sm:$0xff]   ;;  %v1175_v28 = vld [vmem:[%s1486_s2 + $0x40] sm:$0xff]  }
   0xa   :  { %1045 = vmatprep.subr.bf16.mxu1 %v1156_v9  ;;  %v1172_v25 = vld [vmem:[%s1486_s2 + $0xc8] sm:$0xff]   ;;  %v1176_v29 = vld [vmem:[%s1486_s2 + $0xc0] sm:$0xff]  }
   0xb   :  { %v1173_v26 = vld [vmem:[%s1486_s2 + $0x8] sm:$0xff]   ;;  %v1177_v30 = vld [vmem:[%s1486_s2] sm:$0xff]  }
   0xc   :  { %1024 = vmatpush3.bf16.msra.mxu0 %v1157_v10  ;;  %v1174_v27 = vld [vmem:[%s1486_s2 + $0x88] sm:$0xff]   ;;  %v1178_v31 = vld [vmem:[%s1486_s2 + $0x80] sm:$0xff]  }
   0xd   :  { %1046 = vmatpush3.bf16.msra.mxu1 %v1158_v11  ;;  %1025 = vmatprep.subr.bf16.mxu0 %v1159_v12  ;;  %v45_v32 = vld [vmem:[%s1487_s0] sm:$0xff]  ;;  %v46_v33 = vld [vmem:[%s1487_s0 + $0x8] sm:$0xff] }
   0xe   :  { %1047 = vmatprep.subr.bf16.mxu1 %v1160_v13  ;;  %v941_v34 = vcombine.low %v45_v32, %v45_v32  ;;  %v942_v35 = vcombine.high %v45_v32, %v45_v32  ;;  %v943_v36 = vcombine.low %v46_v33, %v46_v33  ;;  %v944_v37 = vcombine.high %v46_v33, %v46_v33  ;;  %v940_v40 = vld [vmem:[%s1488_s3] ss:$0 sm:$0xff]  ;;  %v1183_v60 = vld [vmem:[%s1490_s6 + $0x8] sm:$0xff]  }
   0xf   :  { %v443_v57 = vld [vmem:[%s1489_s7] sm:$0x1]  ;;  %v1185_v13 = vld [vmem:[%s1494_s9 + $0x8] sm:$0xff]  }
  0x10   :  { %1026 = vmatpush3.bf16.msra.mxu0 %v1161_v14  ;;  %356 = vmatprep.mubr.bf16.mxu0 %v942_v35  ;;  %v450_v59 = vsel %vm448_vm1, %v443_v57, 0  ;;  %v436_v61 = vld [vmem:[%s1491_s1] sm:$0xff]  ;;  %v1189_v35 = vld [vmem:[%s1490_s6 + $0x18] sm:$0xff]  }
  0x11   :  { %1048 = vmatpush3.bf16.msra.mxu1 %v1162_v15  ;;  %1027 = vmatprep.subr.bf16.mxu0 %v1163_v16  ;;  %v437_v62 = vpack.c.bf16 %v436_v61, %v436_v61  ;;  %v1184_v63 = vld [vmem:[%s1490_s6] sm:$0xff]   ;;  %v1187_v16 = vld [vmem:[%s1495_s11 + $0x8] sm:$0xff]  }
  0x12   :  { %1049 = vmatprep.subr.bf16.mxu1 %v1164_v17  ;;  %396 = vmatprep.mubr.bf16.mxu1 %v944_v37  ;;  %v977_v4 = vld [vmem:[%s1492_s4] ss:$0 sm:$0xff] }
  0x13   :  { %v978_v6 = vld [vmem:[%s1493_s5] ss:$0 sm:$0xff] }
  0x14   :  { %1028 = vmatpush3.bf16.msra.mxu0 %v1165_v18  ;;  %v1186_v15 = vld [vmem:[%s1494_s9] sm:$0xff]  }
  0x15   :  { %1050 = vmatpush3.bf16.msra.mxu1 %v1166_v19  ;;  %1029 = vmatprep.subr.bf16.mxu0 %v1167_v20  ;;  %v983_v18 = vld [vmem:[%s1496_s8] ss:$0 sm:$0xff] }
  0x16   :  { %1051 = vmatprep.subr.bf16.mxu1 %v1168_v21 }
  0x18   :  { %1030 = vmatpush3.bf16.msra.mxu0 %v1169_v22 }
  0x19   :  { %1052 = vmatpush3.bf16.msra.mxu1 %v1170_v23  ;;  %1031 = vmatprep.subr.bf16.mxu0 %v1171_v24 }
  0x1a   :  { %1053 = vmatprep.subr.bf16.mxu1 %v1172_v25 }
  0x1c   :  { %1032 = vmatpush3.bf16.msra.mxu0 %v1173_v26  ;;  %v1188_v26 = vld [vmem:[%s1495_s11] sm:$0xff]  }
  0x1d   :  { %1054 = vmatpush3.bf16.msra.mxu1 %v1174_v27  ;;  %1033 = vmatprep.subr.bf16.mxu0 %v1175_v28  ;;  %v996_v27 = vld [vmem:[%s1489_s7 + $0x1] sm:$0x1] }
  0x1e   :  { %1055 = vmatprep.subr.bf16.mxu1 %v1176_v29  ;;  %v699_v28 = vsel %vm448_vm1, %v996_v27, 0  ;;  %v984_v29 = vld [vmem:[%s1497_s10] ss:$0 sm:$0xff] }
  0x20   :  { %1034 = vmatpush3.bf16.msra.mxu0 %v1177_v30 }
  0x21   :  { %1056 = vmatpush3.bf16.msra.mxu1 %v1178_v31  ;;  %1085 = vmatprep.subr.bf16.mxu0 %v1197_v58 }
  0x22   :  { %1091 = vmatprep.subr.bf16.mxu1 %v1197_v58 }
  0x23   :  { %357 = vmatmul.mubr.bf16.vlgmr.msra.gmra.mxu0 %v941_v34 }
  0x24   :  { %397 = vmatmul.mubr.bf16.vlgmr.msra.gmra.mxu1 %v943_v36  ;;  %1086 = vmatpush3.bf16.msra.mxu0 %v450_v59 }
  0x25   :  { %1099 = vmatprep.subr.bf16.mxu0 %v1197_v58  ;;  %1092 = vmatpush3.bf16.msra.mxu1 %v1183_v60  ;;  %v1008_v60 = vld [vmem:[%s1497_s10 + $0x1] ss:$0 sm:$0xff] }
  0x26   :  { %1087 = vmatprep.mubr.msk.bf16.mxu0 %vm1198_vm3, %v1197_v58  ;;  %1093 = vmatprep.subr.bf16.mxu1 %v1197_v58 }
  0x27   :  { %1095 = vmatprep.mubr.msk.bf16.mxu1 %vm1198_vm3, %v1197_v58 }
  0x29   :  { %1094 = vmatpush3.bf16.msra.mxu1 %v1184_v63 }
  0x2a   :  { %1107 = vmatprep.subr.bf16.mxu1 %v1197_v58 }
  0x2b   :  { %1088 = vmatmul.mubr.msk.bf16.vlgmr.msra.gmra.mxu0 %vm444_vm2, %v437_v62 }
  0x2c   :  { %1103 = vmatprep.mubr.msk.bf16.mxu0 %vm1198_vm3, %v1197_v58  ;;  %1100 = vmatpush3.bf16.msra.mxu0 %v1185_v13 }
  0x2d   :  { %1101 = vmatprep.subr.bf16.mxu0 %v1197_v58 }
  0x30   :  { %1102 = vmatpush3.bf16.msra.mxu0 %v1186_v15 }
  0x31   :  { %1115 = vmatprep.subr.bf16.mxu0 %v1197_v58 }
  0xe3   :  { %v1035_v38 = vpop.f32.mrf.mxu0 }
  0xe4   :  { %v1057_v39 = vpop.f32.mrf.mxu1 }
  0xe5   :  { %v1036_v41 = vpop.f32.mrf.mxu0 }
  0xe6   :  { %v1058_v42 = vpop.f32.mrf.mxu1  ;;  %v1037_v43 = vadd.f32 %v1036_v41, %v1035_v38  ;;  %v1190_v38 = vld [vmem:[%s1490_s6 + $0x10] sm:$0xff]  }
  0xe7   :  { %v1038_v44 = vpop.f32.mrf.mxu0  ;;  %v1059_v47 = vadd.f32 %v1058_v42, %v1057_v39 }
  0xe8   :  { %v1060_v45 = vpop.f32.mrf.mxu1  ;;  %v359_v46 = vadd.f32 %v1037_v43, %v940_v40  ;;  %v1191_v43 = vld [vmem:[%s1494_s9 + $0x18] sm:$0xff]   ;;  %v1192_v44 = vld [vmem:[%s1494_s9 + $0x10] sm:$0xff]  }
  0xe9   :  { %v1039_v48 = vpop.f32.mrf.mxu0  ;;  %v1193_v45 = vld [vmem:[%s1495_s11 + $0x18] sm:$0xff]  }
  0xea   :  { %v1061_v49 = vpop.f32.mrf.mxu1  ;;  %v399_v50 = vadd.f32 %v1059_v47, %v359_v46 }
  0xeb   :  { %v486_v10 = vpop.f32.mrf.mxu0 }
  0xec   :  { %v405_v51 = vsel %vm404_vm0, %v399_v50, 0.0 }
  0xed   :  { %406 = vadd.xlane.f32.xlu0 %v405_v51  ;;  %v1089_v11 = vpop.f32.mrf.mxu0  ;;  %v1002_v51 = vld [vmem:[%s1496_s8 + $0x1] ss:$0 sm:$0xff] }
  0xef   :  { %v489_v12 = vpop.f32.mrf.mxu0 }
  0xf1   :  { %v1090_v14 = vpop.f32.mrf.mxu0 }
 0x176   :  { %v407_v52 = vpop.xlane.xlu0 %406 }
 0x177   :  { %v409_v53 = vmul.f32 0.03125, %v407_v52 }
 0x179   :  { %v410_v54 = vsub.f32 %v399_v50, %v409_v53 }
 0x17b   :  { %v411_v55 = vmul.f32 %v410_v54, %v410_v54 }
 0x17d   :  { %v412_v56 = vsel %vm404_vm0, %v411_v55, 0.0 }
 0x17e   :  { %413 = vadd.xlane.f32.xlu0 %v412_v56 }
 0x207   :  { %v414_v0 = vpop.xlane.xlu0 %413 }
 0x208   :  { %v415_v1 = vmul.f32 0.03125, %v414_v0 }
 0x20a   :  { %v416_v2 = vadd.f32 1e-05, %v415_v1 }
 0x20c   :  { %1195 = vrsqrt.f32 %v416_v2 }
 0x219   :  { %v1196_v3 = vpop.eup %1195 }
 0x21a   :  { %v418_v5 = vmul.f32 %v1196_v3, %v410_v54 }
 0x21c   :  { %v426_v7 = vmul.f32 %v977_v4, %v418_v5  ;;  %v991_v4 = vld [vmem:[%s1498_s12] ss:$0 sm:$0xff] }
 0x21e   :  { %v434_v8 = vadd.f32 %v978_v6, %v426_v7 }
 0x220   :  { %v435_v9 = vpack.c.bf16 %v434_v8, %v434_v8 }
 0x222   :  { %1096 = vmatmul.mubr.msk.bf16.vlgmr.msra.gmra.mxu1 %vm404_vm0, %v435_v9 }
 0x223   :  { %1111 = vmatprep.mubr.msk.bf16.mxu1 %vm1198_vm3, %v1197_v58  ;;  %1108 = vmatpush3.bf16.msra.mxu1 %v1187_v16 }
 0x224   :  { %1109 = vmatprep.subr.bf16.mxu1 %v1197_v58 }
 0x227   :  { %1110 = vmatpush3.bf16.msra.mxu1 %v1188_v26 }
 0x228   :  { %1121 = vmatprep.subr.bf16.mxu1 %v1197_v58 }
 0x2e2   :  { %v541_v17 = vpop.f32.mrf.mxu1 }
 0x2e3   :  { %v542_v19 = vadd.f32 %v541_v17, %v486_v10 }
 0x2e4   :  { %v1097_v20 = vpop.f32.mrf.mxu1 }
 0x2e5   :  { %v554_v21 = vadd.f32 %v983_v18, %v542_v19 }
 0x2e6   :  { %v544_v22 = vpop.f32.mrf.mxu1 }
 0x2e7   :  { %v555_v23 = vmax.f32 %v554_v21, 0.0 }
 0x2e8   :  { %v1098_v24 = vpop.f32.mrf.mxu1 }
 0x2e9   :  { %v556_v25 = vpack.c.bf16 %v555_v23, %v555_v23 }
 0x2eb   :  { %1104 = vmatmul.mubr.msk.bf16.vlgmr.msra.gmra.mxu0 %vm404_vm0, %v556_v25 }
 0x2ec   :  { %1117 = vmatprep.mubr.msk.bf16.mxu0 %vm1198_vm3, %v1197_v58  ;;  %1116 = vmatpush3.bf16.msra.mxu0 %v699_v28 }
 0x2ed   :  { %1129 = vmatprep.subr.bf16.mxu0 %v1197_v58 }
 0x2f3   :  { %1118 = vmatmul.mubr.msk.bf16.vlgmr.msra.gmra.mxu0 %vm444_vm2, %v437_v62 }
 0x2f4   :  { %1133 = vmatprep.mubr.msk.bf16.mxu0 %vm1198_vm3, %v1197_v58  ;;  %1130 = vmatpush3.bf16.msra.mxu0 %v1191_v43 }
 0x2f5   :  { %1131 = vmatprep.subr.bf16.mxu0 %v1197_v58 }
 0x2f8   :  { %1132 = vmatpush3.bf16.msra.mxu0 %v1192_v44 }
 0x3ab   :  { %v617_v30 = vpop.f32.mrf.mxu0 }
 0x3ac   :  { %v618_v31 = vadd.f32 %v984_v29, %v617_v30 }
 0x3ad   :  { %v1105_v32 = vpop.f32.mrf.mxu0 }
 0x3ae   :  { %v623_v33 = vmax.f32 %v618_v31, 0.0 }
 0x3af   :  { %v620_v34 = vpop.f32.mrf.mxu0 }
 0x3b0   :  { %v624_v36 = vpack.c.bf16 %v623_v33, %v623_v33 }
 0x3b1   :  { %v1106_v37 = vpop.f32.mrf.mxu0 }
 0x3b2   :  { %1112 = vmatmul.mubr.msk.bf16.vlgmr.msra.gmra.mxu1 %vm404_vm0, %v624_v36 }
 0x3b3   :  { %1122 = vmatpush3.bf16.msra.mxu1 %v1189_v35  ;;  %1125 = vmatprep.mubr.msk.bf16.mxu1 %vm1198_vm3, %v1197_v58  ;;  %v735_v39 = vpop.f32.mrf.mxu0 }
 0x3b4   :  { %1123 = vmatprep.subr.bf16.mxu1 %v1197_v58 }
 0x3b5   :  { %v1119_v40 = vpop.f32.mrf.mxu0 }
 0x3b7   :  { %1124 = vmatpush3.bf16.msra.mxu1 %v1190_v38  ;;  %v738_v41 = vpop.f32.mrf.mxu0 }
 0x3b8   :  { %1137 = vmatprep.subr.bf16.mxu1 %v1197_v58 }
 0x3b9   :  { %v1120_v42 = vpop.f32.mrf.mxu0 }
 0x3ba   :  { %1126 = vmatmul.mubr.msk.bf16.vlgmr.msra.gmra.mxu1 %vm404_vm0, %v435_v9 }
 0x3bb   :  { %1141 = vmatprep.mubr.msk.bf16.mxu1 %vm1198_vm3, %v1197_v58  ;;  %1138 = vmatpush3.bf16.msra.mxu1 %v1193_v45 }
 0x3bc   :  { %1139 = vmatprep.subr.bf16.mxu1 %v1197_v58  ;;  %v1194_v58 = vld [vmem:[%s1495_s11 + $0x10] sm:$0xff]  }
 0x3bf   :  { %1140 = vmatpush3.bf16.msra.mxu1 %v1194_v58 }
 0x472   :  { %v678_v46 = vpop.f32.mrf.mxu1 }
 0x473   :  { %v690_v5 = vadd.f32 %v991_v4, %v678_v46 }
 0x474   :  { %v1113_v47 = vpop.f32.mrf.mxu1 }
 0x476   :  { %v681_v48 = vpop.f32.mrf.mxu1 }
 0x478   :  { %v1114_v49 = vpop.f32.mrf.mxu1 }
 0x47a   :  { %v787_v50 = vpop.f32.mrf.mxu1 }
 0x47b   :  { %v788_v52 = vadd.f32 %v787_v50, %v735_v39 }
 0x47c   :  { %v1127_v53 = vpop.f32.mrf.mxu1 }
 0x47d   :  { %v801_v54 = vadd.f32 %v1002_v51, %v788_v52 }
 0x47e   :  { %v790_v55 = vpop.f32.mrf.mxu1 }
 0x47f   :  { %v802_v56 = vmax.f32 %v801_v54, 0.0 }
 0x480   :  { %v1128_v57 = vpop.f32.mrf.mxu1 }
 0x481   :  { %v803_v59 = vpack.c.bf16 %v802_v56, %v802_v56 }
 0x483   :  { %1134 = vmatmul.mubr.msk.bf16.vlgmr.msra.gmra.mxu0 %vm404_vm0, %v803_v59 }
 0x543   :  { %v866_v61 = vpop.f32.mrf.mxu0 }
 0x544   :  { %v867_v62 = vadd.f32 %v1008_v60, %v866_v61 }
 0x545   :  { %v1135_v63 = vpop.f32.mrf.mxu0 }
 0x546   :  { %v872_v0 = vmax.f32 %v867_v62, 0.0 }
 0x547   :  { %v869_v1 = vpop.f32.mrf.mxu0 }
 0x548   :  { %v873_v2 = vpack.c.bf16 %v872_v0, %v872_v0 }
 0x549   :  { %v1136_v3 = vpop.f32.mrf.mxu0 }
 0x54a   :  { %1142 = vmatmul.mubr.msk.bf16.vlgmr.msra.gmra.mxu1 %vm404_vm0, %v873_v2 }
 0x60a   :  { %v928_v6 = vpop.f32.mrf.mxu1 }
 0x60b   :  { %v934_v7 = vadd.f32 %v928_v6, %v690_v5 }
 0x60c   :  { %v1143_v8 = vpop.f32.mrf.mxu1 }
 0x60d   :  { %935 = vst.msk [vmem:[%s1499_s13] sm:$0xff] %vm444_vm2, %v934_v7 }
 0x60e   :  { %v931_v9 = vpop.f32.mrf.mxu1 }
 0x610   :  { %v1144_v10 = vpop.f32.mrf.mxu1 }

// kernel: critic_forward.2
= control target key start
LH: loop header
LB: loop body
LE: loop exit
PB: predicated region body
PF: predicated region fallthrough
CT: control target
= control target key end

     0   :  { %s5731_s18 = smov 0   ;;  %s8027_s0 = inlined_call_operand.vmem [shape: bf16[512,16], index: 0, kind: input, shape index: {}]   ;;  %s8028_s1 = inlined_call_operand.vmem [shape: bf16[4,16,8], index: 1, kind: input, shape index: {}]   ;;  %s8029_s2 = inlined_call_operand.vmem [shape: f32[1,8], index: 2, kind: input, shape index: {}]   ;;  %s8030_s3 = inlined_call_operand.vmem [shape: bf16[9,8,8], index: 3, kind: input, shape index: {}]   ;;  %s8031_s4 = inlined_call_operand.vmem [shape: f32[1,8], index: 4, kind: input, shape index: {}]   ;;  %s8032_s5 = inlined_call_operand.vmem [shape: bf16[512,8], index: 5, kind: output, shape index: {}]  }
   0x1 LB: > { %s4520_s19 = sadd.s32 4294967295, %s5698_s18   ;;  %p4524_p0 = scmp.ge.s32.totalorder %s5698_s18, 1  ;;  %s5698_s18 = sphi %s5731_s18, %s15_s18  }
   0x2   : > { %p188_p1 = scmp.lt.s32.totalorder %s5698_s18, 3 }
   0x4   : > { %p189_p2 = pnand %p4524_p0, %p188_p1 }
   0x6   : > { %192 = sbr.rel (%p189_p2) target bundleno = 876 (0x36c), region = 40 }
   0xb   : > { %v5636_v0 = vld [vmem:[%s8028_s1 + $0x8] sm:$0xff]   ;;  %s4525_s22 = sshll.u32 %s4520_s19, 5  ;;  %v5745_v1 = vld [vmem:[%s8028_s1] sm:$0xff]   ;;  %v5752_v2 = vld [vmem:[%s8028_s1 + $0x10] sm:$0xff]   ;;  %vm344_vm0 = vsmask.f32 7424 }
   0xc   : > { %p217_p3 = scmp.lt.s32.totalorder %s4525_s22, 63  ;;  %5616 = vmatprep.subr.bf16.mxu1 %v5636_v0  ;;  %5174 = vmatprep.subr.bf16.mxu0 %v5636_v0  ;;  %vm478_vm1 = vcmask 130048   ;;  %v5844_v42 = vld [vmem:[%s8028_s1 + $0x18] sm:$0xff]   ;;  %vm2057_vm2 = vcmask 1043456   ;;  %vm1595_vm3 = vcmask 60419   ;;  %vm1601_vm6 = vcmask 60416  }
   0xd   : > { %5617 = vmatpush3.bf16.msra.mxu1 %v5636_v0  ;;  %5175 = vmatpush3.bf16.msra.mxu0 %v5636_v0  ;;  %vm1596_vm4 = vsmask.f32 7950  ;;  %vm2008_vm7 = vcmask 64512   ;;  %vm1750_vm8 = vsmask.f32 3328  ;;  %vm2420_vm10 = vcmask 1046528  }
   0xe   : > { %s8299_s22 = smov (!%p217_p3, %s4525_s22), 63  ;;  %5208 = vmatprep.subr.bf16.mxu1 %v5745_v1  ;;  %5242 = vmatprep.subr.bf16.mxu0 %v5752_v2  ;;  %vm1597_vm5 = vmand %vm1595_vm3, %vm1596_vm4  ;;  %vm1605_vm11 = vcmask 57344  }
   0xf   : > { %s4526_s27 = sshll.u32 %s8299_s22, 2  ;;  %vm6754_vm9 = vmand %vm1601_vm6, %vm1750_vm8 }
  0x10   : > { %s5762_s30 = scalar_lea.vmem %s8027_s0, %s4526_s27  ;;  %s7817_s10 = scalar_lea.vmem %s8032_s5, %s4526_s27 }
  0x11   : > { %v5765_v3 = vld [vmem:[%s5762_s30 + $0x40] sm:$0xf]  ;;  %v246_v4 = vld [vmem:[%s5762_s30 + $0x44] sm:$0xf]  ;;  %v247_v5 = vld [vmem:[%s5762_s30 + $0x48] sm:$0xf] }
  0x12   : > { %v248_v6 = vld [vmem:[%s5762_s30 + $0x4c] sm:$0xf]  ;;  %v5771_v7 = vcombine.low %v5765_v3, %v246_v4  ;;  %v249_v8 = vld [vmem:[%s5762_s30 + $0x50] sm:$0xf]  ;;  %v5775_v9 = vld [vmem:[%s5762_s30 + $0x54] sm:$0xf]  ;;  %v5777_v10 = vcombine.low %v246_v4, %v247_v5 }
  0x13   : > { %v5779_v11 = vcombine.low %v247_v5, %v248_v6  ;;  %v5782_v12 = vcombine.low %v249_v8, %v5775_v9  ;;  %v229_v13 = vld [vmem:[%s5762_s30] sm:$0xf]  ;;  %v5786_v14 = vld [vmem:[%s5762_s30 + $0x4] sm:$0xf]  ;;  %v5789_v15 = vld [vmem:[%s5762_s30 + $0x8] sm:$0xf]  ;;  %v5791_v16 = vcombine.low %v248_v6, %v249_v8 }
  0x14   : > { %v409_v17 = vshll.u32 %v5771_v7, 16  ;;  %v413_v18 = vshrl.u32 %v5771_v7, 16  ;;  %v5796_v19 = vld [vmem:[%s5762_s30 + $0xc] sm:$0xf]  ;;  %v5799_v20 = vld [vmem:[%s5762_s30 + $0x10] sm:$0xf]  ;;  %v5802_v21 = vcombine.low %v229_v13, %v5786_v14 }
  0x15   : > { %v417_v22 = vshll.u32 %v5779_v11, 16  ;;  %v421_v23 = vshrl.u32 %v5779_v11, 16  ;;  %v425_v24 = vshll.u32 %v5782_v12, 16  ;;  %v5809_v25 = vcombine.low %v5789_v15, %v5796_v19  ;;  %v5812_v26 = vld [vmem:[%s5762_s30 + $0x14] sm:$0xf] }
  0x16   : > { %v5814_v27 = vrot.slane %v409_v17, 1  ;;  %v346_v28 = vshrl.u32 %v5802_v21, 16  ;;  %v348_v29 = vshll.u32 %v5802_v21, 16  ;;  %v5819_v30 = vld [vmem:[%s5762_s30 + $0x58] sm:$0xf]  ;;  %v5829_v38 = vcombine.low %v5799_v20, %v5812_v26 }
  0x17   : > { %v419_v31 = vrot.slane %v417_v22, 1  ;;  %v427_v32 = vrot.slane %v425_v24, 1  ;;  %v353_v33 = vshll.u32 %v5809_v25, 16  ;;  %v357_v34 = vshrl.u32 %v5809_v25, 16  ;;  %v5824_v35 = vld [vmem:[%s5762_s30 + $0x5c] sm:$0xf] }
  0x18   : > { %v415_v36 = vor.u32 %v413_v18, %v5814_v27  ;;  %v350_v37 = vrot.slane %v348_v29, 1  ;;  %v5833_v39 = vcombine.low %v5819_v30, %v5824_v35  ;;  %v5836_v40 = vld [vmem:[%s5762_s30 + $0x60] sm:$0xf]  ;;  %v5839_v41 = vld [vmem:[%s5762_s30 + $0x64] sm:$0xf]  ;;  %v429_v45 = vshrl.u32 %v5782_v12, 16 }
  0x19   : > { %v423_v43 = vor.u32 %v421_v23, %v419_v31  ;;  %v355_v44 = vrot.slane %v353_v33, 1  ;;  %v5849_v46 = vcombine.low %v5836_v40, %v5839_v41  ;;  %v5852_v47 = vld [vmem:[%s5762_s30 + $0x18] sm:$0xf]  ;;  %v5855_v48 = vld [vmem:[%s5762_s30 + $0x1c] sm:$0xf]  ;;  %v361_v51 = vshll.u32 %v5829_v38, 16 }
  0x1a   : > { %v420_v49 = vsel %vm344_vm0, %v415_v36, %v419_v31  ;;  %v351_v50 = vor.u32 %v350_v37, %v346_v28  ;;  %v433_v52 = vshll.u32 %v5833_v39, 16  ;;  %v5861_v53 = vld [vmem:[%s5762_s30 + $0x20] sm:$0xf]  ;;  %v5864_v54 = vld [vmem:[%s5762_s30 + $0x24] sm:$0xf]  ;;  %v431_v57 = vor.u32 %v429_v45, %v427_v32 }
  0x1b   : > { %5192 = vmatprep.mubr.msk.bf16.mxu1 %vm478_vm1, %v420_v49  ;;  %v428_v55 = vsel %vm344_vm0, %v423_v43, %v427_v32  ;;  %v359_v56 = vor.u32 %v357_v34, %v355_v44  ;;  %v437_v58 = vshrl.u32 %v5833_v39, 16  ;;  %v5870_v59 = vld [vmem:[%s5762_s30 + $0x68] sm:$0xf]  ;;  %v5873_v60 = vld [vmem:[%s5762_s30 + $0x6c] sm:$0xf]  ;;  %v363_v62 = vrot.slane %v361_v51, 1 }
  0x1c   : > { %5193 = vmatmul.mubr.msk.bf16.vlgmr.msra.gmra.mxu1 %vm478_vm1, %v428_v55  ;;  %v356_v61 = vsel %vm344_vm0, %v351_v50, %v355_v44  ;;  %v435_v63 = vrot.slane %v433_v52, 1  ;;  %v441_v0 = vshll.u32 %v5849_v46, 16  ;;  %v5882_v4 = vcombine.low %v5852_v47, %v5855_v48  ;;  %v5894_v13 = vld [vmem:[%s5762_s30 + $0x70] sm:$0xf]  ;;  %v5897_v17 = vld [vmem:[%s5762_s30 + $0x74] sm:$0xf] }
  0x1d   : > { %5209 = vmatpush3.bf16.msra.mxu1 %v5745_v1  ;;  %5176 = vmatprep.mubr.msk.bf16.mxu0 %vm478_vm1, %v356_v61  ;;  %v365_v5 = vshrl.u32 %v5829_v38, 16  ;;  %v5887_v6 = vcombine.low %v5861_v53, %v5864_v54  ;;  %v5891_v8 = vcombine.low %v5870_v59, %v5873_v60  ;;  %v364_v1 = vsel %vm344_vm0, %v359_v56, %v363_v62  ;;  %v5902_v24 = vld [vmem:[%s5762_s30 + $0x28] sm:$0xf]  ;;  %v5905_v28 = vld [vmem:[%s5762_s30 + $0x2c] sm:$0xf] }
  0x1e   : > { %v436_v18 = vsel %vm344_vm0, %v431_v57, %v435_v63  ;;  %v439_v22 = vor.u32 %v437_v58, %v435_v63  ;;  %v443_v23 = vrot.slane %v441_v0, 1  ;;  %5276 = vmatprep.subr.bf16.mxu1 %v5844_v42  ;;  %5177 = vmatmul.mubr.msk.bf16.vlgmr.msra.gmra.mxu0 %vm478_vm1, %v364_v1  ;;  %v369_v31 = vshll.u32 %v5882_v4, 16  ;;  %v5921_v44 = vld [vmem:[%s5762_s30 + $0x30] sm:$0xf]  ;;  %v5924_v45 = vld [vmem:[%s5762_s30 + $0x34] sm:$0xf] }
  0x1f   : > { %5196 = vmatprep.mubr.msk.bf16.mxu1 %vm478_vm1, %v436_v18  ;;  %v367_v29 = vor.u32 %v365_v5, %v363_v62  ;;  %v373_v32 = vshrl.u32 %v5882_v4, 16  ;;  %v377_v33 = vshll.u32 %v5887_v6, 16  ;;  %v445_v36 = vshrl.u32 %v5849_v46, 16  ;;  %5243 = vmatpush3.bf16.msra.mxu0 %v5752_v2  ;;  %v259_v55 = vld [vmem:[%s5762_s30 + $0x78] sm:$0xf] }
  0x20   : > { %v444_v34 = vsel %vm344_vm0, %v439_v22, %v443_v23  ;;  %v449_v37 = vshll.u32 %v5891_v8, 16  ;;  %v5918_v43 = vcombine.low %v5894_v13, %v5897_v17  ;;  %v371_v49 = vrot.slane %v369_v31, 1  ;;  %v5942_v5 = vld [vmem:[%s5762_s30 + $0x38] sm:$0xf]  ;;  %v244_v1 = vld [vmem:[%s5762_s30 + $0x3c] sm:$0xf] }
  0x21   : > { %v379_v50 = vrot.slane %v377_v33, 1  ;;  %v453_v51 = vshrl.u32 %v5891_v8, 16  ;;  %v5930_v52 = vcombine.low %v5902_v24, %v5905_v28  ;;  %v447_v56 = vor.u32 %v445_v36, %v443_v23 }
  0x22   : > { %8059 = vst [vmem:[#allocation4_spill] sm:$0xff] %v5918_v43  ;;  %v451_v57 = vrot.slane %v449_v37, 1  ;;  %v457_v58 = vshll.u32 %v5918_v43, 16  ;;  %v381_v61 = vshrl.u32 %v5887_v6, 16  ;;  %v372_v62 = vsel %vm344_vm0, %v367_v29, %v371_v49 }
  0x23   : > { %v375_v63 = vor.u32 %v373_v32, %v371_v49  ;;  %v385_v2 = vshll.u32 %v5930_v52, 16  ;;  %v5939_v0 = vcombine.low %v5921_v44, %v5924_v45  ;;  %5180 = vmatprep.mubr.msk.bf16.mxu0 %vm478_vm1, %v372_v62  ;;  %v389_v33 = vshrl.u32 %v5930_v52, 16 }
  0x24   : > { %5197 = vmatmul.mubr.msk.bf16.gmra.mxu1 %vm478_vm1, %v444_v34  ;;  %v452_v18 = vsel %vm344_vm0, %v447_v56, %v451_v57  ;;  %v455_v22 = vor.u32 %v453_v51, %v451_v57  ;;  %v459_v23 = vrot.slane %v457_v58, 1  ;;  %v383_v31 = vor.u32 %v381_v61, %v379_v50 }
  0x25   : > { %v380_v29 = vsel %vm344_vm0, %v375_v63, %v379_v50  ;;  %5200 = vmatprep.mubr.msk.bf16.mxu1 %vm478_vm1, %v452_v18  ;;  %v387_v32 = vrot.slane %v385_v2, 1  ;;  %v393_v36 = vshll.u32 %v5939_v0, 16  ;;  %v5952_v37 = vcombine.low %v259_v55, %v259_v55 }
  0x26   : > { %v461_v34 = vshrl.u32 %v5918_v43, 16  ;;  %v5956_v49 = vcombine.low %v5942_v5, %v244_v1  ;;  %5181 = vmatmul.mubr.msk.bf16.gmra.mxu0 %vm478_vm1, %v380_v29  ;;  %v397_v50 = vshrl.u32 %v5939_v0, 16  ;;  %v460_v63 = vsel %vm344_vm0, %v455_v22, %v459_v23 }
  0x27   : > { %v388_v51 = vsel %vm344_vm0, %v383_v31, %v387_v32  ;;  %v395_v56 = vrot.slane %v393_v36, 1  ;;  %v391_v57 = vor.u32 %v389_v33, %v387_v32  ;;  %v465_v61 = vshll.u32 %v5952_v37, 16 }
  0x28   : > { %5184 = vmatprep.mubr.msk.bf16.mxu0 %vm478_vm1, %v388_v51  ;;  %v463_v58 = vor.u32 %v461_v34, %v459_v23  ;;  %v401_v62 = vshll.u32 %v5956_v49, 16  ;;  %v469_v36 = vshrl.u32 %v5952_v37, 16  ;;  %v405_v32 = vshrl.u32 %v5956_v49, 16 }
  0x29   : > { %v399_v2 = vor.u32 %v397_v50, %v395_v56  ;;  %v467_v18 = vrot.slane %v465_v61, 1  ;;  %v396_v31 = vsel %vm344_vm0, %v391_v57, %v395_v56  ;;  %v5974_v22 = vcombine.low %v5775_v9, %v5819_v30 }
  0x2a   : > { %v403_v43 = vrot.slane %v401_v62, 1  ;;  %v5978_v23 = vcombine.low %v5824_v35, %v5836_v40  ;;  %v5982_v34 = vcombine.low %v5839_v41, %v5870_v59  ;;  %v5986_v51 = vcombine.low %v5873_v60, %v5894_v13 }
  0x2b   : > { %v468_v29 = vsel %vm344_vm0, %v463_v58, %v467_v18  ;;  %v5989_v56 = vcombine.low %v5897_v17, %v259_v55  ;;  %v471_v50 = vor.u32 %v469_v36, %v467_v18  ;;  %v5994_v30 = vcombine.low %v244_v1, %v5765_v3  ;;  %v6041_v36 = vld [vmem:[%s5762_s30 + $0x7c] ss:$0 sps:$4 sm:$0xff]  }
  0x2c   : > { %5201 = vmatmul.mubr.msk.bf16.gmra.mxu1 %vm478_vm1, %v460_v63  ;;  %v404_v33 = vsel %vm344_vm0, %v399_v2, %v403_v43  ;;  %v407_v9 = vor.u32 %v405_v32, %v403_v43  ;;  %v6001_v40 = vcombine.low %v5786_v14, %v5789_v15  ;;  %v6009_v3 = vcombine.low %v5796_v19, %v5799_v20 }
  0x2d   : > { %5204 = vmatprep.mubr.msk.bf16.mxu1 %vm478_vm1, %v468_v29  ;;  %v1202_v41 = vshll.u32 %v5994_v30, 16  ;;  %v1206_v59 = vshrl.u32 %v5994_v30, 16  ;;  %v1213_v14 = vshrl.u32 %v5777_v10, 16  ;;  %v1216_v15 = vshll.u32 %v5791_v16, 16 }
  0x2e   : > { %5185 = vmatmul.mubr.msk.bf16.gmra.mxu0 %vm478_vm1, %v396_v31  ;;  %v412_v35 = vsel %vm344_vm0, %v407_v9, %v5814_v27  ;;  %v1209_v27 = vshll.u32 %v5777_v10, 16  ;;  %v1223_v13 = vshll.u32 %v5974_v22, 16  ;;  %v1227_v19 = vshrl.u32 %v5974_v22, 16 }
  0x2f   : > { %5188 = vmatprep.mubr.msk.bf16.mxu0 %vm478_vm1, %v404_v33  ;;  %v6012_v60 = vrot.slane %v1202_v41, 1  ;;  %v6024_v20 = vcombine.low %v5812_v26, %v5852_v47  ;;  %v1230_v55 = vshll.u32 %v5978_v23, 16  ;;  %v1218_v1 = vrot.slane %v1216_v15, 1 }
  0x30   : > { %v1211_v43 = vrot.slane %v1209_v27, 1  ;;  %v1225_v57 = vrot.slane %v1223_v13, 1  ;;  %v1234_v58 = vshrl.u32 %v5978_v23, 16  ;;  %v1237_v61 = vshll.u32 %v5982_v34, 16 }
  0x31   : > { %v1208_v17 = vor.u32 %v1206_v59, %v6012_v60  ;;  %v1232_v2 = vrot.slane %v1230_v55, 1  ;;  %v1241_v26 = vshrl.u32 %v5982_v34, 16  ;;  %v1244_v29 = vshll.u32 %v5986_v51, 16 }
  0x32   : > { %v1215_v63 = vor.u32 %v1213_v14, %v1211_v43  ;;  %v1229_v18 = vor.u32 %v1227_v19, %v1225_v57  ;;  %v1239_v31 = vrot.slane %v1237_v61, 1  ;;  %v1255_v27 = vshrl.u32 %v5989_v56, 16 }
  0x33   : > { %v6031_v62 = vsel %vm344_vm0, %v1208_v17, %v1211_v43  ;;  %v1236_v33 = vor.u32 %v1234_v58, %v1232_v2  ;;  %v1246_v41 = vrot.slane %v1244_v29, 1  ;;  %v1258_v14 = vshll.u32 %v6041_v36, 16  ;;  %v1790_v29 = vld [vmem:[%s8030_s3] sm:$0xf] }
  0x34   : > { %5205 = vmatmul.mubr.msk.bf16.gmra.mxu1 %vm478_vm1, %v471_v50  ;;  %v6044_v32 = vsel %vm344_vm0, %v1215_v63, %v1218_v1  ;;  %v1248_v50 = vshrl.u32 %v5986_v51, 16  ;;  %v4586_v43 = vcombine.low %v5855_v48, %v5861_v53  ;;  %v4588_v48 = vcombine.low %v5905_v28, %v5921_v44 }
  0x35   : > { %5210 = vmatprep.mubr.msk.bf16.mxu1 %vm478_vm1, %v5802_v21  ;;  %v1220_v21 = vshrl.u32 %v5791_v16, 16  ;;  %v6066_v19 = vrot.slane %v1258_v14, 1  ;;  %v4589_v53 = vcombine.low %v5924_v45, %v5942_v5 }
  0x36   : > { %5189 = vmatmul.mubr.msk.bf16.gmra.mxu0 %vm478_vm1, %v412_v35  ;;  %v6052_v35 = vsel %vm344_vm0, %v1229_v18, %v1232_v2  ;;  %v1262_v18 = vshrl.u32 %v6041_v36, 16 }
  0x37   : > { %5244 = vmatprep.mubr.msk.bf16.mxu0 %vm478_vm1, %v6001_v40  ;;  %v1222_v47 = vor.u32 %v1220_v21, %v1218_v1  ;;  %v1250_v21 = vor.u32 %v1248_v50, %v1246_v41  ;;  %v4587_v1 = vcombine.low %v5864_v54, %v5902_v24  ;;  %v1167_v54 = vshll.u32 %v6024_v20, 16 }
  0x38   : > { %v1171_v24 = vshrl.u32 %v6024_v20, 16  ;;  %v1199_v58 = vshrl.u32 %v4589_v53, 16 }
  0x39   : > { %v6049_v9 = vsel %vm344_vm0, %v1222_v47, %v1225_v57  ;;  %v1169_v28 = vrot.slane %v1167_v54, 1 }
  0x3b   : > { %v1173_v45 = vor.u32 %v1171_v24, %v1169_v28 }
  0x3c   : > { %5211 = vmatmul.mubr.msk.bf16.vlgmr.msra.gmra.mxu1 %vm478_vm1, %v5809_v25  ;;  %v1251_v25 = vshll.u32 %v5989_v56, 16 }
  0x3d   : > { %5277 = vmatpush3.bf16.msra.mxu1 %v5844_v42  ;;  %5214 = vmatprep.mubr.msk.bf16.mxu1 %vm478_vm1, %v5829_v38  ;;  %v1243_v42 = vor.u32 %v1241_v26, %v1239_v31  ;;  %v6057_v38 = vsel %vm344_vm0, %v1236_v33, %v1239_v31  ;;  %v1264_v31 = vor.u32 %v1262_v18, %v6066_v19 }
  0x3e   : > { %5245 = vmatmul.mubr.msk.bf16.vlgmr.msra.gmra.mxu0 %vm478_vm1, %v6009_v3  ;;  %v1253_v59 = vrot.slane %v1251_v25, 1  ;;  %5619 = vmatprep.subr.msk.bf16.mxu1 %vm2057_vm2, %v1790_v29 }
  0x3f   : > { %5248 = vmatprep.mubr.msk.bf16.mxu0 %vm478_vm1, %v6024_v20  ;;  %v6064_v15 = vsel %vm344_vm0, %v1243_v42, %v1246_v41  ;;  %v1192_v20 = vshrl.u32 %v4588_v48, 16 }
  0x40   : > { %v1257_v13 = vor.u32 %v1255_v27, %v1253_v59  ;;  %v6069_v17 = vsel %vm344_vm0, %v1250_v21, %v1253_v59  ;;  %v6210_v21 = vld [vmem:[%s8030_s3 + $0x8] sm:$0xf] }
  0x42   : > { %v6075_v55 = vsel %vm344_vm0, %v1257_v13, %v6066_v19 }
  0x44   : > { %5215 = vmatmul.mubr.msk.bf16.gmra.mxu1 %vm478_vm1, %v5882_v4  ;;  %v1164_v4 = vshrl.u32 %v6009_v3, 16 }
  0x45   : > { %5218 = vmatprep.mubr.msk.bf16.mxu1 %vm478_vm1, %v5887_v6 }
  0x46   : > { %5249 = vmatmul.mubr.msk.bf16.gmra.mxu0 %vm478_vm1, %v4586_v43 }
  0x47   : > { %5252 = vmatprep.mubr.msk.bf16.mxu0 %vm478_vm1, %v4587_v1 }
  0x4c   : > { %5219 = vmatmul.mubr.msk.bf16.gmra.mxu1 %vm478_vm1, %v5930_v52 }
  0x4d   : > { %5222 = vmatprep.mubr.msk.bf16.mxu1 %vm478_vm1, %v5939_v0  ;;  %v1181_v0 = vshll.u32 %v4587_v1, 16 }
  0x4e   : > { %5253 = vmatmul.mubr.msk.bf16.gmra.mxu0 %vm478_vm1, %v4588_v48 }
  0x4f   : > { %5256 = vmatprep.mubr.msk.bf16.mxu0 %vm478_vm1, %v4589_v53 }
  0x54   : > { %5223 = vmatmul.mubr.msk.bf16.gmra.mxu1 %vm478_vm1, %v5956_v49  ;;  %v1178_v49 = vshrl.u32 %v4586_v43, 16 }
  0x55   : > { %5226 = vmatprep.mubr.msk.bf16.mxu1 %vm478_vm1, %v5771_v7  ;;  %v1156_v7 = vshll.u32 %v6001_v40, 16 }
  0x56   : > { %5257 = vmatmul.mubr.msk.bf16.gmra.mxu0 %vm478_vm1, %v5994_v30 }
  0x57   : > { %5260 = vmatprep.mubr.msk.bf16.mxu0 %vm478_vm1, %v5777_v10  ;;  %v1154_v10 = vshrl.u32 %v6001_v40, 16  ;;  %v1195_v40 = vshll.u32 %v4589_v53, 16 }
  0x59   : > { %v1197_v61 = vrot.slane %v1195_v40, 1 }
  0x5b   : > { %v1201_v2 = vor.u32 %v1199_v58, %v1197_v61 }
  0x5c   : > { %5227 = vmatmul.mubr.msk.bf16.gmra.mxu1 %vm478_vm1, %v5779_v11  ;;  %v1158_v11 = vrot.slane %v1156_v7, 1 }
  0x5d   : > { %5230 = vmatprep.mubr.msk.bf16.mxu1 %vm478_vm1, %v5782_v12  ;;  %v1160_v12 = vshll.u32 %v6009_v3, 16  ;;  %v1205_v47 = vsel %vm344_vm0, %v1201_v2, %v6012_v60  ;;  %v4667_v60 = vld [vmem:[%s8030_s3 + $0x4] sm:$0xf] }
  0x5e   : > { %5261 = vmatmul.mubr.msk.bf16.gmra.mxu0 %vm478_vm1, %v5791_v16  ;;  %v8060_v16 = vld [vmem:[#allocation4_spill] sm:$0xff]  ;;  %5618 = vmatprep.subr.msk.bf16.mxu0 %vm2057_vm2, %v4667_v60 }
  0x5f   : > { %5264 = vmatprep.mubr.msk.bf16.mxu0 %vm478_vm1, %v5974_v22 }
  0x64   : > { %5231 = vmatmul.mubr.msk.bf16.gmra.mxu1 %vm478_vm1, %v5833_v39  ;;  %v1159_v39 = vor.u32 %v1158_v11, %v1154_v10 }
  0x65   : > { %5234 = vmatprep.mubr.msk.bf16.mxu1 %vm478_vm1, %v5849_v46  ;;  %v1162_v46 = vrot.slane %v1160_v12, 1  ;;  %v1598_v12 = vld [vmem:[#allocation2 + $0x78] sm:$0x8] }
  0x66   : > { %5265 = vmatmul.mubr.msk.bf16.gmra.mxu0 %vm478_vm1, %v5978_v23  ;;  %v1185_v23 = vshrl.u32 %v4587_v1, 16 }
  0x67   : > { %5268 = vmatprep.mubr.msk.bf16.mxu0 %vm478_vm1, %v5982_v34  ;;  %v1163_v6 = vsel %vm344_vm0, %v1159_v39, %v1162_v46  ;;  %v1166_v44 = vor.u32 %v1164_v4, %v1162_v46  ;;  %v1188_v34 = vshll.u32 %v4588_v48, 16  ;;  %v1599_v39 = vsel %vm1597_vm5, 0, %v1598_v12 }
  0x68   : > { %1600 = vst [vmem:[#allocation2 + $0x78] sm:$0x8] %v1599_v39 }
  0x69   : > { %v1170_v5 = vsel %vm344_vm0, %v1166_v44, %v1169_v28  ;;  %v1190_v30 = vrot.slane %v1188_v34, 1 }
  0x6b   : > { %v1194_v63 = vor.u32 %v1192_v20, %v1190_v30 }
  0x6c   : > { %5235 = vmatmul.mubr.msk.bf16.gmra.mxu1 %vm478_vm1, %v5891_v8  ;;  %v1174_v8 = vshll.u32 %v4586_v43, 16 }
  0x6d   : > { %5238 = vmatprep.mubr.msk.bf16.mxu1 %vm478_vm1, %v8060_v16  ;;  %v1198_v26 = vsel %vm344_vm0, %v1194_v63, %v1197_v61 }
  0x6e   : > { %5269 = vmatmul.mubr.msk.bf16.gmra.mxu0 %vm478_vm1, %v5986_v51  ;;  %v1176_v52 = vrot.slane %v1174_v8, 1  ;;  %v1183_v51 = vrot.slane %v1181_v0, 1  ;;  %v8034_v0 = vmov 0  }
  0x6f   : > { %5272 = vmatprep.mubr.msk.bf16.mxu0 %vm478_vm1, %v5989_v56  ;;  %1602 = vst.msk [vmem:[#allocation2 + $0x7c] sm:$0xf] %vm1601_vm6, %v8034_v0  ;;  %1603 = vst.msk [vmem:[#allocation2 + $0x80] sm:$0xf] %vm1601_vm6, %v8034_v0 }
  0x70   : > { %v1177_v22 = vsel %vm344_vm0, %v1173_v45, %v1176_v52  ;;  %v1187_v56 = vor.u32 %v1185_v23, %v1183_v51  ;;  %1604 = vst.msk [vmem:[#allocation2 + $0x84] sm:$0xf] %vm1601_vm6, %v8034_v0 }
  0x72   : > { %v1191_v57 = vsel %vm344_vm0, %v1187_v56, %v1190_v30 }
  0x74   : > { %5239 = vmatmul.mubr.msk.bf16.gmra.mxu1 %vm478_vm1, %v5952_v37  ;;  %v1180_v37 = vor.u32 %v1178_v49, %v1176_v52 }
  0x75   : > { %5278 = vmatprep.mubr.msk.bf16.mxu1 %vm478_vm1, %v1163_v6 }
  0x76   : > { %5273 = vmatmul.mubr.msk.bf16.gmra.mxu0 %vm478_vm1, %v6041_v36  ;;  %v1184_v3 = vsel %vm344_vm0, %v1180_v37, %v1183_v51 }
  0x7c   : > { %5279 = vmatmul.mubr.msk.bf16.vlgmr.msra.gmra.mxu1 %vm478_vm1, %v1170_v5 }
  0x7d   : > { %5282 = vmatprep.mubr.msk.bf16.mxu1 %vm478_vm1, %v1177_v22 }
  0x84   : > { %5283 = vmatmul.mubr.msk.bf16.gmra.mxu1 %vm478_vm1, %v1184_v3 }
  0x85   : > { %5286 = vmatprep.mubr.msk.bf16.mxu1 %vm478_vm1, %v1191_v57 }
  0x8c   : > { %5287 = vmatmul.mubr.msk.bf16.gmra.mxu1 %vm478_vm1, %v1198_v26 }
  0x8d   : > { %5290 = vmatprep.mubr.msk.bf16.mxu1 %vm478_vm1, %v1205_v47 }
  0x94   : > { %5291 = vmatmul.mubr.msk.bf16.gmra.mxu1 %vm478_vm1, %v6031_v62  ;;  %v2059_v62 = vsel %vm2057_vm2, %v4667_v60, 0  ;;  %v6303_v60 = vld [vmem:[%s8030_s3 + $0xc] sm:$0xf] }
  0x95   : > { %5294 = vmatprep.mubr.msk.bf16.mxu1 %vm478_vm1, %v6044_v32  ;;  %5311 = vmatpush3.bf16.msra.mxu0 %v2059_v62  ;;  %v2255_v32 = vsel %vm2057_vm2, %v1790_v29, 0 }
  0x96   : > { %5345 = vmatpush3.bf16.msra.mxu1 %v2255_v32  ;;  %5620 = vmatprep.subr.msk.bf16.mxu0 %vm2057_vm2, %v6210_v21 }
  0x97   : > { %5621 = vmatprep.subr.msk.bf16.mxu1 %vm2057_vm2, %v6303_v60 }
  0x9c   : > { %5295 = vmatmul.mubr.msk.bf16.gmra.mxu1 %vm478_vm1, %v6049_v9 }
  0x9d   : > { %5298 = vmatprep.mubr.msk.bf16.mxu1 %vm478_vm1, %v6052_v35 }
  0xa4   : > { %5299 = vmatmul.mubr.msk.bf16.gmra.mxu1 %vm478_vm1, %v6057_v38 }
  0xa5   : > { %5302 = vmatprep.mubr.msk.bf16.mxu1 %vm478_vm1, %v6064_v15 }
  0xac   : > { %5303 = vmatmul.mubr.msk.bf16.gmra.mxu1 %vm478_vm1, %v6069_v17 }
  0xad   : > { %5306 = vmatprep.mubr.msk.bf16.mxu1 %vm478_vm1, %v6075_v55 }
  0xb4   : > { %5307 = vmatmul.mubr.msk.bf16.gmra.mxu1 %vm478_vm1, %v1264_v31 }
  0xdc   : > { %v6181_v33 = vpop.f32.mrf.mxu1 }
  0xde   : > { %v6183_v50 = vpop.f32.mrf.mxu1  ;;  %v6185_v36 = vpop.f32.mrf.mxu0 }
  0xe0   : > { %v6187_v25 = vpop.f32.mrf.mxu1  ;;  %v6189_v9 = vpop.f32.mrf.mxu0 }
  0xe1   : > { %8061 = vst [vmem:[#allocation4_spill] sm:$0xff] %v6187_v25 }
  0xe2   : > { %v6191_v35 = vpop.f32.mrf.mxu1  ;;  %v6193_v42 = vpop.f32.mrf.mxu0 }
  0xe3   : > { %8062 = vst [vmem:[#allocation5_spill] sm:$0xff] %v6191_v35 }
  0xe4   : > { %v6195_v41 = vpop.f32.mrf.mxu1  ;;  %v6197_v38 = vpop.f32.mrf.mxu0 }
  0xe5   : > { %8063 = vst [vmem:[#allocation6_spill] sm:$0xff] %v6195_v41 }
  0xe6   : > { %v6199_v59 = vpop.f32.mrf.mxu1  ;;  %v6201_v27 = vpop.f32.mrf.mxu0 }
  0xe7   : > { %8064 = vst [vmem:[#allocation7_spill] sm:$0xff] %v6199_v59 }
  0xe8   : > { %v6203_v14 = vpop.f32.mrf.mxu1  ;;  %v6205_v15 = vpop.f32.mrf.mxu0 }
  0xe9   : > { %8065 = vst [vmem:[#allocation8_spill] sm:$0xff] %v6203_v14 }
  0xea   : > { %v6212_v13 = vpop.f32.mrf.mxu1  ;;  %v6216_v19 = vpop.f32.mrf.mxu0 }
  0xeb   : > { %8066 = vst [vmem:[#allocation9_spill] sm:$0xff] %v6212_v13 }
  0xec   : > { %v6218_v17 = vpop.f32.mrf.mxu1  ;;  %v6220_v43 = vpop.f32.mrf.mxu0 }
  0xed   : > { %8067 = vst [vmem:[#allocation10_spill] sm:$0xff] %v6218_v17 }
  0xee   : > { %v6222_v55 = vpop.f32.mrf.mxu1  ;;  %v6224_v1 = vpop.f32.mrf.mxu0 }
  0xef   : > { %8068 = vst [vmem:[#allocation11_spill] sm:$0xff] %v6222_v55 }
  0xf0   : > { %v6226_v48 = vpop.f32.mrf.mxu1  ;;  %v6228_v53 = vpop.f32.mrf.mxu0 }
  0xf1   : > { %8069 = vst [vmem:[#allocation12_spill] sm:$0xff] %v6226_v48 }
  0xf2   : > { %v6230_v7 = vpop.f32.mrf.mxu1  ;;  %v6232_v10 = vpop.f32.mrf.mxu0 }
  0xf3   : > { %8070 = vst [vmem:[#allocation13_spill] sm:$0xff] %v6230_v7 }
  0xf4   : > { %v6234_v11 = vpop.f32.mrf.mxu1  ;;  %v6236_v16 = vpop.f32.mrf.mxu0 }
  0xf5   : > { %8071 = vst [vmem:[#allocation14_spill] sm:$0xff] %v6234_v11 }
  0xf6   : > { %v6238_v46 = vpop.f32.mrf.mxu1  ;;  %v6240_v54 = vpop.f32.mrf.mxu0 }
  0xf7   : > { %8072 = vst [vmem:[#allocation15_spill] sm:$0xff] %v6238_v46 }
  0xf8   : > { %v5207_v4 = vpop.f32.mrf.mxu1  ;;  %v6242_v6 = vpop.f32.mrf.mxu0 }
  0xfa   : > { %v6244_v24 = vpop.f32.mrf.mxu1  ;;  %v6246_v8 = vpop.f32.mrf.mxu0 }
  0xfb   : > { %8073 = vst [vmem:[#allocation16_spill] sm:$0xff] %v6244_v24 }
  0xfc   : > { %v6248_v28 = vpop.f32.mrf.mxu1  ;;  %v6250_v44 = vpop.f32.mrf.mxu0 }
  0xfe   : > { %v6252_v45 = vpop.f32.mrf.mxu1  ;;  %v6254_v52 = vpop.f32.mrf.mxu0 }
 0x100   : > { %v6262_v5 = vpop.f32.mrf.mxu1  ;;  %v6264_v49 = vpop.f32.mrf.mxu0 }
 0x102   : > { %v6266_v22 = vpop.f32.mrf.mxu1  ;;  %v6268_v23 = vpop.f32.mrf.mxu0 }
 0x104   : > { %v6270_v34 = vpop.f32.mrf.mxu1  ;;  %v6272_v51 = vpop.f32.mrf.mxu0 }
 0x106   : > { %v6274_v37 = vpop.f32.mrf.mxu1  ;;  %v6276_v56 = vpop.f32.mrf.mxu0 }
 0x108   : > { %v6278_v30 = vpop.f32.mrf.mxu1  ;;  %v6280_v40 = vpop.f32.mrf.mxu0 }
 0x10a   : > { %v6282_v3 = vpop.f32.mrf.mxu1  ;;  %v6284_v20 = vpop.f32.mrf.mxu0 }
 0x10c   : > { %v6286_v57 = vpop.f32.mrf.mxu1  ;;  %v6288_v58 = vpop.f32.mrf.mxu0 }
 0x10e   : > { %v6290_v61 = vpop.f32.mrf.mxu1  ;;  %v6292_v63 = vpop.f32.mrf.mxu0 }
 0x110   : > { %v6294_v2 = vpop.f32.mrf.mxu1  ;;  %v6296_v26 = vpop.f32.mrf.mxu0 }
 0x112   : > { %v6298_v47 = vpop.f32.mrf.mxu1  ;;  %v6305_v62 = vpop.f32.mrf.mxu0 }
 0x114   : > { %v6309_v18 = vpop.f32.mrf.mxu1  ;;  %v6311_v31 = vpop.f32.mrf.mxu0 }
 0x116   : > { %v6313_v29 = vpop.f32.mrf.mxu1  ;;  %v6315_v32 = vpop.f32.mrf.mxu0 }
 0x118   : > { %v6317_v12 = vpop.f32.mrf.mxu1  ;;  %v6319_v39 = vpop.f32.mrf.mxu0 }
 0x11a   : > { %v6321_v4 = vpop.f32.mrf.mxu1  ;;  %v6323_v0 = vpop.f32.mrf.mxu0 }
 0x11c   : > { %v6325_v24 = vpop.f32.mrf.mxu1  ;;  %v6327_v46 = vpop.f32.mrf.mxu0 }
 0x11d   : > { %8074 = vst [vmem:[#allocation17_spill] sm:$0xff] %v6327_v46 }
 0x11e   : > { %v6329_v11 = vpop.f32.mrf.mxu1  ;;  %v6331_v7 = vpop.f32.mrf.mxu0 }
 0x11f   : > { %8075 = vst [vmem:[#allocation18_spill] sm:$0xff] %v6331_v7 }
 0x120   : > { %v6333_v48 = vpop.f32.mrf.mxu1  ;;  %v6335_v55 = vpop.f32.mrf.mxu0 }
 0x121   : > { %8076 = vst [vmem:[#allocation19_spill] sm:$0xff] %v6333_v48  ;;  %8077 = vst [vmem:[#allocation20_spill] sm:$0xff] %v6335_v55 }
 0x122   : > { %v6337_v17 = vpop.f32.mrf.mxu1  ;;  %v6339_v13 = vpop.f32.mrf.mxu0 }
 0x123   : > { %8078 = vst [vmem:[#allocation21_spill] sm:$0xff] %v6337_v17  ;;  %8079 = vst [vmem:[#allocation22_spill] sm:$0xff] %v6339_v13 }
 0x124   : > { %v6341_v14 = vpop.f32.mrf.mxu1  ;;  %v6343_v59 = vpop.f32.mrf.mxu0 }
 0x125   : > { %8080 = vst [vmem:[#allocation23_spill] sm:$0xff] %v6341_v14  ;;  %8081 = vst [vmem:[#allocation24_spill] sm:$0xff] %v6343_v59 }
 0x126   : > { %v6345_v41 = vpop.f32.mrf.mxu1  ;;  %v6347_v35 = vpop.f32.mrf.mxu0 }
 0x127   : > { %8082 = vst [vmem:[#allocation25_spill] sm:$0xff] %v6345_v41  ;;  %8083 = vst [vmem:[#allocation26_spill] sm:$0xff] %v6347_v35 }
 0x128   : > { %v6349_v25 = vpop.f32.mrf.mxu1  ;;  %v6351_v46 = vpop.f32.mrf.mxu0 }
 0x129   : > { %8084 = vst [vmem:[#allocation27_spill] sm:$0xff] %v6349_v25  ;;  %8085 = vst [vmem:[#allocation28_spill] sm:$0xff] %v6351_v46 }
 0x12a   : > { %v6353_v7 = vpop.f32.mrf.mxu1  ;;  %v6355_v48 = vpop.f32.mrf.mxu0 }
 0x12b   : > { %8086 = vst [vmem:[#allocation29_spill] sm:$0xff] %v6353_v7  ;;  %8087 = vst [vmem:[#allocation30_spill] sm:$0xff] %v6355_v48 }
 0x12c   : > { %v6357_v55 = vpop.f32.mrf.mxu1  ;;  %v6359_v17 = vpop.f32.mrf.mxu0 }
 0x12d   : > { %8088 = vst [vmem:[#allocation31_spill] sm:$0xff] %v6359_v17  ;;  %v768_v17 = vadd.f32 %v6248_v28, %v6185_v36  ;;  %v6395_v36 = vld [vmem:[%s8029_s2] ss:$0 sm:$0xff] }
 0x12e   : > { %v6361_v13 = vpop.f32.mrf.mxu1  ;;  %v6363_v14 = vpop.f32.mrf.mxu0 }
 0x12f   : > { %8089 = vst [vmem:[#allocation32_spill] sm:$0xff] %v6361_v13  ;;  %8090 = vst [vmem:[#allocation33_spill] sm:$0xff] %v6363_v14 }
 0x130   : > { %v6365_v59 = vpop.f32.mrf.mxu1  ;;  %v6367_v41 = vpop.f32.mrf.mxu0 }
 0x131   : > { %8091 = vst [vmem:[#allocation34_spill] sm:$0xff] %v6365_v59  ;;  %8092 = vst [vmem:[#allocation35_spill] sm:$0xff] %v6367_v41  ;;  %v760_v59 = vadd.f32 %v6252_v45, %v6189_v9  ;;  %v763_v9 = vadd.f32 %v6266_v22, %v6197_v38  ;;  %v784_v45 = vadd.f32 %v6270_v34, %v6201_v27 }
 0x132   : > { %v6369_v35 = vpop.f32.mrf.mxu1  ;;  %v6371_v25 = vpop.f32.mrf.mxu0  ;;  %v787_v27 = vadd.f32 %v6278_v30, %v6216_v19 }
 0x133   : > { %8093 = vst [vmem:[#allocation36_spill] sm:$0xff] %v6369_v35  ;;  %8094 = vst [vmem:[#allocation37_spill] sm:$0xff] %v6371_v25  ;;  %v1122_v25 = vadd.f32 %v6254_v52, %v768_v17 }
 0x134   : > { %v6373_v46 = vpop.f32.mrf.mxu1  ;;  %v6375_v7 = vpop.f32.mrf.mxu0 }
 0x135   : > { %8095 = vst [vmem:[#allocation38_spill] sm:$0xff] %v6373_v46  ;;  %8096 = vst [vmem:[#allocation39_spill] sm:$0xff] %v6375_v7  ;;  %v771_v7 = vadd.f32 %v6262_v5, %v6193_v42  ;;  %v776_v5 = vadd.f32 %v6274_v37, %v6205_v15  ;;  %v800_v37 = vadd.f32 %v6286_v57, %v6224_v1 }
 0x136   : > { %v6377_v48 = vpop.f32.mrf.mxu1  ;;  %v6381_v13 = vpop.f32.mrf.mxu0 }
 0x137   : > { %8097 = vst [vmem:[#allocation40_spill] sm:$0xff] %v6377_v48  ;;  %v1123_v52 = vadd.f32 %v6268_v23, %v771_v7  ;;  %v1124_v15 = vadd.f32 %v6280_v40, %v776_v5 }
 0x138   : > { %v5241_v14 = vpop.f32.mrf.mxu1  ;;  %v6385_v41 = vpop.f32.mrf.mxu0 }
 0x139   : > { %8098 = vst [vmem:[#allocation41_spill] sm:$0xff] %v6385_v41  ;;  %v1120_v14 = vadd.f32 %v6264_v49, %v760_v59  ;;  %v1121_v41 = vadd.f32 %v6272_v51, %v763_v9  ;;  %v779_v51 = vadd.f32 %v6282_v3, %v6220_v43  ;;  %v1127_v9 = vadd.f32 %v6284_v20, %v787_v27 }
 0x13a   : > { %v6387_v35 = vpop.f32.mrf.mxu1  ;;  %v5275_v46 = vpop.f32.mrf.mxu0  ;;  %v6424_v43 = vsel %vm2057_vm2, %v6210_v21, 0  ;;  %v803_v20 = vadd.f32 %v6294_v2, %v6232_v10 }
 0x13b   : > { %8099 = vst [vmem:[#allocation42_spill] sm:$0xff] %v6387_v35 }
 0x13c   : > { %v5280_v48 = vpop.f32.mrf.mxu1 }
 0x13d   : > { %v1481_v28 = vadd.f32 %v5280_v48, %v1122_v25  ;;  %v1126_v25 = vadd.f32 %v6276_v56, %v784_v45  ;;  %v1125_v45 = vadd.f32 %v6288_v58, %v779_v51  ;;  %v816_v58 = vadd.f32 %v6309_v18, %v6240_v54 }
 0x13e   : > { %v1353_v17 = vpop.f32.mrf.mxu1  ;;  %v811_v18 = vadd.f32 %v6321_v4, %v6250_v44 }
 0x13f   : > { %v1519_v42 = vadd.f32 %v6395_v36, %v1481_v28  ;;  %v1479_v46 = vadd.f32 %v1353_v17, %v1120_v14  ;;  %v1130_v17 = vadd.f32 %v6292_v63, %v800_v37  ;;  %v808_v63 = vadd.f32 %v6313_v29, %v6242_v6 }
 0x140   : > { %v5281_v35 = vpop.f32.mrf.mxu1  ;;  %v819_v6 = vadd.f32 %v6317_v12, %v6246_v8  ;;  %v824_v8 = vadd.f32 %v6329_v11, %v6183_v50 }
 0x141   : > { %v1550_v59 = vmax.f32 %v1519_v42, 0.0  ;;  %v1517_v49 = vadd.f32 %v6395_v36, %v1479_v46  ;;  %v1482_v38 = vadd.f32 %v5281_v35, %v1123_v52 }
 0x142   : > { %v1356_v48 = vpop.f32.mrf.mxu1 }
 0x143   : > { %v4892_v7 = vpack.c.bf16 %v1550_v59, %v1550_v59  ;;  %v1548_v22 = vmax.f32 %v1517_v49, 0.0  ;;  %v1520_v23 = vadd.f32 %v6395_v36, %v1482_v38  ;;  %v1480_v34 = vadd.f32 %v1356_v48, %v1121_v41 }
 0x144   : > { %v5284_v35 = vpop.f32.mrf.mxu1  ;;  %v792_v41 = vadd.f32 %v6290_v61, %v6228_v53  ;;  %v795_v53 = vadd.f32 %v6298_v47, %v6236_v16  ;;  %v6443_v16 = vsel %vm2057_vm2, %v6303_v60, 0  ;;  %v1134_v48 = vadd.f32 %v6315_v32, %v816_v58 }
 0x145   : > { %1721 = vst.msk [vmem:[#allocation2 + $0x8] sm:$0xf] %vm1601_vm6, %v4892_v7  ;;  %v4890_v56 = vpack.c.bf16 %v1548_v22, %v1548_v22  ;;  %v1551_v14 = vmax.f32 %v1520_v23, 0.0  ;;  %v1518_v19 = vadd.f32 %v6395_v36, %v1480_v34  ;;  %v1485_v30 = vadd.f32 %v5284_v35, %v1126_v25  ;;  %v8100_v34 = vld [vmem:[#allocation17_spill] sm:$0xff] }
 0x146   : > { %v1369_v40 = vpop.f32.mrf.mxu1  ;;  %v1128_v5 = vadd.f32 %v6296_v26, %v792_v41  ;;  %v1131_v26 = vadd.f32 %v6305_v62, %v803_v20  ;;  %v1129_v54 = vadd.f32 %v6311_v31, %v795_v53  ;;  %v1132_v62 = vadd.f32 %v6319_v39, %v808_v63  ;;  %v8101_v39 = vld [vmem:[#allocation4_spill] sm:$0xff]  ;;  %v8111_v63 = vld [vmem:[#allocation7_spill] sm:$0xff] }
 0x147   : > { %1719 = vst.msk [vmem:[#allocation2] sm:$0xf] %vm1601_vm6, %v4890_v56  ;;  %v4893_v1 = vpack.c.bf16 %v1551_v14, %v1551_v14  ;;  %v1549_v3 = vmax.f32 %v1518_v19, 0.0  ;;  %v1523_v57 = vadd.f32 %v6395_v36, %v1485_v30  ;;  %v1483_v28 = vadd.f32 %v1369_v40, %v1124_v15  ;;  %v8102_v15 = vld [vmem:[#allocation19_spill] sm:$0xff]  ;;  %v8105_v30 = vld [vmem:[#allocation18_spill] sm:$0xff]  ;;  %v8106_v41 = vld [vmem:[#allocation20_spill] sm:$0xff] }
 0x148   : > { %v5285_v61 = vpop.f32.mrf.mxu1  ;;  %v832_v31 = vadd.f32 %v6325_v24, %v6181_v33  ;;  %v1135_v23 = vadd.f32 %v6323_v0, %v819_v6  ;;  %v6465_v32 = vadd.f32 %v8100_v34, %v811_v18  ;;  %v835_v51 = vadd.f32 %v8102_v15, %v8101_v39  ;;  %v8103_v33 = vld [vmem:[#allocation5_spill] sm:$0xff]  ;;  %v8113_v18 = vld [vmem:[#allocation26_spill] sm:$0xff] }
 0x149   : > { %1722 = vst.msk [vmem:[#allocation2 + $0xc] sm:$0xf] %vm1601_vm6, %v4893_v1  ;;  %v4891_v21 = vpack.c.bf16 %v1549_v3, %v1549_v3  ;;  %v1554_v52 = vmax.f32 %v1523_v57, 0.0  ;;  %v1521_v42 = vadd.f32 %v6395_v36, %v1483_v28  ;;  %v1486_v46 = vadd.f32 %v5285_v61, %v1127_v9  ;;  %v8104_v24 = vld [vmem:[#allocation21_spill] sm:$0xff]  ;;  %v8107_v1 = vld [vmem:[#allocation6_spill] sm:$0xff]  ;;  %v8108_v3 = vld [vmem:[#allocation23_spill] sm:$0xff] }
 0x14a   : > { %v1372_v10 = vpop.f32.mrf.mxu1  ;;  %v827_v37 = vadd.f32 %v8104_v24, %v8103_v33  ;;  %v6478_v9 = vadd.f32 %v8105_v30, %v832_v31  ;;  %v6481_v40 = vadd.f32 %v8106_v41, %v824_v8  ;;  %v848_v57 = vadd.f32 %v8108_v3, %v8107_v1  ;;  %v8117_v39 = vld [vmem:[#allocation9_spill] sm:$0xff]  ;;  %v8119_v30 = vld [vmem:[#allocation30_spill] sm:$0xff] }
 0x14b   : > { %1720 = vst.msk [vmem:[#allocation2 + $0x4] sm:$0xf] %vm1601_vm6, %v4891_v21  ;;  %v4896_v2 = vpack.c.bf16 %v1554_v52, %v1554_v52  ;;  %v1552_v47 = vmax.f32 %v1521_v42, 0.0  ;;  %v1524_v59 = vadd.f32 %v6395_v36, %v1486_v46  ;;  %v1484_v49 = vadd.f32 %v1372_v10, %v1125_v45  ;;  %v8109_v42 = vld [vmem:[#allocation22_spill] sm:$0xff]  ;;  %v8112_v10 = vld [vmem:[#allocation25_spill] sm:$0xff] }
 0x14c   : > { %v5288_v60 = vpop.f32.mrf.mxu1  ;;  %v6475_v0 = vld [vmem:[#allocation2 + $0x8] sm:$0xf]  ;;  %v6494_v46 = vadd.f32 %v8109_v42, %v835_v51  ;;  %v8118_v15 = vld [vmem:[#allocation29_spill] sm:$0xff] }
 0x14d   : > { %1725 = vst.msk [vmem:[#allocation2 + $0x18] sm:$0xf] %vm1601_vm6, %v4896_v2  ;;  %v4894_v29 = vpack.c.bf16 %v1552_v47, %v1552_v47  ;;  %v1555_v38 = vmax.f32 %v1524_v59, 0.0  ;;  %v1522_v25 = vadd.f32 %v6395_v36, %v1484_v49  ;;  %v1489_v27 = vadd.f32 %v5288_v60, %v1130_v17 }
 0x14e   : > { %v1385_v12 = vpop.f32.mrf.mxu1  ;;  %v1755_v52 = vld [vmem:[#allocation2] sm:$0xf]  ;;  %v840_v2 = vadd.f32 %v8112_v10, %v8111_v63  ;;  %v6507_v60 = vadd.f32 %v8113_v18, %v848_v57  ;;  %v843_v51 = vadd.f32 %v8118_v15, %v8117_v39 }
 0x14f   : > { %1723 = vst.msk [vmem:[#allocation2 + $0x10] sm:$0xf] %vm1601_vm6, %v4894_v29  ;;  %v4897_v44 = vpack.c.bf16 %v1555_v38, %v1555_v38  ;;  %v1553_v4 = vmax.f32 %v1522_v25, 0.0  ;;  %v1527_v7 = vadd.f32 %v6395_v36, %v1489_v27  ;;  %v1487_v22 = vadd.f32 %v1385_v12, %v1128_v5  ;;  %v8110_v5 = vld [vmem:[#allocation24_spill] sm:$0xff]  ;;  %v8115_v38 = vld [vmem:[#allocation27_spill] sm:$0xff] }
 0x150   : > { %v5289_v50 = vpop.f32.mrf.mxu1  ;;  %v6471_v11 = vld [vmem:[#allocation2 + $0xc] sm:$0xf]  ;;  %v6497_v58 = vadd.f32 %v8110_v5, %v827_v37  ;;  %v6518_v12 = vld [vmem:[%s8030_s3 + $0x14] sm:$0xf]  ;;  %v8121_v5 = vld [vmem:[#allocation31_spill] sm:$0xff] }
 0x151   : > { %1726 = vst.msk [vmem:[#allocation2 + $0x1c] sm:$0xf] %vm1601_vm6, %v4897_v44  ;;  %v4895_v35 = vpack.c.bf16 %v1553_v4, %v1553_v4  ;;  %v1558_v56 = vmax.f32 %v1527_v7, 0.0  ;;  %v1525_v14 = vadd.f32 %v6395_v36, %v1487_v22  ;;  %v1490_v19 = vadd.f32 %v5289_v50, %v1131_v26  ;;  %v8114_v29 = vld [vmem:[#allocation8_spill] sm:$0xff] }
 0x152   : > { %v1388_v28 = vpop.f32.mrf.mxu1  ;;  %v6485_v45 = vld [vmem:[#allocation2 + $0x4] sm:$0xf]  ;;  %v6489_v17 = vcombine.low %v6475_v0, %v6471_v11  ;;  %v851_v25 = vadd.f32 %v8115_v38, %v8114_v29  ;;  %v8116_v22 = vld [vmem:[#allocation28_spill] sm:$0xff]  ;;  %v6556_v63 = vadd.f32 %v8121_v5, %v843_v51 }
 0x153   : > { %1724 = vst.msk [vmem:[#allocation2 + $0x14] sm:$0xf] %vm1601_vm6, %v4895_v35  ;;  %v4900_v20 = vpack.c.bf16 %v1558_v56, %v1558_v56  ;;  %v1556_v53 = vmax.f32 %v1525_v14, 0.0  ;;  %v1528_v61 = vadd.f32 %v6395_v36, %v1490_v19  ;;  %v1488_v21 = vadd.f32 %v1388_v28, %v1129_v54 }
 0x154   : > { %v5292_v47 = vpop.f32.mrf.mxu1  ;;  %v6502_v59 = vcombine.low %v1755_v52, %v6485_v45  ;;  %v1884_v8 = vshll.u32 %v6489_v17, 16  ;;  %v6525_v34 = vadd.f32 %v8116_v22, %v840_v2  ;;  %v6535_v19 = vld [vmem:[#allocation2 + $0x18] sm:$0xf]  ;;  %v6540_v41 = vadd.f32 %v8119_v30, %v851_v25  ;;  %v8120_v52 = vld [vmem:[#allocation10_spill] sm:$0xff] }
 0x155   : > { %1729 = vst.msk [vmem:[#allocation2 + $0x28] sm:$0xf] %vm1601_vm6, %v4900_v20  ;;  %v4898_v49 = vpack.c.bf16 %v1556_v53, %v1556_v53  ;;  %v1559_v26 = vmax.f32 %v1528_v61, 0.0  ;;  %v1526_v54 = vadd.f32 %v6395_v36, %v1488_v21  ;;  %v1493_v6 = vadd.f32 %v5292_v47, %v1134_v48 }
 0x156   : > { %5346 = vmatprep.mubr.msk.bf16.mxu1 %vm2008_vm7, %v6502_v59  ;;  %v1401_v27 = vpop.f32.mrf.mxu1  ;;  %v1879_v31 = vshll.u32 %v6502_v59, 16  ;;  %v1877_v24 = vshrl.u32 %v6502_v59, 16  ;;  %v1886_v57 = vrot.slane %v1884_v8, 1  ;;  %v6551_v21 = vld [vmem:[#allocation2 + $0x10] sm:$0xf]  ;;  %v864_v42 = vadd.f32 %v6357_v55, %v8120_v52  ;;  %v8122_v55 = vld [vmem:[#allocation11_spill] sm:$0xff] }
 0x157   : > { %1727 = vst.msk [vmem:[#allocation2 + $0x20] sm:$0xf] %vm1601_vm6, %v4898_v49  ;;  %v4901_v48 = vpack.c.bf16 %v1559_v26, %v1559_v26  ;;  %v1557_v44 = vmax.f32 %v1526_v54, 0.0  ;;  %v1531_v4 = vadd.f32 %v6395_v36, %v1493_v6  ;;  %v1491_v7 = vadd.f32 %v1401_v27, %v1132_v62  ;;  %5347 = vmatmul.mubr.msk.bf16.vlgmr.msra.gmra.mxu1 %vm2008_vm7, %v6489_v17  ;;  %v8123_v6 = vld [vmem:[#allocation32_spill] sm:$0xff] }
 0x158   : > { %v5293_v33 = vpop.f32.mrf.mxu1  ;;  %v1881_v37 = vrot.slane %v1879_v31, 1  ;;  %v6530_v50 = vld [vmem:[#allocation2 + $0x1c] sm:$0xf]  ;;  %5413 = vmatpush3.bf16.msra.mxu1 %v6443_v16  ;;  %v856_v18 = vadd.f32 %v8123_v6, %v8122_v55  ;;  %v1888_v29 = vshrl.u32 %v6489_v17, 16  ;;  %v8126_v52 = vld [vmem:[#allocation12_spill] sm:$0xff] }
 0x159   : > { %1730 = vst.msk [vmem:[#allocation2 + $0x2c] sm:$0xf] %vm1601_vm6, %v4901_v48  ;;  %v4899_v62 = vpack.c.bf16 %v1557_v44, %v1557_v44  ;;  %v1562_v35 = vmax.f32 %v1531_v4, 0.0  ;;  %v1529_v56 = vadd.f32 %v6395_v36, %v1491_v7  ;;  %v1494_v14 = vadd.f32 %v5293_v33, %v1135_v23  ;;  %5623 = vmatprep.subr.msk.bf16.mxu1 %vm2057_vm2, %v6518_v12  ;;  %v8124_v44 = vld [vmem:[#allocation33_spill] sm:$0xff] }
 0x15a   : > { %v1404_v1 = vpop.f32.mrf.mxu1  ;;  %v1882_v3 = vor.u32 %v1881_v37, %v1877_v24  ;;  %v6542_v28 = vld [vmem:[#allocation2 + $0x14] sm:$0xf]  ;;  %v6546_v16 = vcombine.low %v6535_v19, %v6530_v50  ;;  %v6580_v4 = vadd.f32 %v8124_v44, %v864_v42  ;;  %v1890_v7 = vor.u32 %v1888_v29, %v1886_v57  ;;  %v8127_v42 = vld [vmem:[#allocation34_spill] sm:$0xff] }
 0x15b   : > { %1728 = vst.msk [vmem:[#allocation2 + $0x24] sm:$0xf] %vm1601_vm6, %v4899_v62  ;;  %v4904_v23 = vpack.c.bf16 %v1562_v35, %v1562_v35  ;;  %v1560_v20 = vmax.f32 %v1529_v56, 0.0  ;;  %v1532_v53 = vadd.f32 %v6395_v36, %v1494_v14  ;;  %v1492_v61 = vadd.f32 %v1404_v1, %v6465_v32  ;;  %v8132_v44 = vld [vmem:[#allocation37_spill] sm:$0xff] }
 0x15c   : > { %v5296_v10 = vpop.f32.mrf.mxu1  ;;  %v1887_v2 = vsel %vm344_vm0, %v1882_v3, %v1886_v57  ;;  %v6561_v47 = vcombine.low %v6551_v21, %v6542_v28  ;;  %v1900_v27 = vshll.u32 %v6546_v16, 16  ;;  %v6588_v62 = vld [vmem:[#allocation2 + $0x28] sm:$0xf]  ;;  %v6602_v57 = vld [vmem:[%s8030_s3 + $0x10] sm:$0xf]  ;;  %v867_v5 = vadd.f32 %v8127_v42, %v8126_v52 }
 0x15d   : > { %1733 = vst.msk [vmem:[#allocation2 + $0x38] sm:$0xf] %vm1601_vm6, %v4904_v23  ;;  %v4902_v49 = vpack.c.bf16 %v1560_v20, %v1560_v20  ;;  %v1563_v26 = vmax.f32 %v1532_v53, 0.0  ;;  %v1530_v32 = vadd.f32 %v6395_v36, %v1492_v61  ;;  %v1497_v54 = vadd.f32 %v5296_v10, %v6478_v9  ;;  %5312 = vmatprep.mubr.msk.bf16.mxu0 %vm2008_vm7, %v1887_v2  ;;  %v8128_v10 = vld [vmem:[#allocation35_spill] sm:$0xff] }
 0x15e   : > { %5350 = vmatprep.mubr.msk.bf16.mxu1 %vm2008_vm7, %v6561_v47  ;;  %v1417_v38 = vpop.f32.mrf.mxu1  ;;  %v1892_v25 = vshll.u32 %v6561_v47, 16  ;;  %v1896_v15 = vshrl.u32 %v6561_v47, 16  ;;  %v1902_v30 = vrot.slane %v1900_v27, 1  ;;  %v6609_v61 = vld [vmem:[#allocation2 + $0x20] sm:$0xf]  ;;  %v6614_v2 = vadd.f32 %v8128_v10, %v856_v18  ;;  %v8131_v18 = vld [vmem:[#allocation36_spill] sm:$0xff] }
 0x15f   : > { %1731 = vst.msk [vmem:[#allocation2 + $0x30] sm:$0xf] %vm1601_vm6, %v4902_v49  ;;  %v4905_v31 = vpack.c.bf16 %v1563_v26, %v1563_v26  ;;  %v1561_v8 = vmax.f32 %v1530_v32, 0.0  ;;  %v1535_v9 = vadd.f32 %v6395_v36, %v1497_v54  ;;  %v1495_v48 = vadd.f32 %v1417_v38, %v6481_v40  ;;  %5351 = vmatmul.mubr.msk.bf16.gmra.mxu1 %vm2008_vm7, %v6546_v16 }
 0x160   : > { %v5297_v22 = vpop.f32.mrf.mxu1  ;;  %v1894_v39 = vrot.slane %v1892_v25, 1  ;;  %v6583_v51 = vld [vmem:[#allocation2 + $0x2c] sm:$0xf]  ;;  %v1904_v25 = vshrl.u32 %v6546_v16, 16 }
 0x161   : > { %1734 = vst.msk [vmem:[#allocation2 + $0x3c] sm:$0xf] %vm1601_vm6, %v4905_v31  ;;  %v4903_v33 = vpack.c.bf16 %v1561_v8, %v1561_v8  ;;  %v1566_v24 = vmax.f32 %v1535_v9, 0.0  ;;  %v1533_v37 = vadd.f32 %v6395_v36, %v1495_v48  ;;  %v1498_v40 = vadd.f32 %v5297_v22, %v6494_v46 }
 0x162   : > { %v1420_v35 = vpop.f32.mrf.mxu1  ;;  %v6591_v56 = vsel %vm344_vm0, %v1890_v7, %v1894_v39  ;;  %v1898_v14 = vor.u32 %v1896_v15, %v1894_v39  ;;  %v6593_v1 = vld [vmem:[#allocation2 + $0x24] sm:$0xf]  ;;  %v6597_v3 = vcombine.low %v6588_v62, %v6583_v51  ;;  %v1147_v7 = vadd.f32 %v8132_v44, %v867_v5 }
 0x163   : > { %8125 = vst [vmem:[#allocation17_spill] sm:$0xff] %v6591_v56  ;;  %1732 = vst.msk [vmem:[#allocation2 + $0x34] sm:$0xf] %vm1601_vm6, %v4903_v33  ;;  %v4908_v46 = vpack.c.bf16 %v1566_v24, %v1566_v24  ;;  %v1564_v23 = vmax.f32 %v1533_v37, 0.0  ;;  %v1536_v20 = vadd.f32 %v6395_v36, %v1498_v40  ;;  %v1496_v53 = vadd.f32 %v1420_v35, %v6497_v58 }
 0x164   : > { %5313 = vmatmul.mubr.msk.bf16.vlgmr.msra.gmra.mxu0 %vm2008_vm7, %v6591_v56  ;;  %v5300_v49 = vpop.f32.mrf.mxu1  ;;  %v6618_v26 = vsel %vm344_vm0, %v1898_v14, %v1902_v30  ;;  %v6622_v58 = vcombine.low %v6609_v61, %v6593_v1  ;;  %v1916_v31 = vshll.u32 %v6597_v3, 16  ;;  %v1906_v39 = vor.u32 %v1904_v25, %v1902_v30  ;;  %v6650_v14 = vld [vmem:[#allocation2 + $0x38] sm:$0xf] }
 0x165   : > { %5379 = vmatpush3.bf16.msra.mxu0 %v6424_v43  ;;  %8129 = vst [vmem:[#allocation4_spill] sm:$0xff] %v6618_v26  ;;  %1737 = vst.msk [vmem:[#allocation2 + $0x48] sm:$0xf] %vm1601_vm6, %v4908_v46  ;;  %v4906_v32 = vpack.c.bf16 %v1564_v23, %v1564_v23  ;;  %v1567_v54 = vmax.f32 %v1536_v20, 0.0  ;;  %v1534_v55 = vadd.f32 %v6395_v36, %v1496_v53  ;;  %5316 = vmatprep.mubr.msk.bf16.mxu0 %vm2008_vm7, %v6618_v26  ;;  %v8130_v43 = vld [vmem:[#allocation13_spill] sm:$0xff] }
 0x166   : > { %v1501_v6 = vadd.f32 %v5300_v49, %v6507_v60  ;;  %5622 = vmatprep.subr.msk.bf16.mxu0 %vm2057_vm2, %v6602_v57  ;;  %v859_v29 = vadd.f32 %v8131_v18, %v8130_v43  ;;  %5354 = vmatprep.mubr.msk.bf16.mxu1 %vm2008_vm7, %v6622_v58  ;;  %v1433_v38 = vpop.f32.mrf.mxu1  ;;  %v1908_v27 = vshll.u32 %v6622_v58, 16  ;;  %v1912_v33 = vshrl.u32 %v6622_v58, 16  ;;  %v6666_v49 = vld [vmem:[#allocation2 + $0x30] sm:$0xf] }
 0x167   : > { %1735 = vst.msk [vmem:[#allocation2 + $0x40] sm:$0xf] %vm1601_vm6, %v4906_v32  ;;  %v4909_v60 = vpack.c.bf16 %v1567_v54, %v1567_v54  ;;  %v1565_v8 = vmax.f32 %v1534_v55, 0.0  ;;  %v1499_v48 = vadd.f32 %v1433_v38, %v6525_v34  ;;  %5355 = vmatmul.mubr.msk.bf16.gmra.mxu1 %vm2008_vm7, %v6597_v3  ;;  %v1918_v20 = vrot.slane %v1916_v31, 1  ;;  %v8134_v32 = vld [vmem:[#allocation14_spill] sm:$0xff] }
 0x168   : > { %v1539_v9 = vadd.f32 %v6395_v36, %v1501_v6  ;;  %v5301_v22 = vpop.f32.mrf.mxu1  ;;  %v1910_v15 = vrot.slane %v1908_v27, 1  ;;  %v6645_v24 = vld [vmem:[#allocation2 + $0x3c] sm:$0xf]  ;;  %v8136_v6 = vld [vmem:[#allocation39_spill] sm:$0xff]  ;;  %v1920_v44 = vshrl.u32 %v6597_v3, 16 }
 0x169   : > { %1738 = vst.msk [vmem:[#allocation2 + $0x4c] sm:$0xf] %vm1601_vm6, %v4909_v60  ;;  %v4907_v37 = vpack.c.bf16 %v1565_v8, %v1565_v8  ;;  %v1537_v35 = vadd.f32 %v6395_v36, %v1499_v48  ;;  %v1502_v34 = vadd.f32 %v5301_v22, %v6540_v41  ;;  %v6659_v52 = vcombine.low %v6650_v14, %v6645_v24  ;;  %v8135_v54 = vld [vmem:[#allocation38_spill] sm:$0xff]  ;;  %v8139_v8 = vld [vmem:[#allocation40_spill] sm:$0xff] }
 0x16a   : > { %v1570_v40 = vmax.f32 %v1539_v9, 0.0  ;;  %v1436_v46 = vpop.f32.mrf.mxu1  ;;  %v6653_v23 = vsel %vm344_vm0, %v1906_v39, %v1910_v15  ;;  %v1914_v30 = vor.u32 %v1912_v33, %v1910_v15  ;;  %v6655_v53 = vld [vmem:[#allocation2 + $0x34] sm:$0xf]  ;;  %v880_v55 = vadd.f32 %v8135_v54, %v8134_v32 }
 0x16b   : > { %8133 = vst [vmem:[#allocation19_spill] sm:$0xff] %v6653_v23  ;;  %1736 = vst.msk [vmem:[#allocation2 + $0x44] sm:$0xf] %vm1601_vm6, %v4907_v37  ;;  %v1568_v5 = vmax.f32 %v1537_v35, 0.0  ;;  %v1540_v41 = vadd.f32 %v6395_v36, %v1502_v34  ;;  %v1500_v10 = vadd.f32 %v1436_v46, %v6556_v63  ;;  %v1145_v43 = vadd.f32 %v8136_v6, %v859_v29  ;;  %v8138_v29 = vld [vmem:[#allocation15_spill] sm:$0xff] }
 0x16c   : > { %v4912_v42 = vpack.c.bf16 %v1570_v40, %v1570_v40  ;;  %5317 = vmatmul.mubr.msk.bf16.gmra.mxu0 %vm2008_vm7, %v6653_v23  ;;  %v5304_v18 = vpop.f32.mrf.mxu1  ;;  %v6672_v38 = vsel %vm344_vm0, %v1914_v30, %v1918_v20  ;;  %v6676_v25 = vcombine.low %v6666_v49, %v6655_v53  ;;  %v872_v9 = vadd.f32 %v8139_v8, %v8138_v29  ;;  %v8141_v29 = vld [vmem:[#allocation41_spill] sm:$0xff] }
 0x16d   : > { %8137 = vst [vmem:[#allocation5_spill] sm:$0xff] %v6672_v38  ;;  %v4910_v63 = vpack.c.bf16 %v1568_v5, %v1568_v5  ;;  %v1571_v27 = vmax.f32 %v1540_v41, 0.0  ;;  %v1538_v31 = vadd.f32 %v6395_v36, %v1500_v10  ;;  %v1505_v60 = vadd.f32 %v5304_v18, %v6580_v4  ;;  %5320 = vmatprep.mubr.msk.bf16.mxu0 %vm2008_vm7, %v6672_v38 }
 0x16e   : > { %1741 = vst.msk [vmem:[#allocation2 + $0x58] sm:$0xf] %vm1601_vm6, %v4912_v42  ;;  %5358 = vmatprep.mubr.msk.bf16.mxu1 %vm2008_vm7, %v6676_v25  ;;  %v1449_v48 = vpop.f32.mrf.mxu1  ;;  %v1924_v22 = vshll.u32 %v6676_v25, 16  ;;  %v1932_v39 = vshll.u32 %v6659_v52, 16  ;;  %v1150_v40 = vadd.f32 %v6381_v13, %v880_v55  ;;  %v1922_v34 = vor.u32 %v1920_v44, %v1918_v20  ;;  %v8143_v44 = vld [vmem:[#allocation42_spill] sm:$0xff] }
 0x16f   : > { %1739 = vst.msk [vmem:[#allocation2 + $0x50] sm:$0xf] %vm1601_vm6, %v4910_v63  ;;  %v4913_v15 = vpack.c.bf16 %v1571_v27, %v1571_v27  ;;  %v1569_v4 = vmax.f32 %v1538_v31, 0.0  ;;  %v1543_v33 = vadd.f32 %v6395_v36, %v1505_v60  ;;  %v1503_v37 = vadd.f32 %v1449_v48, %v6614_v2  ;;  %5359 = vmatmul.mubr.msk.bf16.gmra.mxu1 %vm2008_vm7, %v6659_v52  ;;  %v6701_v2 = vld [vmem:[#allocation2 + $0x48] sm:$0xf]  ;;  %v8142_v48 = vld [vmem:[#allocation16_spill] sm:$0xff] }
 0x170   : > { %v5305_v35 = vpop.f32.mrf.mxu1  ;;  %v1926_v46 = vrot.slane %v1924_v22, 1  ;;  %v1928_v30 = vshrl.u32 %v6676_v25, 16  ;;  %v6697_v42 = vld [vmem:[#allocation2 + $0x4c] sm:$0xf]  ;;  %v1934_v20 = vrot.slane %v1932_v39, 1  ;;  %v1148_v8 = vadd.f32 %v8141_v29, %v872_v9 }
 0x171   : > { %1742 = vst.msk [vmem:[#allocation2 + $0x5c] sm:$0xf] %vm1601_vm6, %v4913_v15  ;;  %v4911_v5 = vpack.c.bf16 %v1569_v4, %v1569_v4  ;;  %v1574_v41 = vmax.f32 %v1543_v33, 0.0  ;;  %v1541_v10 = vadd.f32 %v6395_v36, %v1503_v37  ;;  %v1506_v32 = vadd.f32 %v5305_v35, %v1147_v7  ;;  %v6716_v60 = vld [vmem:[#allocation2 + $0x40] sm:$0xf]  ;;  %v1109_v33 = vpop.f32.mrf.mxu0 }
 0x172   : > { %v1452_v54 = vpop.f32.mrf.mxu1  ;;  %v6704_v6 = vsel %vm344_vm0, %v1922_v34, %v1926_v46  ;;  %v1930_v13 = vor.u32 %v1928_v30, %v1926_v46  ;;  %v6706_v55 = vld [vmem:[#allocation2 + $0x44] sm:$0xf]  ;;  %v6710_v18 = vcombine.low %v6701_v2, %v6697_v42  ;;  %v875_v22 = vadd.f32 %v8143_v44, %v8142_v48 }
 0x173   : > { %8140 = vst [vmem:[#allocation21_spill] sm:$0xff] %v6704_v6  ;;  %1740 = vst.msk [vmem:[#allocation2 + $0x54] sm:$0xf] %vm1601_vm6, %v4911_v5  ;;  %v4916_v63 = vpack.c.bf16 %v1574_v41, %v1574_v41  ;;  %v1572_v27 = vmax.f32 %v1541_v10, 0.0  ;;  %v1544_v7 = vadd.f32 %v6395_v36, %v1506_v32  ;;  %v1504_v31 = vadd.f32 %v1452_v54, %v1145_v43 }
 0x174   : > { %5321 = vmatmul.mubr.msk.bf16.gmra.mxu0 %vm2008_vm7, %v6704_v6  ;;  %v5308_v39 = vpop.f32.mrf.mxu1  ;;  %v6722_v15 = vsel %vm344_vm0, %v1930_v13, %v1934_v20  ;;  %v6726_v4 = vcombine.low %v6716_v60, %v6706_v55  ;;  %v1936_v46 = vshrl.u32 %v6659_v52, 16  ;;  %v1948_v5 = vshll.u32 %v6710_v18, 16 }
 0x175   : > { %8144 = vst [vmem:[#allocation18_spill] sm:$0xff] %v6722_v15  ;;  %1745 = vst.msk [vmem:[#allocation2 + $0x68] sm:$0xf] %vm1601_vm6, %v4916_v63  ;;  %v4914_v43 = vpack.c.bf16 %v1572_v27, %v1572_v27  ;;  %v1575_v37 = vmax.f32 %v1544_v7, 0.0  ;;  %v1542_v35 = vadd.f32 %v6395_v36, %v1504_v31  ;;  %v1509_v34 = vadd.f32 %v5308_v39, %v1150_v40  ;;  %v6742_v31 = vld [vmem:[#allocation2 + $0x58] sm:$0xf] }
 0x176   : > { %5324 = vmatprep.mubr.msk.bf16.mxu0 %vm2008_vm7, %v6722_v15  ;;  %5362 = vmatprep.mubr.msk.bf16.mxu1 %vm2008_vm7, %v6726_v4  ;;  %v1465_v9 = vpop.f32.mrf.mxu1  ;;  %v1940_v30 = vshll.u32 %v6726_v4, 16  ;;  %v1149_v54 = vadd.f32 %v1109_v33, %v875_v22  ;;  %v1938_v63 = vor.u32 %v1936_v46, %v1934_v20  ;;  %v1944_v7 = vshrl.u32 %v6726_v4, 16  ;;  %v1752_v39 = vld [vmem:[#allocation2 + $0x78] sm:$0xf] }
 0x177   : > { %1743 = vst.msk [vmem:[#allocation2 + $0x60] sm:$0xf] %vm1601_vm6, %v4914_v43  ;;  %v4917_v41 = vpack.c.bf16 %v1575_v37, %v1575_v37  ;;  %v1573_v10 = vmax.f32 %v1542_v35, 0.0  ;;  %v1547_v40 = vadd.f32 %v6395_v36, %v1509_v34  ;;  %v1507_v32 = vadd.f32 %v1465_v9, %v1148_v8  ;;  %5363 = vmatmul.mubr.msk.bf16.gmra.mxu1 %vm2008_vm7, %v6710_v18  ;;  %v6761_v34 = vld [vmem:[#allocation2 + $0x50] sm:$0xf] }
 0x178   : > { %v5309_v13 = vpop.f32.mrf.mxu1  ;;  %v1942_v27 = vrot.slane %v1940_v30, 1  ;;  %v6744_v29 = vld [vmem:[#allocation2 + $0x5c] sm:$0xf]  ;;  %v1950_v35 = vrot.slane %v1948_v5, 1  ;;  %v1952_v5 = vshrl.u32 %v6710_v18, 16 }
 0x179   : > { %1746 = vst.msk [vmem:[#allocation2 + $0x6c] sm:$0xf] %vm1601_vm6, %v4917_v41  ;;  %v4915_v48 = vpack.c.bf16 %v1573_v10, %v1573_v10  ;;  %v1578_v44 = vmax.f32 %v1547_v40, 0.0  ;;  %v1545_v8 = vadd.f32 %v6395_v36, %v1507_v32  ;;  %v6750_v43 = vcombine.low %v6742_v31, %v6744_v29 }
 0x17a   : > { %v1468_v22 = vpop.f32.mrf.mxu1  ;;  %v6759_v33 = vsel %vm344_vm0, %v1938_v63, %v1942_v27  ;;  %v1946_v37 = vor.u32 %v1944_v7, %v1942_v27  ;;  %v6763_v9 = vld [vmem:[#allocation2 + $0x54] sm:$0xf] }
 0x17b   : > { %8147 = vst [vmem:[#allocation20_spill] sm:$0xff] %v6759_v33  ;;  %1744 = vst.msk [vmem:[#allocation2 + $0x64] sm:$0xf] %vm1601_vm6, %v4915_v48  ;;  %v4920_v46 = vpack.c.bf16 %v1578_v44, %v1578_v44  ;;  %v1576_v30 = vmax.f32 %v1545_v8, 0.0  ;;  %v1508_v41 = vadd.f32 %v1468_v22, %v1149_v54  ;;  %v6770_v10 = vcombine.low %v6761_v34, %v6763_v9 }
 0x17c   : > { %5325 = vmatmul.mubr.msk.bf16.gmra.mxu0 %vm2008_vm7, %v6759_v33  ;;  %v6773_v40 = vsel %vm344_vm0, %v1946_v37, %v1950_v35  ;;  %v1964_v32 = vshll.u32 %v6750_v43, 16  ;;  %v1954_v48 = vor.u32 %v1952_v5, %v1950_v35  ;;  %v6789_v8 = vld [vmem:[#allocation2 + $0x68] sm:$0xf]  ;;  %v6804_v5 = vld [vmem:[#allocation2 + $0x80] sm:$0xf] }
 0x17d   : > { %8148 = vst [vmem:[#allocation6_spill] sm:$0xff] %v6773_v40  ;;  %v1753_v13 = vsel %vm6754_vm9, %v4920_v46, %v1752_v39  ;;  %v4918_v63 = vpack.c.bf16 %v1576_v30, %v1576_v30  ;;  %v1546_v54 = vadd.f32 %v6395_v36, %v1508_v41  ;;  %5328 = vmatprep.mubr.msk.bf16.mxu0 %vm2008_vm7, %v6773_v40  ;;  %v1956_v27 = vshll.u32 %v6770_v10, 16 }
 0x17e   : > { %5366 = vmatprep.mubr.msk.bf16.mxu1 %vm2008_vm7, %v6770_v10  ;;  %1754 = vst [vmem:[#allocation2 + $0x78] sm:$0xf] %v1753_v13  ;;  %v1960_v39 = vshrl.u32 %v6770_v10, 16  ;;  %v1966_v36 = vrot.slane %v1964_v32, 1  ;;  %v6800_v41 = vld [vmem:[#allocation2 + $0x60] sm:$0xf] }
 0x17f   : > { %1747 = vst.msk [vmem:[#allocation2 + $0x70] sm:$0xf] %vm1601_vm6, %v4918_v63  ;;  %v1577_v7 = vmax.f32 %v1546_v54, 0.0  ;;  %5367 = vmatmul.mubr.msk.bf16.gmra.mxu1 %vm2008_vm7, %v6750_v43  ;;  %v1958_v44 = vrot.slane %v1956_v27, 1  ;;  %v6820_v63 = vcombine.low %v6542_v28, %v6535_v19  ;;  %v1968_v54 = vshrl.u32 %v6750_v43, 16 }
 0x180   : > { %v6791_v20 = vld [vmem:[#allocation2 + $0x6c] sm:$0xf] }
 0x181   : > { %v4919_v22 = vpack.c.bf16 %v1577_v7, %v1577_v7  ;;  %v6794_v37 = vsel %vm344_vm0, %v1954_v48, %v1958_v44  ;;  %v1962_v46 = vor.u32 %v1960_v39, %v1958_v44  ;;  %v6798_v30 = vcombine.low %v6789_v8, %v6791_v20  ;;  %v6833_v39 = vld [vmem:[#allocation2 + $0x7c] sm:$0xf] }
 0x182   : > { %8149 = vst [vmem:[#allocation23_spill] sm:$0xff] %v6794_v37  ;;  %v6802_v35 = vld [vmem:[#allocation2 + $0x64] sm:$0xf]  ;;  %v6829_v48 = vcombine.low %v6804_v5, %v6804_v5  ;;  %v1970_v19 = vor.u32 %v1968_v54, %v1966_v36  ;;  %v2978_v40 = vshll.u32 %v6820_v63, 16 }
 0x183   : > { %1748 = vst.msk [vmem:[#allocation2 + $0x74] sm:$0xf] %vm1601_vm6, %v4919_v22  ;;  %v6810_v32 = vsel %vm344_vm0, %v1962_v46, %v1966_v36  ;;  %v6814_v13 = vcombine.low %v6800_v41, %v6802_v35  ;;  %v1980_v7 = vshll.u32 %v6798_v30, 16 }
 0x184   : > { %5329 = vmatmul.mubr.msk.bf16.gmra.mxu0 %vm2008_vm7, %v6794_v37  ;;  %8150 = vst [vmem:[#allocation22_spill] sm:$0xff] %v6810_v32  ;;  %8151 = vst [vmem:[#allocation24_spill] sm:$0xff] %v6829_v48  ;;  %v2004_v46 = vshll.u32 %v6829_v48, 16  ;;  %v6845_v37 = vcombine.low %v6485_v45, %v6475_v0  ;;  %v6905_v48 = vcombine.low %v6655_v53, %v6650_v14 }
 0x185   : > { %5332 = vmatprep.mubr.msk.bf16.mxu0 %vm2008_vm7, %v6810_v32  ;;  %5370 = vmatprep.mubr.msk.bf16.mxu1 %vm2008_vm7, %v6814_v13  ;;  %v1972_v27 = vshll.u32 %v6814_v13, 16  ;;  %v6831_v44 = vld [vmem:[#allocation2 + $0x78] sm:$0xf]  ;;  %v1976_v22 = vshrl.u32 %v6814_v13, 16  ;;  %v6841_v32 = vcombine.low %v6471_v11, %v6551_v21  ;;  %v1982_v36 = vrot.slane %v1980_v7, 1 }
 0x186   : > { %v6853_v54 = vcombine.low %v6831_v44, %v6833_v39  ;;  %v6868_v45 = vrot.slane %v2004_v46, 1  ;;  %v2980_v21 = vrot.slane %v2978_v40, 1  ;;  %v2421_v7 = vrot.slane %v6502_v59, 1 }
 0x187   : > { %5371 = vmatmul.mubr.msk.bf16.gmra.mxu1 %vm2008_vm7, %v6798_v30  ;;  %v1974_v28 = vrot.slane %v1972_v27, 1  ;;  %v6855_v27 = vld [vmem:[#allocation2 + $0x70] sm:$0xf]  ;;  %v2965_v40 = vshrl.u32 %v6845_v37, 16  ;;  %v2975_v38 = vshrl.u32 %v6841_v32, 16  ;;  %v6923_v14 = vcombine.low %v6645_v24, %v6716_v60 }
 0x188   : > { %v1996_v46 = vshll.u32 %v6853_v54, 16  ;;  %v3409_v24 = vsel %vm2057_vm2, %v6518_v12, 0 }
 0x189   : > { %v6849_v33 = vsel %vm344_vm0, %v1970_v19, %v1974_v28  ;;  %v1978_v15 = vor.u32 %v1976_v22, %v1974_v28  ;;  %v2967_v19 = vshll.u32 %v6845_v37, 16  ;;  %v2971_v28 = vshll.u32 %v6841_v32, 16 }
 0x18a   : > { %8152 = vst [vmem:[#allocation7_spill] sm:$0xff] %v6849_v33  ;;  %v6857_v6 = vld [vmem:[#allocation2 + $0x74] sm:$0xf] }
 0x18b   : > { %v6862_v11 = vsel %vm344_vm0, %v1978_v15, %v1982_v36  ;;  %v6866_v0 = vcombine.low %v6855_v27, %v6857_v6  ;;  %v1984_v15 = vshrl.u32 %v6798_v30, 16  ;;  %v2969_v59 = vrot.slane %v2967_v19, 1 }
 0x18c   : > { %5333 = vmatmul.mubr.msk.bf16.gmra.mxu0 %vm2008_vm7, %v6849_v33  ;;  %8153 = vst [vmem:[#allocation25_spill] sm:$0xff] %v6862_v11  ;;  %v2973_v33 = vrot.slane %v2971_v28, 1 }
 0x18d   : > { %8154 = vst [vmem:[#allocation26_spill] sm:$0xff] %v6866_v0  ;;  %5336 = vmatprep.mubr.msk.bf16.mxu0 %vm2008_vm7, %v6862_v11  ;;  %5374 = vmatprep.mubr.msk.bf16.mxu1 %vm2008_vm7, %v6866_v0  ;;  %v1988_v22 = vshll.u32 %v6866_v0, 16  ;;  %v6882_v11 = vcombine.low %v6530_v50, %v6609_v61  ;;  %v1986_v23 = vor.u32 %v1984_v15, %v1982_v36  ;;  %v1992_v56 = vshrl.u32 %v6866_v0, 16 }
 0x18e   : > { %v6894_v50 = vcombine.low %v6593_v1, %v6588_v62  ;;  %v6898_v61 = vcombine.low %v6583_v51, %v6666_v49  ;;  %v2970_v19 = vor.u32 %v2969_v59, %v2965_v40  ;;  %v2977_v28 = vor.u32 %v2975_v38, %v2973_v33 }
 0x18f   : > { %5375 = vmatmul.mubr.msk.bf16.gmra.mxu1 %vm2008_vm7, %v6853_v54  ;;  %v1990_v26 = vrot.slane %v1988_v22, 1  ;;  %v1998_v22 = vrot.slane %v1996_v46, 1  ;;  %v2982_v51 = vshrl.u32 %v6820_v63, 16  ;;  %v2985_v1 = vshll.u32 %v6882_v11, 16 }
 0x190   : > { %5414 = vmatprep.mubr.msk.bf16.mxu1 %vm2008_vm7, %v6845_v37  ;;  %v6908_v0 = vsel %vm344_vm0, %v2970_v19, %v2973_v33  ;;  %v6911_v62 = vsel %vm344_vm0, %v2977_v28, %v2980_v21  ;;  %v2992_v38 = vshll.u32 %v6894_v50, 16  ;;  %v2999_v33 = vshll.u32 %v6898_v61, 16 }
 0x191   : > { %v6901_v36 = vsel %vm344_vm0, %v1986_v23, %v1990_v26  ;;  %v1994_v15 = vor.u32 %v1992_v56, %v1990_v26  ;;  %v2000_v26 = vshrl.u32 %v6853_v54, 16  ;;  %v2989_v23 = vshrl.u32 %v6882_v11, 16 }
 0x192   : > { %v2984_v53 = vor.u32 %v2982_v51, %v2980_v21  ;;  %v2987_v49 = vrot.slane %v2985_v1, 1  ;;  %v6934_v40 = vcombine.low %v6706_v55, %v6701_v2  ;;  %v2996_v60 = vshrl.u32 %v6894_v50, 16 }
 0x193   : > { %v6918_v56 = vsel %vm344_vm0, %v1994_v15, %v1998_v22  ;;  %v6930_v46 = vor.u32 %v2000_v26, %v1998_v22  ;;  %v2994_v19 = vrot.slane %v2992_v38, 1  ;;  %v3001_v28 = vrot.slane %v2999_v33, 1  ;;  %v6945_v15 = vld [vmem:[%s8030_s3 + $0x1c] sm:$0xf] }
 0x194   : > { %5337 = vmatmul.mubr.msk.bf16.gmra.mxu0 %vm2008_vm7, %v6901_v36  ;;  %v6940_v59 = vsel %vm344_vm0, %v2984_v53, %v2987_v49  ;;  %v2991_v21 = vor.u32 %v2989_v23, %v2987_v49  ;;  %v8155_v2 = vrot.slane %v6489_v17, 1  ;;  %v6954_v55 = vcombine.low %v6697_v42, %v6761_v34 }
 0x195   : > { %5340 = vmatprep.mubr.msk.bf16.mxu0 %vm2008_vm7, %v6918_v56  ;;  %v3003_v22 = vshrl.u32 %v6898_v61, 16  ;;  %v3006_v51 = vshll.u32 %v6905_v48, 16  ;;  %v6962_v1 = vcombine.low %v6763_v9, %v6742_v31  ;;  %v3013_v23 = vshll.u32 %v6923_v14, 16 }
 0x196   : > { %v2423_v12 = vsel %vm2420_vm10, %v2421_v7, %v8155_v2  ;;  %v6965_v26 = vsel %vm344_vm0, %v2991_v21, %v2994_v19  ;;  %v2998_v7 = vor.u32 %v2996_v60, %v2994_v19  ;;  %v2007_v42 = vsel %vm344_vm0, %v6930_v46, %v6868_v45 }
 0x197   : > { %5415 = vmatmul.mubr.msk.bf16.vlgmr.msra.gmra.mxu1 %vm2008_vm7, %v6841_v32  ;;  %v3005_v34 = vor.u32 %v3003_v22, %v3001_v28  ;;  %v3008_v53 = vrot.slane %v3006_v51, 1  ;;  %v3010_v49 = vshrl.u32 %v6905_v48, 16  ;;  %v3015_v9 = vrot.slane %v3013_v23, 1 }
 0x198   : > { %5418 = vmatprep.mubr.msk.bf16.mxu1 %vm2008_vm7, %v6820_v63  ;;  %5481 = vmatpush3.bf16.msra.mxu1 %v3409_v24  ;;  %v6975_v31 = vsel %vm344_vm0, %v2998_v7, %v3001_v28  ;;  %v3017_v38 = vshrl.u32 %v6923_v14, 16  ;;  %v3020_v33 = vshll.u32 %v6934_v40, 16  ;;  %v2424_v24 = vrot.slane %v6561_v47, 1 }
 0x199   : > { %5625 = vmatprep.subr.msk.bf16.mxu1 %vm2057_vm2, %v6945_v15  ;;  %v6983_v45 = vcombine.low %v6744_v29, %v6800_v41  ;;  %v6986_v60 = vsel %vm344_vm0, %v3005_v34, %v3008_v53  ;;  %v3012_v21 = vor.u32 %v3010_v49, %v3008_v53  ;;  %v3024_v2 = vshrl.u32 %v6934_v40, 16 }
 0x19a   : > { %v3019_v19 = vor.u32 %v3017_v38, %v3015_v9  ;;  %v3022_v28 = vrot.slane %v3020_v33, 1  ;;  %v3027_v22 = vshll.u32 %v6954_v55, 16  ;;  %v6993_v51 = vcombine.low %v6802_v35, %v6789_v8 }
 0x19b   : > { %v6997_v29 = vcombine.low %v6791_v20, %v6855_v27  ;;  %v7000_v41 = vsel %vm344_vm0, %v3012_v21, %v3015_v9  ;;  %v3031_v7 = vshrl.u32 %v6954_v55, 16  ;;  %v3034_v34 = vshll.u32 %v6962_v1, 16 }
 0x19c   : > { %5341 = vmatmul.mubr.msk.bf16.gmra.mxu0 %vm2008_vm7, %v2007_v42  ;;  %v3026_v23 = vor.u32 %v3024_v2, %v3022_v28  ;;  %v3029_v42 = vrot.slane %v3027_v22, 1  ;;  %v3130_v8 = vsel %vm2057_vm2, %v6602_v57, 0  ;;  %v7013_v20 = vcombine.low %v6857_v6, %v6831_v44 }
 0x19d   : > { %5380 = vmatprep.mubr.msk.bf16.mxu0 %vm2008_vm7, %v2423_v12  ;;  %v7004_v12 = vsel %vm344_vm0, %v3019_v19, %v3022_v28  ;;  %v3041_v35 = vshll.u32 %v6983_v45, 16  ;;  %v3036_v49 = vrot.slane %v3034_v34, 1  ;;  %v3038_v9 = vshrl.u32 %v6962_v1, 16  ;;  %v7033_v19 = vld [vmem:[%s8030_s3 + $0x18] sm:$0xf] }
 0x19e   : > { %v7019_v27 = vsel %vm344_vm0, %v3026_v23, %v3029_v42  ;;  %v3033_v53 = vor.u32 %v3031_v7, %v3029_v42  ;;  %v2426_v38 = vrot.slane %v6546_v16, 1  ;;  %v3045_v57 = vshrl.u32 %v6983_v45, 16 }
 0x19f   : > { %5419 = vmatmul.mubr.msk.bf16.gmra.mxu1 %vm2008_vm7, %v6882_v11  ;;  %v3043_v33 = vrot.slane %v3041_v35, 1  ;;  %v3048_v6 = vshll.u32 %v6993_v51, 16  ;;  %v8156_v44 = vrot.slane %v6489_v17, 1  ;;  %v3040_v2 = vor.u32 %v3038_v9, %v3036_v49 }
 0x1a0   : > { %5422 = vmatprep.mubr.msk.bf16.mxu1 %vm2008_vm7, %v6894_v50  ;;  %v7036_v28 = vsel %vm344_vm0, %v3033_v53, %v3036_v49  ;;  %v3055_v22 = vshll.u32 %v6997_v29, 16  ;;  %v7042_v7 = vsel %vm2420_vm10, %v2424_v24, %v2426_v38  ;;  %v3052_v34 = vshrl.u32 %v6993_v51, 16 }
 0x1a1   : > { %v7028_v21 = vsel %vm2420_vm10, %v8156_v44, %v2424_v24  ;;  %v3047_v23 = vor.u32 %v3045_v57, %v3043_v33  ;;  %v3050_v42 = vrot.slane %v3048_v6, 1  ;;  %v7048_v35 = vsel %vm344_vm0, %v3040_v2, %v3043_v33 }
 0x1a2   : > { %v3057_v53 = vrot.slane %v3055_v22, 1  ;;  %v3059_v49 = vshrl.u32 %v6997_v29, 16  ;;  %v3062_v9 = vshll.u32 %v7013_v20, 16  ;;  %v2430_v22 = vrot.slane %v6597_v3, 1 }
 0x1a3   : > { %v7055_v24 = vsel %vm344_vm0, %v3047_v23, %v3050_v42  ;;  %v3054_v57 = vor.u32 %v3052_v34, %v3050_v42  ;;  %v2432_v34 = vrot.slane %v6676_v25, 1 }
 0x1a4   : > { %5381 = vmatmul.mubr.msk.bf16.vlgmr.msra.gmra.mxu0 %vm2008_vm7, %v7028_v21  ;;  %v3061_v6 = vor.u32 %v3059_v49, %v3057_v53  ;;  %v7058_v44 = vrot.slane %v3062_v9, 1  ;;  %v2436_v9 = vrot.slane %v6726_v4, 1 }
 0x1a5   : > { %5447 = vmatpush3.bf16.msra.mxu0 %v3130_v8  ;;  %5384 = vmatprep.mubr.msk.bf16.mxu0 %vm2008_vm7, %v7042_v7  ;;  %v2428_v8 = vrot.slane %v6622_v58, 1  ;;  %v7063_v33 = vsel %vm344_vm0, %v3054_v57, %v3057_v53  ;;  %v7089_v53 = vsel %vm2420_vm10, %v2430_v22, %v2432_v34  ;;  %v2438_v57 = vrot.slane %v6710_v18, 1 }
 0x1a6   : > { %5624 = vmatprep.subr.msk.bf16.mxu0 %vm2057_vm2, %v7033_v19  ;;  %v7069_v2 = vsel %vm344_vm0, %v3061_v6, %v7058_v44  ;;  %8157 = vst [vmem:[#allocation8_spill] sm:$0xff] %v7089_v53 }
 0x1a7   : > { %5423 = vmatmul.mubr.msk.bf16.gmra.mxu1 %vm2008_vm7, %v6898_v61  ;;  %v7073_v23 = vsel %vm2420_vm10, %v2426_v38, %v2428_v8  ;;  %v7078_v42 = vsel %vm2420_vm10, %v2428_v8, %v2430_v22  ;;  %v2434_v38 = vrot.slane %v6659_v52, 1  ;;  %v7110_v6 = vsel %vm2420_vm10, %v2436_v9, %v2438_v57 }
 0x1a8   : > { %5426 = vmatprep.mubr.msk.bf16.mxu1 %vm2008_vm7, %v6905_v48  ;;  %8160 = vst [vmem:[#allocation9_spill] sm:$0xff] %v7110_v6  ;;  %v2440_v22 = vrot.slane %v6770_v10, 1 }
 0x1a9   : > { %v7094_v49 = vsel %vm2420_vm10, %v2432_v34, %v2434_v38  ;;  %v7105_v8 = vsel %vm2420_vm10, %v2434_v38, %v2436_v9  ;;  %v2442_v34 = vrot.slane %v6750_v43, 1 }
 0x1aa   : > { %8158 = vst [vmem:[#allocation27_spill] sm:$0xff] %v7094_v49  ;;  %8159 = vst [vmem:[#allocation28_spill] sm:$0xff] %v7105_v8  ;;  %v7121_v38 = vsel %vm2420_vm10, %v2438_v57, %v2440_v22  ;;  %v2446_v57 = vrot.slane %v6798_v30, 1 }
 0x1ab   : > { %8161 = vst [vmem:[#allocation29_spill] sm:$0xff] %v7121_v38  ;;  %v7126_v9 = vsel %vm2420_vm10, %v2440_v22, %v2442_v34 }
 0x1ac   : > { %5385 = vmatmul.mubr.msk.bf16.gmra.mxu0 %vm2008_vm7, %v7073_v23  ;;  %8162 = vst [vmem:[#allocation30_spill] sm:$0xff] %v7126_v9 }
 0x1ad   : > { %5388 = vmatprep.mubr.msk.bf16.mxu0 %vm2008_vm7, %v7078_v42 }
 0x1af   : > { %5427 = vmatmul.mubr.msk.bf16.gmra.mxu1 %vm2008_vm7, %v6923_v14 }
 0x1b0   : > { %5430 = vmatprep.mubr.msk.bf16.mxu1 %vm2008_vm7, %v6934_v40 }
 0x1b4   : > { %5389 = vmatmul.mubr.msk.bf16.gmra.mxu0 %vm2008_vm7, %v7089_v53  ;;  %v8165_v53 = vld [vmem:[#allocation26_spill] sm:$0xff] }
 0x1b5   : > { %5392 = vmatprep.mubr.msk.bf16.mxu0 %vm2008_vm7, %v7094_v49  ;;  %v3327_v49 = vrot.slane %v6845_v37, 1 }
 0x1b7   : > { %5431 = vmatmul.mubr.msk.bf16.gmra.mxu1 %vm2008_vm7, %v6954_v55 }
 0x1b8   : > { %5434 = vmatprep.mubr.msk.bf16.mxu1 %vm2008_vm7, %v6962_v1 }
 0x1bc   : > { %5393 = vmatmul.mubr.msk.bf16.gmra.mxu0 %vm2008_vm7, %v7105_v8 }
 0x1bd   : > { %5396 = vmatprep.mubr.msk.bf16.mxu0 %vm2008_vm7, %v7110_v6  ;;  %v2444_v6 = vrot.slane %v6814_v13, 1 }
 0x1bf   : > { %5435 = vmatmul.mubr.msk.bf16.gmra.mxu1 %vm2008_vm7, %v6983_v45  ;;  %v7137_v8 = vsel %vm2420_vm10, %v2442_v34, %v2444_v6  ;;  %v7142_v22 = vsel %vm2420_vm10, %v2444_v6, %v2446_v57  ;;  %v2448_v34 = vrot.slane %v8165_v53, 1  ;;  %v3330_v6 = vrot.slane %v6820_v63, 1 }
 0x1c0   : > { %5438 = vmatprep.mubr.msk.bf16.mxu1 %vm2008_vm7, %v6993_v51  ;;  %8163 = vst [vmem:[#allocation10_spill] sm:$0xff] %v7137_v8  ;;  %8164 = vst [vmem:[#allocation31_spill] sm:$0xff] %v7142_v22 }
 0x1c4   : > { %5397 = vmatmul.mubr.msk.bf16.gmra.mxu0 %vm2008_vm7, %v7121_v38  ;;  %v7149_v38 = vcombine.low %v6833_v39, %v6804_v5  ;;  %v3332_v39 = vrot.slane %v6882_v11, 1 }
 0x1c5   : > { %5400 = vmatprep.mubr.msk.bf16.mxu0 %vm2008_vm7, %v7126_v9  ;;  %v3328_v9 = vrot.slane %v6841_v32, 1  ;;  %v7158_v32 = vrot.slane %v6853_v54, 1 }
 0x1c7   : > { %5439 = vmatmul.mubr.msk.bf16.gmra.mxu1 %vm2008_vm7, %v6997_v29  ;;  %v7168_v37 = vsel %vm2420_vm10, %v2448_v34, %v7158_v32  ;;  %v3331_v63 = vsel %vm2420_vm10, %v3328_v9, %v3330_v6 }
 0x1c8   : > { %5442 = vmatprep.mubr.msk.bf16.mxu1 %vm2008_vm7, %v7013_v20 }
 0x1cc   : > { %5401 = vmatmul.mubr.msk.bf16.gmra.mxu0 %vm2008_vm7, %v7137_v8  ;;  %v3329_v8 = vsel %vm2420_vm10, %v3327_v49, %v3328_v9  ;;  %v3830_v49 = vsel %vm2057_vm2, %v6945_v15, 0  ;;  %v3336_v15 = vrot.slane %v6898_v61, 1  ;;  %v3340_v61 = vrot.slane %v6923_v14, 1 }
 0x1cd   : > { %5404 = vmatprep.mubr.msk.bf16.mxu0 %vm2008_vm7, %v7142_v22  ;;  %v7162_v22 = vsel %vm2420_vm10, %v2446_v57, %v2448_v34  ;;  %v3334_v34 = vrot.slane %v6894_v50, 1  ;;  %v3611_v50 = vsel %vm2057_vm2, %v7033_v19, 0 }
 0x1ce   : > { %8166 = vst [vmem:[#allocation11_spill] sm:$0xff] %v7162_v22 }
 0x1cf   : > { %5443 = vmatmul.mubr.msk.bf16.gmra.mxu1 %vm2008_vm7, %v7149_v38  ;;  %v3335_v9 = vsel %vm2420_vm10, %v3332_v39, %v3334_v34 }
 0x1d0   : > { %5482 = vmatprep.mubr.msk.bf16.mxu1 %vm2008_vm7, %v3329_v8  ;;  %v8167_v8 = vld [vmem:[#allocation24_spill] sm:$0xff] }
 0x1d1   : > { %v2452_v57 = vrot.slane %v8167_v8, 1 }
 0x1d3   : > { %v2453_v11 = vsel %vm2420_vm10, %v7158_v32, %v2452_v57 }
 0x1d4   : > { %5405 = vmatmul.mubr.msk.bf16.gmra.mxu0 %vm2008_vm7, %v7162_v22  ;;  %v3333_v22 = vsel %vm2420_vm10, %v3330_v6, %v3332_v39  ;;  %v8168_v6 = vmov 0   ;;  %v3342_v39 = vrot.slane %v6934_v40, 1  ;;  %v3348_v40 = vrot.slane %v6983_v45, 1 }
 0x1d5   : > { %5408 = vmatprep.mubr.msk.bf16.mxu0 %vm2008_vm7, %v7168_v37  ;;  %1606 = vst.msk [vmem:[#allocation2 + $0x88] sm:$0x1] %vm1605_vm11, %v8168_v6 }
 0x1d6   : > { %v3343_v14 = vsel %vm2420_vm10, %v3340_v61, %v3342_v39 }
 0x1d7   : > { %5483 = vmatmul.mubr.msk.bf16.vlgmr.msra.gmra.mxu1 %vm2008_vm7, %v3331_v63  ;;  %v3346_v63 = vrot.slane %v6962_v1, 1  ;;  %v3352_v1 = vrot.slane %v6997_v29, 1 }
 0x1d8   : > { %5486 = vmatprep.mubr.msk.bf16.mxu1 %vm2008_vm7, %v3333_v22  ;;  %5549 = vmatpush3.bf16.msra.mxu1 %v3830_v49  ;;  %v3337_v22 = vsel %vm2420_vm10, %v3334_v34, %v3336_v15  ;;  %v3338_v49 = vrot.slane %v6905_v48, 1 }
 0x1da   : > { %v3339_v19 = vsel %vm2420_vm10, %v3336_v15, %v3338_v49  ;;  %v3341_v48 = vsel %vm2420_vm10, %v3338_v49, %v3340_v61  ;;  %v8170_v49 = vld [vmem:[#allocation4_spill] sm:$0xff] }
 0x1dc   : > { %5409 = vmatmul.mubr.msk.bf16.gmra.mxu0 %vm2008_vm7, %v2453_v11  ;;  %v3066_v11 = vshrl.u32 %v7013_v20, 16 }
 0x1dd   : > { %5448 = vmatprep.mubr.msk.bf16.mxu0 %vm2008_vm7, %v6908_v0  ;;  %v7198_v0 = vld [vmem:[%s8030_s3 + $0x20] sm:$0xf] }
 0x1de   : > { %v3068_v34 = vor.u32 %v3066_v11, %v7058_v44  ;;  %v8171_v44 = vld [vmem:[#allocation19_spill] sm:$0xff] }
 0x1df   : > { %5487 = vmatmul.mubr.msk.bf16.gmra.mxu1 %vm2008_vm7, %v3335_v9  ;;  %v8169_v9 = vld [vmem:[#allocation17_spill] sm:$0xff] }
 0x1e0   : > { %5490 = vmatprep.mubr.msk.bf16.mxu1 %vm2008_vm7, %v3337_v22  ;;  %v3073_v22 = vshrl.u32 %v7149_v38, 16 }
 0x1e4   : > { %5449 = vmatmul.mubr.msk.bf16.vlgmr.msra.gmra.mxu0 %vm2008_vm7, %v6911_v62  ;;  %v3344_v62 = vrot.slane %v6954_v55, 1 }
 0x1e5   : > { %5515 = vmatpush3.bf16.msra.mxu0 %v3611_v50  ;;  %5452 = vmatprep.mubr.msk.bf16.mxu0 %vm2008_vm7, %v6940_v59 }
 0x1e6   : > { %5626 = vmatprep.subr.msk.bf16.mxu0 %vm2057_vm2, %v7198_v0  ;;  %v3345_v59 = vsel %vm2420_vm10, %v3342_v39, %v3344_v62  ;;  %v3347_v55 = vsel %vm2420_vm10, %v3344_v62, %v3346_v63  ;;  %v8172_v39 = vld [vmem:[#allocation5_spill] sm:$0xff] }
 0x1e7   : > { %5491 = vmatmul.mubr.msk.bf16.gmra.mxu1 %vm2008_vm7, %v3339_v19  ;;  %v8173_v62 = vld [vmem:[#allocation21_spill] sm:$0xff] }
 0x1e8   : > { %5494 = vmatprep.mubr.msk.bf16.mxu1 %vm2008_vm7, %v3341_v48 }
 0x1ec   : > { %5453 = vmatmul.mubr.msk.bf16.gmra.mxu0 %vm2008_vm7, %v6965_v26  ;;  %v3349_v26 = vsel %vm2420_vm10, %v3346_v63, %v3348_v40 }
 0x1ed   : > { %5456 = vmatprep.mubr.msk.bf16.mxu0 %vm2008_vm7, %v6975_v31  ;;  %v3350_v31 = vrot.slane %v6993_v51, 1  ;;  %v3356_v51 = vrot.slane %v7149_v38, 1 }
 0x1ef   : > { %5495 = vmatmul.mubr.msk.bf16.gmra.mxu1 %vm2008_vm7, %v3343_v14  ;;  %v3351_v45 = vsel %vm2420_vm10, %v3348_v40, %v3350_v31 }
 0x1f0   : > { %5498 = vmatprep.mubr.msk.bf16.mxu1 %vm2008_vm7, %v3345_v59  ;;  %v4038_v59 = vsel %vm2057_vm2, %v7198_v0, 0 }
 0x1f4   : > { %5457 = vmatmul.mubr.msk.bf16.gmra.mxu0 %vm2008_vm7, %v6986_v60  ;;  %v3353_v60 = vsel %vm2420_vm10, %v3350_v31, %v3352_v1 }
 0x1f5   : > { %5460 = vmatprep.mubr.msk.bf16.mxu0 %vm2008_vm7, %v7000_v41  ;;  %v3354_v41 = vrot.slane %v7013_v20, 1 }
 0x1f7   : > { %5499 = vmatmul.mubr.msk.bf16.gmra.mxu1 %vm2008_vm7, %v3347_v55  ;;  %v3357_v8 = vsel %vm2420_vm10, %v3354_v41, %v3356_v51 }
 0x1f8   : > { %5502 = vmatprep.mubr.msk.bf16.mxu1 %vm2008_vm7, %v3349_v26 }
 0x1fc   : > { %5461 = vmatmul.mubr.msk.bf16.gmra.mxu0 %vm2008_vm7, %v7004_v12  ;;  %v7245_v12 = vld [vmem:[#allocation2 + $0x84] sm:$0xf] }
 0x1fd   : > { %5464 = vmatprep.mubr.msk.bf16.mxu0 %vm2008_vm7, %v7019_v27  ;;  %v4768_v29 = vcombine.low %v7245_v12, %v7245_v12  ;;  %v3355_v27 = vsel %vm2420_vm10, %v3352_v1, %v3354_v41  ;;  %v8175_v41 = vld [vmem:[#allocation20_spill] sm:$0xff] }
 0x1ff   : > { %5503 = vmatmul.mubr.msk.bf16.gmra.mxu1 %vm2008_vm7, %v3351_v45  ;;  %v3358_v57 = vrot.slane %v4768_v29, 1 }
 0x200   : > { %5506 = vmatprep.mubr.msk.bf16.mxu1 %vm2008_vm7, %v3353_v60  ;;  %v8174_v60 = vld [vmem:[#allocation18_spill] sm:$0xff] }
 0x204   : > { %5465 = vmatmul.mubr.msk.bf16.gmra.mxu0 %vm2008_vm7, %v7036_v28  ;;  %v3069_v28 = vshll.u32 %v7149_v38, 16 }
 0x205   : > { %5468 = vmatprep.mubr.msk.bf16.mxu0 %vm2008_vm7, %v7048_v35  ;;  %v3359_v35 = vsel %vm2420_vm10, %v3356_v51, %v3358_v57 }
 0x206   : > { %v3071_v15 = vrot.slane %v3069_v28, 1 }
 0x207   : > { %5507 = vmatmul.mubr.msk.bf16.gmra.mxu1 %vm2008_vm7, %v3355_v27 }
 0x208   : > { %5510 = vmatprep.mubr.msk.bf16.mxu1 %vm2008_vm7, %v3357_v8  ;;  %v3075_v6 = vor.u32 %v3073_v22, %v3071_v15  ;;  %v8177_v22 = vld [vmem:[#allocation23_spill] sm:$0xff] }
 0x20c   : > { %5469 = vmatmul.mubr.msk.bf16.gmra.mxu0 %vm2008_vm7, %v7055_v24  ;;  %v3077_v24 = vshll.u32 %v4768_v29, 16 }
 0x20d   : > { %5472 = vmatprep.mubr.msk.bf16.mxu0 %vm2008_vm7, %v7063_v33  ;;  %v3072_v33 = vsel %vm344_vm0, %v3068_v34, %v3071_v15  ;;  %v8176_v15 = vld [vmem:[#allocation6_spill] sm:$0xff] }
 0x20e   : > { %v3079_v20 = vrot.slane %v3077_v24, 1 }
 0x20f   : > { %5511 = vmatmul.mubr.msk.bf16.gmra.mxu1 %vm2008_vm7, %v3359_v35 }
 0x210   : > { %5550 = vmatprep.mubr.msk.bf16.mxu1 %vm2008_vm7, %v8169_v9  ;;  %v3080_v61 = vsel %vm344_vm0, %v3075_v6, %v3079_v20 }
 0x214   : > { %5473 = vmatmul.mubr.msk.bf16.gmra.mxu0 %vm2008_vm7, %v7069_v2 }
 0x215   : > { %5476 = vmatprep.mubr.msk.bf16.mxu0 %vm2008_vm7, %v3072_v33 }
 0x217   : > { %v5348_v50 = vpop.f32.mrf.mxu1  ;;  %5551 = vmatmul.mubr.msk.bf16.vlgmr.msra.gmra.mxu1 %vm2008_vm7, %v8170_v49 }
 0x218   : > { %5554 = vmatprep.mubr.msk.bf16.mxu1 %vm2008_vm7, %v8171_v44 }
 0x219   : > { %v2291_v38 = vpop.f32.mrf.mxu1 }
 0x21b   : > { %v5349_v19 = vpop.f32.mrf.mxu1 }
 0x21c   : > { %5477 = vmatmul.mubr.msk.bf16.gmra.mxu0 %vm2008_vm7, %v3080_v61 }
 0x21d   : > { %5516 = vmatprep.mubr.msk.bf16.mxu0 %vm2008_vm7, %v6489_v17  ;;  %v2294_v2 = vpop.f32.mrf.mxu1 }
 0x21f   : > { %v5352_v48 = vpop.f32.mrf.mxu1  ;;  %5555 = vmatmul.mubr.msk.bf16.gmra.mxu1 %vm2008_vm7, %v8172_v39 }
 0x220   : > { %5558 = vmatprep.mubr.msk.bf16.mxu1 %vm2008_vm7, %v8173_v62 }
 0x221   : > { %v2307_v14 = vpop.f32.mrf.mxu1 }
 0x223   : > { %v5353_v40 = vpop.f32.mrf.mxu1 }
 0x224   : > { %v5314_v63 = vpop.f32.mrf.mxu0  ;;  %5517 = vmatmul.mubr.msk.bf16.vlgmr.msra.gmra.mxu0 %vm2008_vm7, %v6561_v47 }
 0x225   : > { %v7287_v55 = vadd.f32 %v5348_v50, %v5314_v63  ;;  %5583 = vmatpush3.bf16.msra.mxu0 %v4038_v59  ;;  %5520 = vmatprep.mubr.msk.bf16.mxu0 %vm2008_vm7, %v6546_v16  ;;  %v2310_v26 = vpop.f32.mrf.mxu1  ;;  %v7341_v63 = vcombine.low %v6804_v5, %v7245_v12 }
 0x226   : > { %v2095_v17 = vpop.f32.mrf.mxu0 }
 0x227   : > { %v7291_v31 = vadd.f32 %v2291_v38, %v2095_v17  ;;  %v5356_v45 = vpop.f32.mrf.mxu1  ;;  %5559 = vmatmul.mubr.msk.bf16.gmra.mxu1 %vm2008_vm7, %v8174_v60  ;;  %v8180_v60 = vld [vmem:[#allocation25_spill] sm:$0xff] }
 0x228   : > { %v5315_v1 = vpop.f32.mrf.mxu0  ;;  %5562 = vmatprep.mubr.msk.bf16.mxu1 %vm2008_vm7, %v8175_v41 }
 0x229   : > { %v7295_v0 = vadd.f32 %v5349_v19, %v5315_v1  ;;  %v2323_v51 = vpop.f32.mrf.mxu1  ;;  %v8178_v19 = vld [vmem:[#allocation22_spill] sm:$0xff] }
 0x22a   : > { %v2098_v47 = vpop.f32.mrf.mxu0 }
 0x22b   : > { %v7299_v29 = vadd.f32 %v2294_v2, %v2098_v47  ;;  %v5357_v16 = vpop.f32.mrf.mxu1 }
 0x22c   : > { %v5318_v27 = vpop.f32.mrf.mxu0  ;;  %5521 = vmatmul.mubr.msk.bf16.gmra.mxu0 %vm2008_vm7, %v6622_v58 }
 0x22d   : > { %v7303_v8 = vadd.f32 %v5352_v48, %v5318_v27  ;;  %5524 = vmatprep.mubr.msk.bf16.mxu0 %vm2008_vm7, %v6597_v3  ;;  %v2326_v28 = vpop.f32.mrf.mxu1  ;;  %v8179_v48 = vld [vmem:[#allocation7_spill] sm:$0xff] }
 0x22e   : > { %v2111_v57 = vpop.f32.mrf.mxu0 }
 0x22f   : > { %v7307_v35 = vadd.f32 %v2307_v14, %v2111_v57  ;;  %v5360_v34 = vpop.f32.mrf.mxu1  ;;  %5563 = vmatmul.mubr.msk.bf16.gmra.mxu1 %vm2008_vm7, %v8176_v15 }
 0x230   : > { %v5319_v11 = vpop.f32.mrf.mxu0  ;;  %5566 = vmatprep.mubr.msk.bf16.mxu1 %vm2008_vm7, %v8177_v22 }
 0x231   : > { %v7311_v9 = vadd.f32 %v5353_v40, %v5319_v11  ;;  %v2339_v24 = vpop.f32.mrf.mxu1 }
 0x232   : > { %v2114_v58 = vpop.f32.mrf.mxu0 }
 0x233   : > { %v7315_v33 = vadd.f32 %v2310_v26, %v2114_v58  ;;  %v5361_v3 = vpop.f32.mrf.mxu1 }
 0x234   : > { %v5322_v6 = vpop.f32.mrf.mxu0  ;;  %5525 = vmatmul.mubr.msk.bf16.gmra.mxu0 %vm2008_vm7, %v6676_v25 }
 0x235   : > { %v7319_v20 = vadd.f32 %v5356_v45, %v5322_v6  ;;  %5528 = vmatprep.mubr.msk.bf16.mxu0 %vm2008_vm7, %v6659_v52  ;;  %v2342_v49 = vpop.f32.mrf.mxu1 }
 0x236   : > { %v2127_v50 = vpop.f32.mrf.mxu0 }
 0x237   : > { %v7323_v44 = vadd.f32 %v2323_v51, %v2127_v50  ;;  %v5364_v38 = vpop.f32.mrf.mxu1  ;;  %5567 = vmatmul.mubr.msk.bf16.gmra.mxu1 %vm2008_vm7, %v8178_v19 }
 0x238   : > { %v5323_v61 = vpop.f32.mrf.mxu0  ;;  %5570 = vmatprep.mubr.msk.bf16.mxu1 %vm2008_vm7, %v8179_v48 }
 0x239   : > { %v7327_v2 = vadd.f32 %v5357_v16, %v5323_v61  ;;  %v2355_v39 = vpop.f32.mrf.mxu1 }
 0x23a   : > { %v2130_v25 = vpop.f32.mrf.mxu0 }
 0x23b   : > { %v7331_v62 = vadd.f32 %v2326_v28, %v2130_v25  ;;  %v5365_v52 = vpop.f32.mrf.mxu1  ;;  %v3815_v28 = vshrl.u32 %v7341_v63, 16 }
 0x23c   : > { %v5326_v14 = vpop.f32.mrf.mxu0  ;;  %5529 = vmatmul.mubr.msk.bf16.gmra.mxu0 %vm2008_vm7, %v6726_v4  ;;  %v3811_v4 = vshll.u32 %v7341_v63, 16 }
 0x23d   : > { %v7335_v59 = vadd.f32 %v5360_v34, %v5326_v14  ;;  %5532 = vmatprep.mubr.msk.bf16.mxu0 %vm2008_vm7, %v6710_v18  ;;  %v2358_v17 = vpop.f32.mrf.mxu1  ;;  %v7352_v18 = vld [vmem:[#allocation2 + $0x88] ss:$0 sps:$4 sm:$0x11]  }
 0x23e   : > { %v2143_v40 = vpop.f32.mrf.mxu0  ;;  %v3813_v16 = vrot.slane %v3811_v4, 1 }
 0x23f   : > { %v7343_v26 = vadd.f32 %v2339_v24, %v2143_v40  ;;  %v5368_v45 = vpop.f32.mrf.mxu1  ;;  %5571 = vmatmul.mubr.msk.bf16.gmra.mxu1 %vm2008_vm7, %v8180_v60 }
 0x240   : > { %v5327_v1 = vpop.f32.mrf.mxu0  ;;  %5574 = vmatprep.mubr.msk.bf16.mxu1 %vm2008_vm7, %v6901_v36  ;;  %v3819_v36 = vshll.u32 %v7352_v18, 16  ;;  %v3817_v6 = vor.u32 %v3815_v28, %v3813_v16 }
 0x241   : > { %v7348_v41 = vadd.f32 %v5361_v3, %v5327_v1  ;;  %v2371_v12 = vpop.f32.mrf.mxu1 }
 0x242   : > { %v2146_v5 = vpop.f32.mrf.mxu0 }
 0x243   : > { %v7354_v47 = vadd.f32 %v2342_v49, %v2146_v5  ;;  %v5369_v27 = vpop.f32.mrf.mxu1 }
 0x244   : > { %v5330_v51 = vpop.f32.mrf.mxu0  ;;  %5533 = vmatmul.mubr.msk.bf16.gmra.mxu0 %vm2008_vm7, %v6770_v10  ;;  %v3814_v10 = vsel %vm344_vm0, %v6930_v46, %v3813_v16 }
 0x245   : > { %v7358_v57 = vadd.f32 %v5364_v38, %v5330_v51  ;;  %5536 = vmatprep.mubr.msk.bf16.mxu0 %vm2008_vm7, %v6750_v43  ;;  %v2374_v34 = vpop.f32.mrf.mxu1  ;;  %v3821_v43 = vrot.slane %v3819_v36, 1 }
 0x246   : > { %v2159_v11 = vpop.f32.mrf.mxu0 }
 0x247   : > { %v7364_v15 = vadd.f32 %v2355_v39, %v2159_v11  ;;  %v5372_v58 = vpop.f32.mrf.mxu1  ;;  %5575 = vmatmul.mubr.msk.bf16.gmra.mxu1 %vm2008_vm7, %v6918_v56  ;;  %v3822_v56 = vsel %vm344_vm0, %v3817_v6, %v3821_v43 }
 0x248   : > { %v5331_v22 = vpop.f32.mrf.mxu0  ;;  %5578 = vmatprep.mubr.msk.bf16.mxu1 %vm2008_vm7, %v3814_v10 }
 0x249   : > { %v7370_v24 = vadd.f32 %v5365_v52, %v5331_v22  ;;  %v2387_v50 = vpop.f32.mrf.mxu1 }
 0x24a   : > { %v2162_v3 = vpop.f32.mrf.mxu0 }
 0x24b   : > { %v7373_v49 = vadd.f32 %v2358_v17, %v2162_v3  ;;  %v5373_v38 = vpop.f32.mrf.mxu1 }
 0x24c   : > { %v5334_v61 = vpop.f32.mrf.mxu0  ;;  %5537 = vmatmul.mubr.msk.bf16.gmra.mxu0 %vm2008_vm7, %v6814_v13 }
 0x24d   : > { %v7377_v19 = vadd.f32 %v5368_v45, %v5334_v61  ;;  %5540 = vmatprep.mubr.msk.bf16.mxu0 %vm2008_vm7, %v6798_v30  ;;  %v2390_v48 = vpop.f32.mrf.mxu1 }
 0x24e   : > { %v2175_v46 = vpop.f32.mrf.mxu0 }
 0x24f   : > { %v7382_v25 = vadd.f32 %v2371_v12, %v2175_v46  ;;  %v5376_v14 = vpop.f32.mrf.mxu1  ;;  %5579 = vmatmul.mubr.msk.bf16.gmra.mxu1 %vm2008_vm7, %v3822_v56 }
 0x250   : > { %v5335_v39 = vpop.f32.mrf.mxu0 }
 0x251   : > { %v7385_v52 = vadd.f32 %v5369_v27, %v5335_v39  ;;  %v2403_v17 = vpop.f32.mrf.mxu1 }
 0x252   : > { %v2178_v40 = vpop.f32.mrf.mxu0 }
 0x253   : > { %v7387_v13 = vadd.f32 %v2374_v34, %v2178_v40  ;;  %v5377_v45 = vpop.f32.mrf.mxu1 }
 0x254   : > { %v5338_v1 = vpop.f32.mrf.mxu0  ;;  %5541 = vmatmul.mubr.msk.bf16.gmra.mxu0 %vm2008_vm7, %v8165_v53 }
 0x255   : > { %v7391_v30 = vadd.f32 %v5372_v58, %v5338_v1  ;;  %5544 = vmatprep.mubr.msk.bf16.mxu0 %vm2008_vm7, %v6853_v54  ;;  %v2406_v4 = vpop.f32.mrf.mxu1 }
 0x256   : > { %v2191_v60 = vpop.f32.mrf.mxu0 }
 0x257   : > { %v7395_v5 = vadd.f32 %v2387_v50, %v2191_v60  ;;  %v5416_v51 = vpop.f32.mrf.mxu1 }
 0x258   : > { %v5339_v12 = vpop.f32.mrf.mxu0 }
 0x259   : > { %v7397_v27 = vadd.f32 %v5373_v38, %v5339_v12  ;;  %v2801_v28 = vpop.f32.mrf.mxu1 }
 0x25a   : > { %v2194_v16 = vpop.f32.mrf.mxu0 }
 0x25b   : > { %v7399_v36 = vadd.f32 %v2390_v48, %v2194_v16  ;;  %v5417_v34 = vpop.f32.mrf.mxu1 }
 0x25c   : > { %v5342_v11 = vpop.f32.mrf.mxu0  ;;  %5545 = vmatmul.mubr.msk.bf16.gmra.mxu0 %vm2008_vm7, %v7341_v63 }
 0x25d   : > { %v7403_v53 = vadd.f32 %v5376_v14, %v5342_v11  ;;  %5584 = vmatprep.mubr.msk.bf16.mxu0 %vm2008_vm7, %v7028_v21  ;;  %v2804_v22 = vpop.f32.mrf.mxu1 }
 0x25e   : > { %v2207_v54 = vpop.f32.mrf.mxu0 }
 0x25f   : > { %v7407_v58 = vadd.f32 %v2403_v17, %v2207_v54  ;;  %v5420_v6 = vpop.f32.mrf.mxu1 }
 0x260   : > { %v5343_v10 = vpop.f32.mrf.mxu0 }
 0x261   : > { %v7409_v43 = vadd.f32 %v5377_v45, %v5343_v10  ;;  %v2817_v50 = vpop.f32.mrf.mxu1 }
 0x262   : > { %v2210_v3 = vpop.f32.mrf.mxu0 }
 0x263   : > { %v7411_v61 = vadd.f32 %v2406_v4, %v2210_v3  ;;  %v5421_v56 = vpop.f32.mrf.mxu1 }
 0x264   : > { %v5382_v38 = vpop.f32.mrf.mxu0  ;;  %5585 = vmatmul.mubr.msk.bf16.vlgmr.msra.gmra.mxu0 %vm2008_vm7, %v7042_v7 }
 0x265   : > { %v2668_v46 = vadd.f32 %v5382_v38, %v7287_v55  ;;  %5588 = vmatprep.mubr.msk.bf16.mxu0 %vm2008_vm7, %v7073_v23  ;;  %v2820_v48 = vpop.f32.mrf.mxu1 }
 0x266   : > { %v2539_v21 = vpop.f32.mrf.mxu0 }
 0x267   : > { %v2666_v39 = vadd.f32 %v2539_v21, %v7291_v31  ;;  %v7419_v14 = vadd.f32 %v5416_v51, %v2668_v46  ;;  %v5424_v17 = vpop.f32.mrf.mxu1  ;;  %v8181_v51 = vld [vmem:[#allocation8_spill] sm:$0xff] }
 0x268   : > { %v5383_v40 = vpop.f32.mrf.mxu0 }
 0x269   : > { %v2669_v1 = vadd.f32 %v5383_v40, %v7295_v0  ;;  %v7422_v45 = vadd.f32 %v2801_v28, %v2666_v39  ;;  %v2833_v4 = vpop.f32.mrf.mxu1  ;;  %v8182_v39 = vld [vmem:[#allocation27_spill] sm:$0xff] }
 0x26a   : > { %v2542_v60 = vpop.f32.mrf.mxu0 }
 0x26b   : > { %v2667_v7 = vadd.f32 %v2542_v60, %v7299_v29  ;;  %v7425_v55 = vadd.f32 %v5417_v34, %v2669_v1  ;;  %v5425_v23 = vpop.f32.mrf.mxu1 }
 0x26c   : > { %v5386_v12 = vpop.f32.mrf.mxu0  ;;  %5589 = vmatmul.mubr.msk.bf16.gmra.mxu0 %vm2008_vm7, %v7078_v42 }
 0x26d   : > { %v2672_v31 = vadd.f32 %v5386_v12, %v7303_v8  ;;  %5592 = vmatprep.mubr.msk.bf16.mxu0 %vm2008_vm7, %v8181_v51  ;;  %v7432_v16 = vadd.f32 %v2804_v22, %v2667_v7  ;;  %v2836_v28 = vpop.f32.mrf.mxu1 }
 0x26e   : > { %v2555_v0 = vpop.f32.mrf.mxu0 }
 0x26f   : > { %v2670_v11 = vadd.f32 %v2555_v0, %v7307_v35  ;;  %v7435_v54 = vadd.f32 %v5420_v6, %v2672_v31  ;;  %v5428_v34 = vpop.f32.mrf.mxu1  ;;  %v8183_v6 = vld [vmem:[#allocation28_spill] sm:$0xff] }
 0x270   : > { %v5387_v29 = vpop.f32.mrf.mxu0 }
 0x271   : > { %v2673_v10 = vadd.f32 %v5387_v29, %v7311_v9  ;;  %v7438_v3 = vadd.f32 %v2817_v50, %v2670_v11  ;;  %v2849_v38 = vpop.f32.mrf.mxu1  ;;  %v8184_v29 = vld [vmem:[#allocation9_spill] sm:$0xff] }
 0x272   : > { %v2558_v42 = vpop.f32.mrf.mxu0 }
 0x273   : > { %v2671_v8 = vadd.f32 %v2558_v42, %v7315_v33  ;;  %v7441_v46 = vadd.f32 %v5421_v56, %v2673_v10  ;;  %v5429_v21 = vpop.f32.mrf.mxu1 }
 0x274   : > { %v5390_v22 = vpop.f32.mrf.mxu0  ;;  %5593 = vmatmul.mubr.msk.bf16.gmra.mxu0 %vm2008_vm7, %v8182_v39 }
 0x275   : > { %v2676_v35 = vadd.f32 %v5390_v22, %v7319_v20  ;;  %5596 = vmatprep.mubr.msk.bf16.mxu0 %vm2008_vm7, %v8183_v6  ;;  %v7448_v40 = vadd.f32 %v2820_v48, %v2671_v8  ;;  %v2852_v50 = vpop.f32.mrf.mxu1 }
 0x276   : > { %v2571_v9 = vpop.f32.mrf.mxu0 }
 0x277   : > { %v2674_v1 = vadd.f32 %v2571_v9, %v7323_v44  ;;  %v7451_v60 = vadd.f32 %v5424_v17, %v2676_v35  ;;  %v5432_v56 = vpop.f32.mrf.mxu1  ;;  %v8185_v17 = vld [vmem:[#allocation29_spill] sm:$0xff] }
 0x278   : > { %v5391_v33 = vpop.f32.mrf.mxu0 }
 0x279   : > { %v2677_v7 = vadd.f32 %v5391_v33, %v7327_v2  ;;  %v7454_v12 = vadd.f32 %v2833_v4, %v2674_v1  ;;  %v2865_v51 = vpop.f32.mrf.mxu1  ;;  %v8186_v33 = vld [vmem:[#allocation30_spill] sm:$0xff] }
 0x27a   : > { %v2574_v31 = vpop.f32.mrf.mxu0 }
 0x27b   : > { %v2675_v20 = vadd.f32 %v2574_v31, %v7331_v62  ;;  %v7457_v0 = vadd.f32 %v5425_v23, %v2677_v7  ;;  %v5433_v11 = vpop.f32.mrf.mxu1 }
 0x27c   : > { %v5394_v48 = vpop.f32.mrf.mxu0  ;;  %5597 = vmatmul.mubr.msk.bf16.gmra.mxu0 %vm2008_vm7, %v8184_v29 }
 0x27d   : > { %v2680_v44 = vadd.f32 %v5394_v48, %v7335_v59  ;;  %5600 = vmatprep.mubr.msk.bf16.mxu0 %vm2008_vm7, %v8185_v17  ;;  %v7464_v10 = vadd.f32 %v2836_v28, %v2675_v20  ;;  %v2868_v4 = vpop.f32.mrf.mxu1 }
 0x27e   : > { %v2587_v2 = vpop.f32.mrf.mxu0 }
 0x27f   : > { %v2678_v42 = vadd.f32 %v2587_v2, %v7343_v26  ;;  %v7467_v8 = vadd.f32 %v5428_v34, %v2680_v44  ;;  %v5436_v23 = vpop.f32.mrf.mxu1  ;;  %v8187_v34 = vld [vmem:[#allocation10_spill] sm:$0xff] }
 0x280   : > { %v5395_v62 = vpop.f32.mrf.mxu0 }
 0x281   : > { %v2681_v22 = vadd.f32 %v5395_v62, %v7348_v41  ;;  %v7470_v39 = vadd.f32 %v2849_v38, %v2678_v42  ;;  %v2881_v6 = vpop.f32.mrf.mxu1  ;;  %v8188_v62 = vld [vmem:[#allocation31_spill] sm:$0xff] }
 0x282   : > { %v2590_v35 = vpop.f32.mrf.mxu0 }
 0x283   : > { %v2679_v59 = vadd.f32 %v2590_v35, %v7354_v47  ;;  %v7473_v9 = vadd.f32 %v5429_v21, %v2681_v22  ;;  %v5437_v1 = vpop.f32.mrf.mxu1 }
 0x284   : > { %v5398_v28 = vpop.f32.mrf.mxu0  ;;  %5601 = vmatmul.mubr.msk.bf16.gmra.mxu0 %vm2008_vm7, %v8186_v33 }
 0x285   : > { %v2684_v26 = vadd.f32 %v5398_v28, %v7358_v57  ;;  %5604 = vmatprep.mubr.msk.bf16.mxu0 %vm2008_vm7, %v8187_v34  ;;  %v7480_v7 = vadd.f32 %v2852_v50, %v2679_v59  ;;  %v2884_v38 = vpop.f32.mrf.mxu1  ;;  %v4027_v28 = vrot.slane %v7341_v63, 1 }
 0x286   : > { %v2603_v41 = vpop.f32.mrf.mxu0 }
 0x287   : > { %v2682_v31 = vadd.f32 %v2603_v41, %v7364_v15  ;;  %v7483_v20 = vadd.f32 %v5432_v56, %v2684_v26  ;;  %v5440_v21 = vpop.f32.mrf.mxu1  ;;  %v8189_v56 = vld [vmem:[#allocation11_spill] sm:$0xff] }
 0x288   : > { %v5399_v47 = vpop.f32.mrf.mxu0 }
 0x289   : > { %v2685_v48 = vadd.f32 %v5399_v47, %v7370_v24  ;;  %v7486_v29 = vadd.f32 %v2865_v51, %v2682_v31  ;;  %v2897_v17 = vpop.f32.mrf.mxu1 }
 0x28a   : > { %v2606_v44 = vpop.f32.mrf.mxu0 }
 0x28b   : > { %v2683_v57 = vadd.f32 %v2606_v44, %v7373_v49  ;;  %v7489_v2 = vadd.f32 %v5433_v11, %v2685_v48  ;;  %v5441_v42 = vpop.f32.mrf.mxu1 }
 0x28c   : > { %v5402_v50 = vpop.f32.mrf.mxu0  ;;  %5605 = vmatmul.mubr.msk.bf16.gmra.mxu0 %vm2008_vm7, %v8188_v62 }
 0x28d   : > { %v2688_v15 = vadd.f32 %v5402_v50, %v7377_v19  ;;  %5608 = vmatprep.mubr.msk.bf16.mxu0 %vm2008_vm7, %v8189_v56  ;;  %v7496_v22 = vadd.f32 %v2868_v4, %v2683_v57  ;;  %v2900_v51 = vpop.f32.mrf.mxu1 }
 0x28e   : > { %v2619_v24 = vpop.f32.mrf.mxu0 }
 0x28f   : > { %v2686_v35 = vadd.f32 %v2619_v24, %v7382_v25  ;;  %v7499_v59 = vadd.f32 %v5436_v23, %v2688_v15  ;;  %v5444_v11 = vpop.f32.mrf.mxu1  ;;  %v4028_v25 = vsel %vm2420_vm10, %v7158_v32, %v4027_v28 }
 0x290   : > { %v5403_v49 = vpop.f32.mrf.mxu0 }
 0x291   : > { %v2689_v33 = vadd.f32 %v5403_v49, %v7385_v52  ;;  %v7503_v26 = vadd.f32 %v2881_v6, %v2686_v35  ;;  %v2913_v34 = vpop.f32.mrf.mxu1  ;;  %v4029_v52 = vrot.slane %v7352_v18, 1 }
 0x292   : > { %v2622_v19 = vpop.f32.mrf.mxu0 }
 0x293   : > { %v2687_v41 = vadd.f32 %v2622_v19, %v7387_v13  ;;  %v7506_v4 = vadd.f32 %v5437_v1, %v2689_v33  ;;  %v5445_v47 = vpop.f32.mrf.mxu1  ;;  %v4030_v32 = vsel %vm2420_vm10, %v4027_v28, %v4029_v52 }
 0x294   : > { %v5406_v31 = vpop.f32.mrf.mxu0  ;;  %5609 = vmatmul.mubr.msk.bf16.gmra.mxu0 %vm2008_vm7, %v7168_v37 }
 0x295   : > { %v2692_v63 = vadd.f32 %v5406_v31, %v7391_v30  ;;  %5612 = vmatprep.mubr.msk.bf16.mxu0 %vm2008_vm7, %v4028_v25  ;;  %v7515_v23 = vadd.f32 %v2884_v38, %v2687_v41  ;;  %v2916_v13 = vpop.f32.mrf.mxu1 }
 0x296   : > { %v2635_v6 = vpop.f32.mrf.mxu0 }
 0x297   : > { %v2690_v1 = vadd.f32 %v2635_v6, %v7395_v5  ;;  %v7518_v48 = vadd.f32 %v5440_v21, %v2692_v63  ;;  %v7520_v57 = vpop.f32.mrf.mxu1 }
 0x298   : > { %v5407_v44 = vpop.f32.mrf.mxu0 }
 0x299   : > { %v2693_v37 = vadd.f32 %v5407_v44, %v7397_v27  ;;  %v7524_v30 = vadd.f32 %v2897_v17, %v2690_v1  ;;  %v7526_v62 = vpop.f32.mrf.mxu1 }
 0x29a   : > { %v2638_v50 = vpop.f32.mrf.mxu0 }
 0x29b   : > { %v2691_v18 = vadd.f32 %v2638_v50, %v7399_v36  ;;  %v7529_v38 = vadd.f32 %v5441_v42, %v2693_v37  ;;  %v7531_v5 = vpop.f32.mrf.mxu1 }
 0x29c   : > { %v5410_v15 = vpop.f32.mrf.mxu0  ;;  %5613 = vmatmul.mubr.msk.bf16.gmra.mxu0 %vm2008_vm7, %v4030_v32 }
 0x29d   : > { %v2696_v21 = vadd.f32 %v5410_v15, %v7403_v53  ;;  %v7535_v56 = vadd.f32 %v2900_v51, %v2691_v18  ;;  %v7537_v24 = vpop.f32.mrf.mxu1 }
 0x29e   : > { %v2651_v27 = vpop.f32.mrf.mxu0 }
 0x29f   : > { %v2694_v17 = vadd.f32 %v2651_v27, %v7407_v58  ;;  %v7540_v35 = vadd.f32 %v5444_v11, %v2696_v21  ;;  %v7542_v36 = vpop.f32.mrf.mxu1 }
 0x2a0   : > { %v5411_v49 = vpop.f32.mrf.mxu0 }
 0x2a1   : > { %v2697_v42 = vadd.f32 %v5411_v49, %v7409_v43  ;;  %v7545_v28 = vadd.f32 %v2913_v34, %v2694_v17  ;;  %v7547_v19 = vpop.f32.mrf.mxu1 }
 0x2a2   : > { %v2654_v33 = vpop.f32.mrf.mxu0 }
 0x2a3   : > { %v2695_v53 = vadd.f32 %v2654_v33, %v7411_v61  ;;  %v7550_v51 = vadd.f32 %v5445_v47, %v2697_v42  ;;  %v7552_v31 = vpop.f32.mrf.mxu1 }
 0x2a4   : > { %v5450_v41 = vpop.f32.mrf.mxu0 }
 0x2a5   : > { %v7555_v58 = vadd.f32 %v5450_v41, %v7419_v14  ;;  %v7557_v11 = vadd.f32 %v2916_v13, %v2695_v53  ;;  %v7559_v63 = vpop.f32.mrf.mxu1 }
 0x2a6   : > { %v3166_v25 = vpop.f32.mrf.mxu0 }
 0x2a7   : > { %v7562_v43 = vadd.f32 %v3166_v25, %v7422_v45  ;;  %v7564_v52 = vpop.f32.mrf.mxu1 }
 0x2a8   : > { %v5451_v34 = vpop.f32.mrf.mxu0 }
 0x2a9   : > { %v7567_v61 = vadd.f32 %v5451_v34, %v7425_v55  ;;  %v7569_v6 = vpop.f32.mrf.mxu1 }
 0x2aa   : > { %v3169_v47 = vpop.f32.mrf.mxu0 }
 0x2ab   : > { %v7572_v14 = vadd.f32 %v3169_v47, %v7432_v16  ;;  %v7574_v1 = vpop.f32.mrf.mxu1 }
 0x2ac   : > { %v5454_v13 = vpop.f32.mrf.mxu0 }
 0x2ad   : > { %v7577_v44 = vadd.f32 %v5454_v13, %v7435_v54  ;;  %v7579_v37 = vpop.f32.mrf.mxu1 }
 0x2ae   : > { %v3182_v45 = vpop.f32.mrf.mxu0 }
 0x2af   : > { %v7582_v32 = vadd.f32 %v3182_v45, %v7438_v3  ;;  %v7584_v50 = vpop.f32.mrf.mxu1 }
 0x2b0   : > { %v5455_v55 = vpop.f32.mrf.mxu0 }
 0x2b1   : > { %v7587_v18 = vadd.f32 %v5455_v55, %v7441_v46  ;;  %v7589_v15 = vpop.f32.mrf.mxu1 }
 0x2b2   : > { %v3185_v16 = vpop.f32.mrf.mxu0 }
 0x2b3   : > { %v7592_v21 = vadd.f32 %v3185_v16, %v7448_v40  ;;  %v7594_v27 = vpop.f32.mrf.mxu1 }
 0x2b4   : > { %v5458_v54 = vpop.f32.mrf.mxu0  ;;  %8190 = vst [vmem:[#allocation32_spill] sm:$0xff] %v7594_v27 }
 0x2b5   : > { %v7597_v17 = vadd.f32 %v5458_v54, %v7451_v60  ;;  %v7599_v49 = vpop.f32.mrf.mxu1 }
 0x2b6   : > { %v3198_v3 = vpop.f32.mrf.mxu0  ;;  %8191 = vst [vmem:[#allocation33_spill] sm:$0xff] %v7599_v49 }
 0x2b7   : > { %v7602_v42 = vadd.f32 %v3198_v3, %v7454_v12  ;;  %v7604_v33 = vpop.f32.mrf.mxu1 }
 0x2b8   : > { %v5459_v46 = vpop.f32.mrf.mxu0  ;;  %8192 = vst [vmem:[#allocation12_spill] sm:$0xff] %v7604_v33 }
 0x2b9   : > { %v7607_v53 = vadd.f32 %v5459_v46, %v7457_v0  ;;  %v7609_v41 = vpop.f32.mrf.mxu1 }
 0x2ba   : > { %v3201_v40 = vpop.f32.mrf.mxu0  ;;  %8193 = vst [vmem:[#allocation34_spill] sm:$0xff] %v7609_v41 }
 0x2bb   : > { %v7612_v25 = vadd.f32 %v3201_v40, %v7464_v10  ;;  %v7614_v34 = vpop.f32.mrf.mxu1 }
 0x2bc   : > { %v5462_v60 = vpop.f32.mrf.mxu0  ;;  %8194 = vst [vmem:[#allocation35_spill] sm:$0xff] %v7614_v34 }
 0x2bd   : > { %v7617_v47 = vadd.f32 %v5462_v60, %v7467_v8  ;;  %v7619_v13 = vpop.f32.mrf.mxu1 }
 0x2be   : > { %v3214_v12 = vpop.f32.mrf.mxu0  ;;  %8195 = vst [vmem:[#allocation13_spill] sm:$0xff] %v7619_v13 }
 0x2bf   : > { %v7622_v45 = vadd.f32 %v3214_v12, %v7470_v39  ;;  %v7624_v55 = vpop.f32.mrf.mxu1 }
 0x2c0   : > { %v5463_v0 = vpop.f32.mrf.mxu0  ;;  %8196 = vst [vmem:[#allocation36_spill] sm:$0xff] %v7624_v55 }
 0x2c1   : > { %v7627_v16 = vadd.f32 %v5463_v0, %v7473_v9  ;;  %v7629_v54 = vpop.f32.mrf.mxu1 }
 0x2c2   : > { %v3217_v10 = vpop.f32.mrf.mxu0  ;;  %8198 = vst [vmem:[#allocation14_spill] sm:$0xff] %v7629_v54 }
 0x2c3   : > { %8197 = vst [vmem:[#allocation37_spill] sm:$0xff] %v7627_v16  ;;  %v7632_v3 = vadd.f32 %v3217_v10, %v7480_v7  ;;  %v7634_v46 = vpop.f32.mrf.mxu1 }
 0x2c4   : > { %v5466_v8 = vpop.f32.mrf.mxu0  ;;  %8200 = vst [vmem:[#allocation39_spill] sm:$0xff] %v7634_v46 }
 0x2c5   : > { %8199 = vst [vmem:[#allocation38_spill] sm:$0xff] %v7632_v3  ;;  %v7637_v40 = vadd.f32 %v5466_v8, %v7483_v20  ;;  %v7639_v60 = vpop.f32.mrf.mxu1 }
 0x2c6   : > { %v3230_v39 = vpop.f32.mrf.mxu0  ;;  %8202 = vst [vmem:[#allocation40_spill] sm:$0xff] %v7639_v60 }
 0x2c7   : > { %8201 = vst [vmem:[#allocation15_spill] sm:$0xff] %v7637_v40  ;;  %v7642_v12 = vadd.f32 %v3230_v39, %v7486_v29  ;;  %v7644_v0 = vpop.f32.mrf.mxu1 }
 0x2c8   : > { %v5467_v9 = vpop.f32.mrf.mxu0  ;;  %8204 = vst [vmem:[#allocation16_spill] sm:$0xff] %v7644_v0 }
 0x2c9   : > { %8203 = vst [vmem:[#allocation41_spill] sm:$0xff] %v7642_v12  ;;  %v7647_v54 = vadd.f32 %v5467_v9, %v7489_v2  ;;  %v7649_v10 = vpop.f32.mrf.mxu1 }
 0x2ca   : > { %v3233_v7 = vpop.f32.mrf.mxu0  ;;  %8206 = vst [vmem:[#allocation26_spill] sm:$0xff] %v7649_v10 }
 0x2cb   : > { %8205 = vst [vmem:[#allocation42_spill] sm:$0xff] %v7647_v54  ;;  %v7652_v46 = vadd.f32 %v3233_v7, %v7496_v22  ;;  %v7654_v8 = vpop.f32.mrf.mxu1 }
 0x2cc   : > { %v5470_v20 = vpop.f32.mrf.mxu0  ;;  %8208 = vst [vmem:[#allocation17_spill] sm:$0xff] %v7654_v8 }
 0x2cd   : > { %8207 = vst [vmem:[#allocation24_spill] sm:$0xff] %v7652_v46  ;;  %v7657_v60 = vadd.f32 %v5470_v20, %v7499_v59  ;;  %v7662_v0 = vpop.f32.mrf.mxu1 }
 0x2ce   : > { %v3246_v29 = vpop.f32.mrf.mxu0  ;;  %8211 = vst [vmem:[#allocation5_spill] sm:$0xff] %v7662_v0 }
 0x2cf   : > { %8209 = vst [vmem:[#allocation4_spill] sm:$0xff] %v7657_v60  ;;  %v7660_v39 = vadd.f32 %v3246_v29, %v7503_v26  ;;  %v7667_v55 = vpop.f32.mrf.mxu1 }
 0x2d0   : > { %v5471_v2 = vpop.f32.mrf.mxu0  ;;  %8213 = vst [vmem:[#allocation18_spill] sm:$0xff] %v7667_v55 }
 0x2d1   : > { %8210 = vst [vmem:[#allocation19_spill] sm:$0xff] %v7660_v39  ;;  %v7665_v9 = vadd.f32 %v5471_v2, %v7506_v4  ;;  %v7675_v8 = vpop.f32.mrf.mxu1 }
 0x2d2   : > { %v3249_v10 = vpop.f32.mrf.mxu0  ;;  %8216 = vst [vmem:[#allocation23_spill] sm:$0xff] %v7675_v8 }
 0x2d3   : > { %8212 = vst [vmem:[#allocation21_spill] sm:$0xff] %v7665_v9  ;;  %v7670_v22 = vadd.f32 %v3249_v10, %v7515_v23  ;;  %v7683_v0 = vpop.f32.mrf.mxu1 }
 0x2d4   : > { %v5474_v7 = vpop.f32.mrf.mxu0  ;;  %8219 = vst [vmem:[#allocation25_spill] sm:$0xff] %v7683_v0 }
 0x2d5   : > { %8214 = vst [vmem:[#allocation20_spill] sm:$0xff] %v7670_v22  ;;  %v7673_v59 = vadd.f32 %v5474_v7, %v7518_v48  ;;  %v7691_v55 = vpop.f32.mrf.mxu1 }
 0x2d6   : > { %v3262_v20 = vpop.f32.mrf.mxu0  ;;  %8222 = vst [vmem:[#allocation28_spill] sm:$0xff] %v7691_v55 }
 0x2d7   : > { %8215 = vst [vmem:[#allocation6_spill] sm:$0xff] %v7673_v59  ;;  %v7678_v26 = vadd.f32 %v3262_v20, %v7524_v30  ;;  %v5552_v8 = vpop.f32.mrf.mxu1 }
 0x2d8   : > { %v5475_v29 = vpop.f32.mrf.mxu0 }
 0x2d9   : > { %8217 = vst [vmem:[#allocation22_spill] sm:$0xff] %v7678_v26  ;;  %v7681_v4 = vadd.f32 %v5475_v29, %v7529_v38 }
 0x2da   : > { %v3265_v2 = vpop.f32.mrf.mxu0 }
 0x2db   : > { %8218 = vst [vmem:[#allocation7_spill] sm:$0xff] %v7681_v4  ;;  %v7686_v23 = vadd.f32 %v3265_v2, %v7535_v56 }
 0x2dc   : > { %v5478_v10 = vpop.f32.mrf.mxu0 }
 0x2dd   : > { %8220 = vst [vmem:[#allocation8_spill] sm:$0xff] %v7686_v23  ;;  %v7689_v48 = vadd.f32 %v5478_v10, %v7540_v35  ;;  %v3866_v23 = vpop.f32.mrf.mxu1 }
 0x2de   : > { %v3278_v7 = vpop.f32.mrf.mxu0 }
 0x2df   : > { %8221 = vst [vmem:[#allocation27_spill] sm:$0xff] %v7689_v48  ;;  %v7694_v30 = vadd.f32 %v3278_v7, %v7545_v28  ;;  %v7702_v48 = vpop.f32.mrf.mxu1 }
 0x2e0   : > { %v5479_v20 = vpop.f32.mrf.mxu0 }
 0x2e1   : > { %8223 = vst [vmem:[#allocation9_spill] sm:$0xff] %v7694_v30  ;;  %v7697_v38 = vadd.f32 %v5479_v20, %v7550_v51  ;;  %v7704_v28 = vpop.f32.mrf.mxu1 }
 0x2e2   : > { %v3281_v29 = vpop.f32.mrf.mxu0 }
 0x2e3   : > { %8224 = vst [vmem:[#allocation29_spill] sm:$0xff] %v7697_v38  ;;  %v7700_v0 = vadd.f32 %v3281_v29, %v7557_v11  ;;  %v7710_v20 = vpop.f32.mrf.mxu1 }
 0x2e4   : > { %v5518_v56 = vpop.f32.mrf.mxu0 }
 0x2e5   : > { %8225 = vst [vmem:[#allocation30_spill] sm:$0xff] %v7700_v0  ;;  %v7716_v29 = vpop.f32.mrf.mxu1 }
 0x2e6   : > { %v3647_v2 = vpop.f32.mrf.mxu0 }
 0x2e7   : > { %v7722_v26 = vpop.f32.mrf.mxu1 }
 0x2e8   : > { %v5519_v35 = vpop.f32.mrf.mxu0 }
 0x2e9   : > { %v7728_v9 = vpop.f32.mrf.mxu1 }
 0x2ea   : > { %v3650_v10 = vpop.f32.mrf.mxu0 }
 0x2eb   : > { %v7734_v13 = vpop.f32.mrf.mxu1 }
 0x2ec   : > { %v5522_v55 = vpop.f32.mrf.mxu0 }
 0x2ed   : > { %v7740_v54 = vpop.f32.mrf.mxu1 }
 0x2ee   : > { %v3663_v4 = vpop.f32.mrf.mxu0 }
 0x2ef   : > { %v7746_v33 = vpop.f32.mrf.mxu1 }
 0x2f0   : > { %v7706_v7 = vpop.f32.mrf.mxu0 }
 0x2f1   : > { %v7752_v3 = vpop.f32.mrf.mxu1 }
 0x2f2   : > { %v7708_v51 = vpop.f32.mrf.mxu0 }
 0x2f4   : > { %v7712_v38 = vpop.f32.mrf.mxu0 }
 0x2f6   : > { %v7714_v11 = vpop.f32.mrf.mxu0 }
 0x2f8   : > { %v7718_v0 = vpop.f32.mrf.mxu0 }
 0x2fa   : > { %v7720_v30 = vpop.f32.mrf.mxu0 }
 0x2fc   : > { %v7724_v59 = vpop.f32.mrf.mxu0 }
 0x2fe   : > { %v7726_v22 = vpop.f32.mrf.mxu0 }
 0x300   : > { %v7730_v39 = vpop.f32.mrf.mxu0 }
 0x301   : > { %8226 = vst [vmem:[#allocation10_spill] sm:$0xff] %v7730_v39 }
 0x302   : > { %v7732_v60 = vpop.f32.mrf.mxu0 }
 0x303   : > { %8227 = vst [vmem:[#allocation31_spill] sm:$0xff] %v7732_v60 }
 0x304   : > { %v7736_v46 = vpop.f32.mrf.mxu0 }
 0x305   : > { %8228 = vst [vmem:[#allocation11_spill] sm:$0xff] %v7736_v46  ;;  %v7758_v46 = vpop.f32.mrf.mxu1 }
 0x306   : > { %v7738_v34 = vpop.f32.mrf.mxu0  ;;  %8236 = vst [vmem:[#allocation50_spill] sm:$0xff] %v7758_v46 }
 0x307   : > { %8229 = vst [vmem:[#allocation43_spill] sm:$0xff] %v7738_v34 }
 0x308   : > { %v7742_v41 = vpop.f32.mrf.mxu0 }
 0x309   : > { %8230 = vst [vmem:[#allocation44_spill] sm:$0xff] %v7742_v41  ;;  %v7764_v41 = vpop.f32.mrf.mxu1 }
 0x30a   : > { %v7744_v12 = vpop.f32.mrf.mxu0  ;;  %8239 = vst [vmem:[#allocation53_spill] sm:$0xff] %v7764_v41 }
 0x30b   : > { %8231 = vst [vmem:[#allocation45_spill] sm:$0xff] %v7744_v12 }
 0x30c   : > { %v7748_v40 = vpop.f32.mrf.mxu0 }
 0x30d   : > { %8232 = vst [vmem:[#allocation46_spill] sm:$0xff] %v7748_v40  ;;  %v7770_v40 = vpop.f32.mrf.mxu1 }
 0x30e   : > { %v7750_v49 = vpop.f32.mrf.mxu0  ;;  %8242 = vst [vmem:[#allocation56_spill] sm:$0xff] %v7770_v40 }
 0x30f   : > { %8233 = vst [vmem:[#allocation47_spill] sm:$0xff] %v7750_v49 }
 0x310   : > { %v7754_v60 = vpop.f32.mrf.mxu0 }
 0x311   : > { %8234 = vst [vmem:[#allocation48_spill] sm:$0xff] %v7754_v60  ;;  %v3574_v60 = vadd.f32 %v7520_v57, %v7555_v58  ;;  %v3573_v57 = vadd.f32 %v7537_v24, %v7572_v14  ;;  %v3576_v24 = vadd.f32 %v7547_v19, %v7582_v32  ;;  %v3577_v32 = vadd.f32 %v7559_v63, %v7592_v21 }
 0x312   : > { %v7756_v39 = vpop.f32.mrf.mxu0  ;;  %v3582_v21 = vadd.f32 %v7564_v52, %v7597_v17 }
 0x313   : > { %8235 = vst [vmem:[#allocation49_spill] sm:$0xff] %v7756_v39  ;;  %v3776_v46 = vadd.f32 %v5518_v56, %v3574_v60  ;;  %v3775_v56 = vadd.f32 %v3650_v10, %v3573_v57  ;;  %v3779_v63 = vadd.f32 %v7708_v51, %v3577_v32 }
 0x314   : > { %v7760_v34 = vpop.f32.mrf.mxu0 }
 0x315   : > { %8237 = vst [vmem:[#allocation51_spill] sm:$0xff] %v7760_v34  ;;  %v3572_v34 = vadd.f32 %v7526_v62, %v7562_v43  ;;  %v3995_v60 = vadd.f32 %v5552_v8, %v3776_v46  ;;  %v3578_v62 = vadd.f32 %v7542_v36, %v7577_v44  ;;  %v3778_v8 = vadd.f32 %v3663_v4, %v3576_v24 }
 0x316   : > { %v7762_v27 = vpop.f32.mrf.mxu0 }
 0x317   : > { %8238 = vst [vmem:[#allocation52_spill] sm:$0xff] %v7762_v27  ;;  %v7780_v27 = vpop.f32.mrf.mxu1 }
 0x318   : > { %v7766_v12 = vpop.f32.mrf.mxu0 }
 0x319   : > { %8240 = vst [vmem:[#allocation54_spill] sm:$0xff] %v7766_v12  ;;  %v3774_v12 = vadd.f32 %v3647_v2, %v3572_v34  ;;  %v7790_v58 = vpop.f32.mrf.mxu1  ;;  %v7797_v34 = vld [vmem:[%s8031_s4] ss:$0 sm:$0xff]  ;;  %v3780_v2 = vadd.f32 %v5522_v55, %v3578_v62  ;;  %v3997_v62 = vadd.f32 %v7716_v29, %v3778_v8 }
 0x31a   : > { %v7768_v16 = vpop.f32.mrf.mxu0 }
 0x31b   : > { %8241 = vst [vmem:[#allocation55_spill] sm:$0xff] %v7768_v16  ;;  %v3575_v16 = vadd.f32 %v7531_v5, %v7567_v61  ;;  %v3993_v61 = vadd.f32 %v3866_v23, %v3774_v12  ;;  %v3994_v23 = vadd.f32 %v7704_v28, %v3775_v56 }
 0x31c   : > { %v7772_v49 = vpop.f32.mrf.mxu0 }
 0x31d   : > { %8243 = vst [vmem:[#allocation57_spill] sm:$0xff] %v7772_v49  ;;  %v3777_v49 = vadd.f32 %v5519_v35, %v3575_v16  ;;  %v7801_v16 = vpop.f32.mrf.mxu1  ;;  %v3579_v35 = vadd.f32 %v7552_v31, %v7587_v18  ;;  %v3999_v18 = vadd.f32 %v7710_v20, %v3780_v2  ;;  %v3580_v2 = vadd.f32 %v7569_v6, %v7602_v42 }
 0x31e   : > { %v7776_v39 = vpop.f32.mrf.mxu0  ;;  %v3998_v6 = vadd.f32 %v7728_v9, %v3779_v63 }
 0x31f   : > { %v3996_v44 = vadd.f32 %v7702_v48, %v3777_v49  ;;  %v3781_v19 = vadd.f32 %v7706_v7, %v3579_v35  ;;  %v7820_v49 = vpop.f32.mrf.mxu1 }
 0x320   : > { %v7782_v41 = vpop.f32.mrf.mxu0 }
 0x321   : > { %v4000_v24 = vadd.f32 %v7722_v26, %v3781_v19  ;;  %v7834_v52 = vpop.f32.mrf.mxu1 }
 0x322   : > { %v7786_v40 = vpop.f32.mrf.mxu0 }
 0x324   : > { %v5586_v43 = vpop.f32.mrf.mxu0 }
 0x325   : > { %v4203_v5 = vadd.f32 %v5586_v43, %v3995_v60 }
 0x326   : > { %v4074_v14 = vpop.f32.mrf.mxu0 }
 0x327   : > { %v4242_v46 = vadd.f32 %v7797_v34, %v4203_v5  ;;  %v4201_v36 = vadd.f32 %v4074_v14, %v3993_v61  ;;  %v3784_v61 = vadd.f32 %v7712_v38, %v3582_v21  ;;  %v3583_v38 = vadd.f32 %v7574_v1, %v7607_v53  ;;  %v7850_v1 = vpop.f32.mrf.mxu1 }
 0x328   : > { %v5587_v10 = vpop.f32.mrf.mxu0 }
 0x329   : > { %v4274_v57 = vmax.f32 %v4242_v46, 0.0  ;;  %v4240_v55 = vadd.f32 %v7797_v34, %v4201_v36  ;;  %v4204_v12 = vadd.f32 %v5587_v10, %v3996_v44  ;;  %v3782_v36 = vadd.f32 %v7714_v11, %v3580_v2  ;;  %v8247_v2 = vld [vmem:[#allocation38_spill] sm:$0xff] }
 0x32a   : > { %v4077_v31 = vpop.f32.mrf.mxu0  ;;  %v3785_v10 = vadd.f32 %v7718_v0, %v3583_v38  ;;  %v3586_v0 = vadd.f32 %v7584_v50, %v7617_v47  ;;  %v7866_v50 = vpop.f32.mrf.mxu1 }
 0x32b   : > { %v4923_v4 = vpack.c.bf16 %v4274_v57, %v4274_v57  ;;  %v4272_v48 = vmax.f32 %v4240_v55, 0.0  ;;  %v4243_v28 = vadd.f32 %v7797_v34, %v4204_v12  ;;  %v4202_v7 = vadd.f32 %v4077_v31, %v3994_v23 }
 0x32c   : > { %v5590_v60 = vpop.f32.mrf.mxu0  ;;  %v3581_v57 = vadd.f32 %v7579_v37, %v7612_v25  ;;  %v4003_v55 = vadd.f32 %v7734_v13, %v3784_v61  ;;  %v4001_v37 = vadd.f32 %v7740_v54, %v3782_v36 }
 0x32d   : > { %4434 = vst.msk [vmem:[%s7817_s10 + $0x8] sm:$0xf] %vm1601_vm6, %v4923_v4  ;;  %v4921_v43 = vpack.c.bf16 %v4272_v48, %v4272_v48  ;;  %v4275_v20 = vmax.f32 %v4243_v28, 0.0  ;;  %v4241_v56 = vadd.f32 %v7797_v34, %v4202_v7  ;;  %v4207_v5 = vadd.f32 %v5590_v60, %v3999_v18  ;;  %v8244_v60 = vld [vmem:[#allocation37_spill] sm:$0xff] }
 0x32e   : > { %v4090_v51 = vpop.f32.mrf.mxu0  ;;  %v3783_v19 = vadd.f32 %v7720_v30, %v3581_v57  ;;  %v3788_v4 = vadd.f32 %v7724_v59, %v3586_v0  ;;  %v3584_v48 = vadd.f32 %v7589_v15, %v7622_v45  ;;  %v4004_v28 = vadd.f32 %v7746_v33, %v3785_v10  ;;  %v8245_v59 = vld [vmem:[#allocation32_spill] sm:$0xff]  ;;  %v8253_v10 = vld [vmem:[#allocation53_spill] sm:$0xff]  ;;  %v8256_v0 = vld [vmem:[#allocation34_spill] sm:$0xff] }
 0x32f   : > { %4432 = vst.msk [vmem:[%s7817_s10] sm:$0xf] %vm1601_vm6, %v4921_v43  ;;  %v4924_v17 = vpack.c.bf16 %v4275_v20, %v4275_v20  ;;  %v4273_v29 = vmax.f32 %v4241_v56, 0.0  ;;  %v4246_v14 = vadd.f32 %v7797_v34, %v4207_v5  ;;  %v4205_v46 = vadd.f32 %v4090_v51, %v3997_v62  ;;  %v8246_v5 = vld [vmem:[#allocation10_spill] sm:$0xff]  ;;  %v8248_v51 = vld [vmem:[#allocation33_spill] sm:$0xff] }
 0x330   : > { %v5591_v44 = vpop.f32.mrf.mxu0  ;;  %v3786_v21 = vadd.f32 %v7726_v22, %v3584_v48  ;;  %v3587_v62 = vadd.f32 %v8245_v59, %v8244_v60  ;;  %v4002_v15 = vadd.f32 %v7752_v3, %v3783_v19  ;;  %v8255_v19 = vld [vmem:[#allocation41_spill] sm:$0xff] }
 0x331   : > { %4435 = vst.msk [vmem:[%s7817_s10 + $0xc] sm:$0xf] %vm1601_vm6, %v4924_v17  ;;  %v4922_v42 = vpack.c.bf16 %v4273_v29, %v4273_v29  ;;  %v4278_v26 = vmax.f32 %v4246_v14, 0.0  ;;  %v4244_v8 = vadd.f32 %v7797_v34, %v4205_v46  ;;  %v4208_v35 = vadd.f32 %v5591_v44, %v4000_v24  ;;  %v8249_v17 = vld [vmem:[#allocation50_spill] sm:$0xff]  ;;  %v7882_v14 = vpop.f32.mrf.mxu1  ;;  %v8250_v44 = vld [vmem:[#allocation31_spill] sm:$0xff] }
 0x332   : > { %v4093_v11 = vpop.f32.mrf.mxu0  ;;  %v3789_v61 = vadd.f32 %v8246_v5, %v3587_v62  ;;  %v3585_v24 = vadd.f32 %v8248_v51, %v8247_v2  ;;  %v4007_v29 = vadd.f32 %v8249_v17, %v3788_v4  ;;  %v4005_v57 = vadd.f32 %v8253_v10, %v3786_v21 }
 0x333   : > { %4433 = vst.msk [vmem:[%s7817_s10 + $0x4] sm:$0xf] %vm1601_vm6, %v4922_v42  ;;  %v4927_v53 = vpack.c.bf16 %v4278_v26, %v4278_v26  ;;  %v4276_v9 = vmax.f32 %v4244_v8, 0.0  ;;  %v4247_v12 = vadd.f32 %v7797_v34, %v4208_v35  ;;  %v4206_v23 = vadd.f32 %v4093_v11, %v3998_v6  ;;  %v8251_v42 = vld [vmem:[#allocation15_spill] sm:$0xff]  ;;  %v8252_v26 = vld [vmem:[#allocation12_spill] sm:$0xff] }
 0x334   : > { %v5594_v32 = vpop.f32.mrf.mxu0  ;;  %v3787_v6 = vadd.f32 %v8250_v44, %v3585_v24  ;;  %v3590_v8 = vadd.f32 %v8252_v26, %v8251_v42 }
 0x335   : > { %4438 = vst.msk [vmem:[%s7817_s10 + $0x18] sm:$0xf] %vm1601_vm6, %v4927_v53  ;;  %v4925_v25 = vpack.c.bf16 %v4276_v9, %v4276_v9  ;;  %v4279_v13 = vmax.f32 %v4247_v12, 0.0  ;;  %v4245_v31 = vadd.f32 %v7797_v34, %v4206_v23  ;;  %v4211_v18 = vadd.f32 %v5594_v32, %v4003_v55  ;;  %v8254_v12 = vld [vmem:[#allocation11_spill] sm:$0xff] }
 0x336   : > { %v4106_v30 = vpop.f32.mrf.mxu0  ;;  %v3792_v23 = vadd.f32 %v8254_v12, %v3590_v8  ;;  %v3588_v32 = vadd.f32 %v8256_v0, %v8255_v19  ;;  %v4006_v60 = vadd.f32 %v7780_v27, %v3787_v6 }
 0x337   : > { %4436 = vst.msk [vmem:[%s7817_s10 + $0x10] sm:$0xf] %vm1601_vm6, %v4925_v25  ;;  %v4928_v47 = vpack.c.bf16 %v4279_v13, %v4279_v13  ;;  %v4277_v54 = vmax.f32 %v4245_v31, 0.0  ;;  %v4250_v7 = vadd.f32 %v7797_v34, %v4211_v18  ;;  %v4209_v63 = vadd.f32 %v4106_v30, %v4001_v37  ;;  %v8257_v25 = vld [vmem:[#allocation56_spill] sm:$0xff]  ;;  %v7898_v31 = vpop.f32.mrf.mxu1 }
 0x338   : > { %v5595_v43 = vpop.f32.mrf.mxu0  ;;  %v4008_v13 = vadd.f32 %v8257_v25, %v3789_v61  ;;  %v4011_v2 = vadd.f32 %v7790_v58, %v3792_v23  ;;  %v8271_v25 = vld [vmem:[#allocation21_spill] sm:$0xff] }
 0x339   : > { %4439 = vst.msk [vmem:[%s7817_s10 + $0x1c] sm:$0xf] %vm1601_vm6, %v4928_v47  ;;  %v4926_v33 = vpack.c.bf16 %v4277_v54, %v4277_v54  ;;  %v4282_v45 = vmax.f32 %v4250_v7, 0.0  ;;  %v4248_v20 = vadd.f32 %v7797_v34, %v4209_v63  ;;  %v4212_v56 = vadd.f32 %v5595_v43, %v4004_v28  ;;  %v8258_v28 = vld [vmem:[#allocation43_spill] sm:$0xff]  ;;  %v8259_v54 = vld [vmem:[#allocation42_spill] sm:$0xff]  ;;  %v7914_v51 = vpop.f32.mrf.mxu1 }
 0x33a   : > { %v4109_v22 = vpop.f32.mrf.mxu0  ;;  %v3790_v47 = vadd.f32 %v8258_v28, %v3588_v32  ;;  %v8260_v7 = vld [vmem:[#allocation35_spill] sm:$0xff] }
 0x33b   : > { %4437 = vst.msk [vmem:[%s7817_s10 + $0x14] sm:$0xf] %vm1601_vm6, %v4926_v33  ;;  %v4931_v3 = vpack.c.bf16 %v4282_v45, %v4282_v45  ;;  %v4280_v46 = vmax.f32 %v4248_v20, 0.0  ;;  %v4251_v36 = vadd.f32 %v7797_v34, %v4212_v56  ;;  %v4210_v38 = vadd.f32 %v4109_v22, %v4002_v15  ;;  %v8261_v33 = vld [vmem:[#allocation44_spill] sm:$0xff]  ;;  %v8263_v56 = vld [vmem:[#allocation13_spill] sm:$0xff]  ;;  %v7930_v12 = vpop.f32.mrf.mxu1  ;;  %v8270_v32 = vld [vmem:[#allocation47_spill] sm:$0xff] }
 0x33c   : > { %v5598_v35 = vpop.f32.mrf.mxu0  ;;  %v3591_v63 = vadd.f32 %v8260_v7, %v8259_v54  ;;  %v8262_v20 = vld [vmem:[#allocation24_spill] sm:$0xff]  ;;  %v4009_v6 = vadd.f32 %v7801_v16, %v3790_v47 }
 0x33d   : > { %4442 = vst.msk [vmem:[%s7817_s10 + $0x28] sm:$0xf] %vm1601_vm6, %v4931_v3  ;;  %v4929_v11 = vpack.c.bf16 %v4280_v46, %v4280_v46  ;;  %v4283_v55 = vmax.f32 %v4251_v36, 0.0  ;;  %v4249_v53 = vadd.f32 %v7797_v34, %v4210_v38  ;;  %v4215_v9 = vadd.f32 %v5598_v35, %v4007_v29  ;;  %v8264_v29 = vld [vmem:[#allocation45_spill] sm:$0xff]  ;;  %v8265_v46 = vld [vmem:[#allocation4_spill] sm:$0xff]  ;;  %v8267_v35 = vld [vmem:[#allocation46_spill] sm:$0xff] }
 0x33e   : > { %v4122_v37 = vpop.f32.mrf.mxu0  ;;  %v3793_v45 = vadd.f32 %v8261_v33, %v3591_v63  ;;  %v3589_v5 = vadd.f32 %v8263_v56, %v8262_v20  ;;  %v8266_v36 = vld [vmem:[#allocation36_spill] sm:$0xff]  ;;  %v8276_v20 = vld [vmem:[#allocation49_spill] sm:$0xff] }
 0x33f   : > { %4440 = vst.msk [vmem:[%s7817_s10 + $0x20] sm:$0xf] %vm1601_vm6, %v4929_v11  ;;  %v4932_v18 = vpack.c.bf16 %v4283_v55, %v4283_v55  ;;  %v4281_v4 = vmax.f32 %v4249_v53, 0.0  ;;  %v4254_v48 = vadd.f32 %v7797_v34, %v4215_v9  ;;  %v4213_v30 = vadd.f32 %v4122_v37, %v4005_v57  ;;  %v8268_v57 = vld [vmem:[#allocation19_spill] sm:$0xff]  ;;  %v8269_v11 = vld [vmem:[#allocation14_spill] sm:$0xff]  ;;  %v8273_v54 = vld [vmem:[#allocation48_spill] sm:$0xff] }
 0x340   : > { %v5599_v21 = vpop.f32.mrf.mxu0  ;;  %v3791_v3 = vadd.f32 %v8264_v29, %v3589_v5  ;;  %v3594_v38 = vadd.f32 %v8266_v36, %v8265_v46  ;;  %v3592_v55 = vadd.f32 %v8269_v11, %v8268_v57  ;;  %v4012_v9 = vadd.f32 %v7820_v49, %v3793_v45  ;;  %v8274_v63 = vld [vmem:[#allocation20_spill] sm:$0xff]  ;;  %v8277_v5 = vld [vmem:[#allocation6_spill] sm:$0xff]  ;;  %v8283_v11 = vld [vmem:[#allocation7_spill] sm:$0xff] }
 0x341   : > { %4443 = vst.msk [vmem:[%s7817_s10 + $0x2c] sm:$0xf] %vm1601_vm6, %v4932_v18  ;;  %v4930_v59 = vpack.c.bf16 %v4281_v4, %v4281_v4  ;;  %v4286_v62 = vmax.f32 %v4254_v48, 0.0  ;;  %v4252_v43 = vadd.f32 %v7797_v34, %v4213_v30  ;;  %v4216_v15 = vadd.f32 %v5599_v21, %v4008_v13  ;;  %v8272_v13 = vld [vmem:[#allocation39_spill] sm:$0xff]  ;;  %v8275_v21 = vld [vmem:[#allocation40_spill] sm:$0xff]  ;;  %v8280_v36 = vld [vmem:[#allocation22_spill] sm:$0xff] }
 0x342   : > { %v4125_v61 = vpop.f32.mrf.mxu0  ;;  %v3796_v10 = vadd.f32 %v8267_v35, %v3594_v38  ;;  %v3794_v37 = vadd.f32 %v8270_v32, %v3592_v55  ;;  %v3595_v18 = vadd.f32 %v8272_v13, %v8271_v25  ;;  %v4010_v48 = vadd.f32 %v7834_v52, %v3791_v3  ;;  %v8279_v3 = vld [vmem:[#allocation51_spill] sm:$0xff]  ;;  %v8281_v38 = vld [vmem:[#allocation26_spill] sm:$0xff]  ;;  %v8284_v55 = vld [vmem:[#allocation17_spill] sm:$0xff] }
 0x343   : > { %4441 = vst.msk [vmem:[%s7817_s10 + $0x24] sm:$0xf] %vm1601_vm6, %v4930_v59  ;;  %v4935_v27 = vpack.c.bf16 %v4286_v62, %v4286_v62  ;;  %v4284_v24 = vmax.f32 %v4252_v43, 0.0  ;;  %v4255_v22 = vadd.f32 %v7797_v34, %v4216_v15  ;;  %v4214_v17 = vadd.f32 %v4125_v61, %v4006_v60  ;;  %v5577_v43 = vpop.f32.mrf.mxu1  ;;  %v8278_v61 = vld [vmem:[#allocation16_spill] sm:$0xff] }
 0x344   : > { %v5602_v44 = vpop.f32.mrf.mxu0  ;;  %v3797_v7 = vadd.f32 %v8273_v54, %v3595_v18  ;;  %v3593_v60 = vadd.f32 %v8275_v21, %v8274_v63  ;;  %v4015_v62 = vadd.f32 %v7850_v1, %v3796_v10  ;;  %v8282_v10 = vld [vmem:[#allocation52_spill] sm:$0xff]  ;;  %v8287_v18 = vld [vmem:[#allocation5_spill] sm:$0xff]  ;;  %v8288_v54 = vld [vmem:[#allocation55_spill] sm:$0xff] }
 0x345   : > { %4446 = vst.msk [vmem:[%s7817_s10 + $0x38] sm:$0xf] %vm1601_vm6, %v4935_v27  ;;  %v4933_v58 = vpack.c.bf16 %v4284_v24, %v4284_v24  ;;  %v4287_v42 = vmax.f32 %v4255_v22, 0.0  ;;  %v4253_v26 = vadd.f32 %v7797_v34, %v4214_v17  ;;  %v4219_v8 = vadd.f32 %v5602_v44, %v4011_v2  ;;  %v8286_v13 = vld [vmem:[#allocation8_spill] sm:$0xff]  ;;  %v8289_v63 = vld [vmem:[#allocation27_spill] sm:$0xff]  ;;  %v8290_v21 = vld [vmem:[#allocation18_spill] sm:$0xff] }
 0x346   : > { %v4138_v53 = vpop.f32.mrf.mxu0  ;;  %v3795_v56 = vadd.f32 %v8276_v20, %v3593_v60  ;;  %v3598_v2 = vadd.f32 %v8278_v61, %v8277_v5  ;;  %v4013_v24 = vadd.f32 %v7866_v50, %v3794_v37  ;;  %v3596_v44 = vadd.f32 %v8281_v38, %v8280_v36  ;;  %v8285_v37 = vld [vmem:[#allocation54_spill] sm:$0xff]  ;;  %v8291_v20 = vld [vmem:[#allocation57_spill] sm:$0xff]  ;;  %v8293_v61 = vld [vmem:[#allocation23_spill] sm:$0xff] }
 0x347   : > { %4444 = vst.msk [vmem:[%s7817_s10 + $0x30] sm:$0xf] %vm1601_vm6, %v4933_v58  ;;  %v4936_v16 = vpack.c.bf16 %v4287_v42, %v4287_v42  ;;  %v4285_v23 = vmax.f32 %v4253_v26, 0.0  ;;  %v4258_v19 = vadd.f32 %v7797_v34, %v4219_v8  ;;  %v4217_v0 = vadd.f32 %v4138_v53, %v4009_v6  ;;  %v3965_v42 = vpop.f32.mrf.mxu1  ;;  %v8292_v5 = vld [vmem:[#allocation9_spill] sm:$0xff] }
 0x348   : > { %v5603_v4 = vpop.f32.mrf.mxu0  ;;  %v3800_v46 = vadd.f32 %v8279_v3, %v3598_v2  ;;  %v4016_v58 = vadd.f32 %v7882_v14, %v3797_v7  ;;  %v3798_v57 = vadd.f32 %v8282_v10, %v3596_v44  ;;  %v3599_v53 = vadd.f32 %v8284_v55, %v8283_v11  ;;  %v8294_v3 = vld [vmem:[#allocation29_spill] sm:$0xff]  ;;  %v8296_v10 = vld [vmem:[#allocation30_spill] sm:$0xff] }
 0x349   : > { %4447 = vst.msk [vmem:[%s7817_s10 + $0x3c] sm:$0xf] %vm1601_vm6, %v4936_v16  ;;  %v4934_v49 = vpack.c.bf16 %v4285_v23, %v4285_v23  ;;  %v4290_v30 = vmax.f32 %v4258_v19, 0.0  ;;  %v4256_v28 = vadd.f32 %v7797_v34, %v4217_v0  ;;  %v4220_v47 = vadd.f32 %v5603_v4, %v4012_v9  ;;  %v5580_v23 = vpop.f32.mrf.mxu1 }
 0x34a   : > { %v4141_v59 = vpop.f32.mrf.mxu0  ;;  %v4014_v16 = vadd.f32 %v7898_v31, %v3795_v56  ;;  %v3801_v25 = vadd.f32 %v8285_v37, %v3599_v53  ;;  %v3597_v4 = vadd.f32 %v8287_v18, %v8286_v13  ;;  %v3602_v60 = vadd.f32 %v8290_v21, %v8289_v63 }
 0x34b   : > { %4445 = vst.msk [vmem:[%s7817_s10 + $0x34] sm:$0xf] %vm1601_vm6, %v4934_v49  ;;  %v4939_v52 = vpack.c.bf16 %v4290_v30, %v4290_v30  ;;  %v4288_v15 = vmax.f32 %v4256_v28, 0.0  ;;  %v4259_v33 = vadd.f32 %v7797_v34, %v4220_v47  ;;  %v4218_v45 = vadd.f32 %v4141_v59, %v4010_v48 }
 0x34c   : > { %v5606_v27 = vpop.f32.mrf.mxu0  ;;  %v4019_v49 = vadd.f32 %v7914_v51, %v3800_v46  ;;  %v3799_v7 = vadd.f32 %v8288_v54, %v3597_v4  ;;  %v3804_v56 = vadd.f32 %v8291_v20, %v3602_v60  ;;  %v3600_v2 = vadd.f32 %v8293_v61, %v8292_v5  ;;  %v8295_v46 = vld [vmem:[#allocation25_spill] sm:$0xff] }
 0x34d   : > { %4450 = vst.msk [vmem:[%s7817_s10 + $0x48] sm:$0xf] %vm1601_vm6, %v4939_v52  ;;  %v4937_v1 = vpack.c.bf16 %v4288_v15, %v4288_v15  ;;  %v4291_v22 = vmax.f32 %v4259_v33, 0.0  ;;  %v4257_v17 = vadd.f32 %v7797_v34, %v4218_v45  ;;  %v4223_v29 = vadd.f32 %v5606_v27, %v4015_v62  ;;  %v3978_v52 = vpop.f32.mrf.mxu1 }
 0x34e   : > { %v4154_v6 = vpop.f32.mrf.mxu0  ;;  %v4017_v62 = vadd.f32 %v7930_v12, %v3798_v57  ;;  %v3603_v36 = vadd.f32 %v8295_v46, %v8294_v3  ;;  %v4018_v44 = vadd.f32 %v3965_v42, %v3799_v7  ;;  %v8297_v57 = vld [vmem:[#allocation28_spill] sm:$0xff] }
 0x34f   : > { %4448 = vst.msk [vmem:[%s7817_s10 + $0x40] sm:$0xf] %vm1601_vm6, %v4937_v1  ;;  %v4940_v50 = vpack.c.bf16 %v4291_v22, %v4291_v22  ;;  %v4289_v26 = vmax.f32 %v4257_v17, 0.0  ;;  %v4262_v8 = vadd.f32 %v7797_v34, %v4223_v29  ;;  %v4221_v35 = vadd.f32 %v4154_v6, %v4013_v24  ;;  %v5581_v6 = vpop.f32.mrf.mxu1 }
 0x350   : > { %v5607_v9 = vpop.f32.mrf.mxu0  ;;  %v4020_v24 = vadd.f32 %v5577_v43, %v3801_v25  ;;  %v3802_v29 = vadd.f32 %v7776_v39, %v3600_v2  ;;  %v3601_v39 = vadd.f32 %v8297_v57, %v8296_v10 }
 0x351   : > { %4451 = vst.msk [vmem:[%s7817_s10 + $0x4c] sm:$0xf] %vm1601_vm6, %v4940_v50  ;;  %v4938_v14 = vpack.c.bf16 %v4289_v26, %v4289_v26  ;;  %v4294_v19 = vmax.f32 %v4262_v8, 0.0  ;;  %v4260_v0 = vadd.f32 %v7797_v34, %v4221_v35  ;;  %v4224_v32 = vadd.f32 %v5607_v9, %v4016_v58 }
 0x352   : > { %v4157_v48 = vpop.f32.mrf.mxu0  ;;  %v4023_v8 = vadd.f32 %v5580_v23, %v3804_v56  ;;  %v3805_v35 = vadd.f32 %v7782_v41, %v3603_v36  ;;  %v3981_v23 = vpop.f32.mrf.mxu1 }
 0x353   : > { %4449 = vst.msk [vmem:[%s7817_s10 + $0x44] sm:$0xf] %vm1601_vm6, %v4938_v14  ;;  %v4943_v31 = vpack.c.bf16 %v4294_v19, %v4294_v19  ;;  %v4292_v30 = vmax.f32 %v4260_v0, 0.0  ;;  %v4263_v28 = vadd.f32 %v7797_v34, %v4224_v32  ;;  %v4222_v47 = vadd.f32 %v4157_v48, %v4014_v16 }
 0x354   : > { %v5610_v59 = vpop.f32.mrf.mxu0  ;;  %v4021_v16 = vadd.f32 %v3978_v52, %v3802_v29  ;;  %v3803_v14 = vadd.f32 %v7786_v40, %v3601_v39  ;;  %v4024_v25 = vadd.f32 %v5581_v6, %v3805_v35 }
 0x355   : > { %4454 = vst.msk [vmem:[%s7817_s10 + $0x58] sm:$0xf] %vm1601_vm6, %v4943_v31  ;;  %v4941_v51 = vpack.c.bf16 %v4292_v30, %v4292_v30  ;;  %v4295_v15 = vmax.f32 %v4263_v28, 0.0  ;;  %v4261_v33 = vadd.f32 %v7797_v34, %v4222_v47  ;;  %v4227_v45 = vadd.f32 %v5610_v59, %v4019_v49 }
 0x356   : > { %v4170_v27 = vpop.f32.mrf.mxu0  ;;  %v4022_v49 = vadd.f32 %v3981_v23, %v3803_v14 }
 0x357   : > { %4452 = vst.msk [vmem:[%s7817_s10 + $0x50] sm:$0xf] %vm1601_vm6, %v4941_v51  ;;  %v4944_v1 = vpack.c.bf16 %v4295_v15, %v4295_v15  ;;  %v4293_v12 = vmax.f32 %v4261_v33, 0.0  ;;  %v4266_v22 = vadd.f32 %v7797_v34, %v4227_v45  ;;  %v4225_v17 = vadd.f32 %v4170_v27, %v4017_v62 }
 0x358   : > { %v5611_v38 = vpop.f32.mrf.mxu0 }
 0x359   : > { %4455 = vst.msk [vmem:[%s7817_s10 + $0x5c] sm:$0xf] %vm1601_vm6, %v4944_v1  ;;  %v4942_v58 = vpack.c.bf16 %v4293_v12, %v4293_v12  ;;  %v4298_v43 = vmax.f32 %v4266_v22, 0.0  ;;  %v4264_v50 = vadd.f32 %v7797_v34, %v4225_v17  ;;  %v4228_v26 = vadd.f32 %v5611_v38, %v4020_v24 }
 0x35a   : > { %v4173_v11 = vpop.f32.mrf.mxu0 }
 0x35b   : > { %4453 = vst.msk [vmem:[%s7817_s10 + $0x54] sm:$0xf] %vm1601_vm6, %v4942_v58  ;;  %v4947_v42 = vpack.c.bf16 %v4298_v43, %v4298_v43  ;;  %v4296_v55 = vmax.f32 %v4264_v50, 0.0  ;;  %v4267_v53 = vadd.f32 %v7797_v34, %v4228_v26  ;;  %v4226_v9 = vadd.f32 %v4173_v11, %v4018_v44 }
 0x35c   : > { %v5614_v19 = vpop.f32.mrf.mxu0 }
 0x35d   : > { %4458 = vst.msk [vmem:[%s7817_s10 + $0x68] sm:$0xf] %vm1601_vm6, %v4947_v42  ;;  %v4945_v41 = vpack.c.bf16 %v4296_v55, %v4296_v55  ;;  %v4299_v0 = vmax.f32 %v4267_v53, 0.0  ;;  %v4265_v32 = vadd.f32 %v7797_v34, %v4226_v9  ;;  %v4231_v37 = vadd.f32 %v5614_v19, %v4023_v8 }
 0x35e   : > { %v4186_v13 = vpop.f32.mrf.mxu0 }
 0x35f   : > { %4456 = vst.msk [vmem:[%s7817_s10 + $0x60] sm:$0xf] %vm1601_vm6, %v4945_v41  ;;  %v4948_v18 = vpack.c.bf16 %v4299_v0, %v4299_v0  ;;  %v4297_v4 = vmax.f32 %v4265_v32, 0.0  ;;  %v4270_v40 = vadd.f32 %v7797_v34, %v4231_v37  ;;  %v4229_v48 = vadd.f32 %v4186_v13, %v4021_v16 }
 0x360   : > { %v5615_v31 = vpop.f32.mrf.mxu0 }
 0x361   : > { %4459 = vst.msk [vmem:[%s7817_s10 + $0x6c] sm:$0xf] %vm1601_vm6, %v4948_v18  ;;  %v4946_v30 = vpack.c.bf16 %v4297_v4, %v4297_v4  ;;  %v4302_v28 = vmax.f32 %v4270_v40, 0.0  ;;  %v4268_v47 = vadd.f32 %v7797_v34, %v4229_v48  ;;  %v4232_v54 = vadd.f32 %v5615_v31, %v4024_v25 }
 0x362   : > { %v4189_v7 = vpop.f32.mrf.mxu0 }
 0x363   : > { %4457 = vst.msk [vmem:[%s7817_s10 + $0x64] sm:$0xf] %vm1601_vm6, %v4946_v30  ;;  %v4951_v63 = vpack.c.bf16 %v4302_v28, %v4302_v28  ;;  %v4300_v21 = vmax.f32 %v4268_v47, 0.0  ;;  %v4271_v60 = vadd.f32 %v7797_v34, %v4232_v54  ;;  %v4230_v59 = vadd.f32 %v4189_v7, %v4022_v49 }
 0x365   : > { %4462 = vst.msk [vmem:[%s7817_s10 + $0x78] sm:$0xf] %vm1601_vm6, %v4951_v63  ;;  %v4949_v62 = vpack.c.bf16 %v4300_v21, %v4300_v21  ;;  %v4303_v52 = vmax.f32 %v4271_v60, 0.0  ;;  %v4269_v51 = vadd.f32 %v7797_v34, %v4230_v59 }
 0x367   : > { %4460 = vst.msk [vmem:[%s7817_s10 + $0x70] sm:$0xf] %vm1601_vm6, %v4949_v62  ;;  %v4952_v15 = vpack.c.bf16 %v4303_v52, %v4303_v52  ;;  %v4301_v33 = vmax.f32 %v4269_v51, 0.0 }
 0x369   : > { %4463 = vst.msk [vmem:[%s7817_s10 + $0x7c] sm:$0xf] %vm1601_vm6, %v4952_v15  ;;  %v4950_v45 = vpack.c.bf16 %v4301_v33, %v4301_v33 }
 0x36b   : > { %4461 = vst.msk [vmem:[%s7817_s10 + $0x74] sm:$0xf] %vm1601_vm6, %v4950_v45 }
 0x36c PF: > { %s15_s18 = sadd.s32 1, %s5698_s18  }
 0x36d   : > { %p12_p4 = scmp.ge.s32.totalorder %s15_s18, 4  }
 0x36f   :  { %14 = sbr.rel (!%p12_p4) target bundleno = 1 (0x1), region = 81 }

</bundles_post_ra>
